<compile_context>
chip_gen: v6e
topology: v6e:2x2x1
jax: 0.10.0
libtpu: 0.0.40
codegen_flags: <defaults>
</compile_context>

<pallas_src>
import functools

import jax
import jax.numpy as jnp
from jax.experimental import pallas as pl
from jax.experimental.pallas import tpu as pltpu


# ----------------------------------------------------------------------------
# Pallas kernel: one batch tile of the full forward pass.
# ----------------------------------------------------------------------------
def rainbow_kernel(num_actions, num_atoms, atoms_pad, hidden,
                   x_ref,
                   w1, b1, w2, b2, w3, b3, w4, b4, w5, b5,
                   wva, bva, wv2, bv2, wa2, ba2,
                   out_ref):
    def lin(h, w_r, b_r):
        # bf16 operands on the MXU, f32 accumulation; bias add stays f32.
        return jnp.dot(h.astype(jnp.bfloat16), w_r[...],
                       preferred_element_type=jnp.float32) + b_r[...]

    def lin_relu(h, w_r, b_r):
        return jnp.maximum(lin(h, w_r, b_r), 0.0)

    h = x_ref[...].astype(jnp.float32)               # (TB, num_inputs)
    h = lin_relu(h, w1, b1)                          # (TB, H)
    h = lin_relu(h, w2, b2)
    h = lin_relu(h, w3, b3)
    h = lin_relu(h, w4, b4)
    h = lin_relu(h, w5, b5)

    # fused value|advantage first layer -> (TB, 2H); lane-aligned slices
    h_va = lin_relu(h, wva, bva)
    v_h = h_va[:, :hidden]
    a_h = h_va[:, hidden:]

    value = lin(v_h, wv2, bv2)                       # (TB, atoms_pad)
    adv = lin(a_h, wa2, ba2)                         # (TB, NA*atoms_pad)

    # mean over actions per (padded) atom lane
    adv_slices = [adv[:, n * atoms_pad:(n + 1) * atoms_pad]
                  for n in range(num_actions)]       # each (TB, atoms_pad)
    adv_mean = sum(adv_slices) * (1.0 / num_actions)
    base = value - adv_mean                          # shared dueling term

    # padded-lane mask (identical for every action segment)
    lane = jax.lax.broadcasted_iota(jnp.int32, value.shape, 1)
    valid = lane < num_atoms

    # per-action softmax on the lane-dense (TB, NA*128) layout; each store is
    # a 128-lane-aligned slice (no concatenate, no sublane relayout).
    for n in range(num_actions):
        logits = jnp.where(valid, base + adv_slices[n], -1e30)
        m = jnp.max(logits, axis=-1, keepdims=True)
        e = jnp.exp(logits - m)
        s = jnp.sum(e, axis=-1, keepdims=True)
        # exact reciprocal: kernel is DMA-bound, EUP slack makes this free,
        # and rows then sum to 1 to f32 precision.
        out_ref[:, n * atoms_pad:(n + 1) * atoms_pad] = (
            e * pl.reciprocal(s, approx=False))


# ----------------------------------------------------------------------------
# Host wrapper
# ----------------------------------------------------------------------------
def rainbow_forward(x, kernel_params, num_actions, num_atoms,
                    atoms_pad=128, hidden=512, batch_tile=None):
    batch, num_inputs = x.shape

    # Batch tile: full MXU height when the batch is large (128 everywhere is a
    # safe common choice), else the 8-padded batch so small batches stay one
    # grid step.
    if batch_tile is None:
        batch_tile = 128 if batch >= 128 else max(8, -(-batch // 8) * 8)
    batch_pad = -(-batch // batch_tile) * batch_tile
    if batch_pad != batch:
        x = jnp.pad(x, ((0, batch_pad - batch), (0, 0)))
    num_tiles = batch_pad // batch_tile

    inputs = (x,) + tuple(kernel_params)

    # Activations / outputs stream over the batch grid; every weight block has
    # a constant index_map so it is fetched once and stays resident in VMEM.
    x_spec = pl.BlockSpec((batch_tile, num_inputs), lambda i: (i, 0))
    w_specs = [pl.BlockSpec(p.shape, lambda i: (0, 0)) for p in kernel_params]
    out_spec = pl.BlockSpec((batch_tile, num_actions * atoms_pad),
                            lambda i: (i, 0))

    flops = 2 * batch_pad * (num_inputs * hidden
                             + 4 * hidden * hidden          # trunk 2..5
                             + hidden * (2 * hidden)        # fused va layer 1
                             + hidden * atoms_pad           # value head 2
                             + hidden * num_actions * atoms_pad)  # adv head 2
    bytes_accessed = (sum(int(a.size) * a.dtype.itemsize for a in inputs)
                      + batch_pad * num_actions * atoms_pad * 4)
    transcendentals = batch_pad * num_actions * (atoms_pad + 1)

    kernel = functools.partial(rainbow_kernel, num_actions, num_atoms,
                               atoms_pad, hidden)
    out = pl.pallas_call(
        kernel,
        out_shape=jax.ShapeDtypeStruct((batch_pad, num_actions * atoms_pad),
                                       jnp.float32),
        grid=(num_tiles,),
        in_specs=[x_spec] + w_specs,
        out_specs=out_spec,
        compiler_params=pltpu.CompilerParams(
            dimension_semantics=("parallel",),   # v7x: both TCs split batch
            vmem_limit_bytes=32 * 1024 * 1024),  # safe on v5e/v6e/v7x
        cost_estimate=pl.CostEstimate(flops=int(flops),
                                      transcendentals=int(transcendentals),
                                      bytes_accessed=int(bytes_accessed)),
    )(*inputs)

    out = out.reshape(batch_pad, num_actions, atoms_pad)
    return out[:batch, :, :num_atoms]


# ----------------------------------------------------------------------------
# Deterministic parameter construction (mirrors nn.Linear / NoisyLinear shapes)
# ----------------------------------------------------------------------------
def _linear_params(key, in_f, out_f):
    k1, k2 = jax.random.split(key)
    bound = 1.0 / jnp.sqrt(float(in_f))
    w = jax.random.uniform(k1, (out_f, in_f), minval=-bound, maxval=bound)
    b = jax.random.uniform(k2, (out_f,), minval=-bound, maxval=bound)
    return w.T.astype(jnp.float32), b.astype(jnp.float32)        # (in,out), (out,)


def _noisy_linear_params(key, in_f, out_f, std_init=0.4):
    # effective W = W_mu + W_sigma * (f(eps_out) outer f(eps_in)), factorized
    def f(x):
        return jnp.sign(x) * jnp.sqrt(jnp.abs(x))
    k1, k2, k3, k4 = jax.random.split(key, 4)
    mu_range = 1.0 / jnp.sqrt(float(in_f))
    w_mu = jax.random.uniform(k1, (out_f, in_f), minval=-mu_range, maxval=mu_range)
    b_mu = jax.random.uniform(k2, (out_f,), minval=-mu_range, maxval=mu_range)
    sig = std_init / jnp.sqrt(float(in_f))
    eps_in = f(jax.random.normal(k3, (in_f,)))
    eps_out = f(jax.random.normal(k4, (out_f,)))
    w = w_mu + sig * jnp.outer(eps_out, eps_in)
    b = b_mu + sig * eps_out
    return w.T.astype(jnp.float32), b.astype(jnp.float32)        # (in,out), (out,)


def build_params(key, num_inputs, num_actions, num_atoms, hidden=512,
                 atoms_pad=128):
    ks = jax.random.split(key, 9)
    w1, b1 = _linear_params(ks[0], num_inputs, hidden)
    w2, b2 = _linear_params(ks[1], hidden, hidden)
    w3, b3 = _linear_params(ks[2], hidden, hidden)
    w4, b4 = _linear_params(ks[3], hidden, hidden)
    w5, b5 = _linear_params(ks[4], hidden, hidden)
    wv1, bv1 = _noisy_linear_params(ks[5], hidden, hidden)
    wv2, bv2 = _noisy_linear_params(ks[6], hidden, num_atoms)
    wa1, ba1 = _noisy_linear_params(ks[7], hidden, hidden)
    wa2, ba2 = _noisy_linear_params(ks[8], hidden, num_atoms * num_actions)

    # --- kernel-friendly layouts -------------------------------------------
    bf = lambda a: a.astype(jnp.bfloat16)                 # weight storage dtype
    row = lambda b: b.reshape(1, -1).astype(jnp.float32)  # biases stay f32

    # fused value|advantage first layer: (H, 2H)
    w_va = jnp.concatenate([wv1, wa1], axis=1)
    b_va = jnp.concatenate([bv1, ba1], axis=0)

    # value head 2, atoms padded to 128 lanes with zeros (masked in-kernel)
    wv2_pad = jnp.zeros((hidden, atoms_pad), jnp.float32).at[:, :num_atoms].set(wv2)
    bv2_pad = jnp.zeros((1, atoms_pad), jnp.float32).at[0, :num_atoms].set(bv2)

    # advantage head 2: repack column order n*num_atoms+a -> n*atoms_pad+a
    wa2_3 = wa2.reshape(hidden, num_actions, num_atoms)
    wa2_pad = jnp.zeros((hidden, num_actions, atoms_pad),
                        jnp.float32).at[:, :, :num_atoms].set(wa2_3)
    wa2_pad = wa2_pad.reshape(hidden, num_actions * atoms_pad)
    ba2_pad = jnp.zeros((num_actions, atoms_pad),
                        jnp.float32).at[:, :num_atoms].set(
                            ba2.reshape(num_actions, num_atoms))
    ba2_pad = ba2_pad.reshape(1, num_actions * atoms_pad)

    kernel_params = (
        bf(w1), row(b1), bf(w2), row(b2), bf(w3), row(b3),
        bf(w4), row(b4), bf(w5), row(b5),
        bf(w_va), row(b_va),
        bf(wv2_pad), bv2_pad,
        bf(wa2_pad), ba2_pad,
    )
    flat_params = dict(w1=w1, b1=b1, w2=w2, b2=b2, w3=w3, b3=b3, w4=w4, b4=b4,
                       w5=w5, b5=b5, wv1=wv1, bv1=bv1, wv2=wv2, bv2=bv2,
                       wa1=wa1, ba1=ba1, wa2=wa2, ba2=ba2)
    return kernel_params, flat_params


# ----------------------------------------------------------------------------
# Pure-JAX f32 reference (mirrors the PyTorch forward exactly)
# ----------------------------------------------------------------------------
def reference_forward(x, p, num_actions, num_atoms):
    relu = lambda z: jnp.maximum(z, 0.0)
    h = relu(x @ p["w1"] + p["b1"])
    h = relu(h @ p["w2"] + p["b2"])
    h = relu(h @ p["w3"] + p["b3"])
    h = relu(h @ p["w4"] + p["b4"])
    h = relu(h @ p["w5"] + p["b5"])
    value = relu(h @ p["wv1"] + p["bv1"]) @ p["wv2"] + p["bv2"]
    adv = relu(h @ p["wa1"] + p["ba1"]) @ p["wa2"] + p["ba2"]
    value = value.reshape(-1, 1, num_atoms)
    adv = adv.reshape(-1, num_actions, num_atoms)
    logits = value + adv - adv.mean(axis=1, keepdims=True)
    return jax.nn.softmax(logits, axis=-1)


# ----------------------------------------------------------------------------
if __name__ == "__main__":
    BATCH = 16
    NUM_INPUTS = 16
    NUM_ACTIONS = 4
    NUM_ATOMS = 101     # as in the original script
    HIDDEN = 512        # fixed by the module
    ATOMS_PAD = 128
    BATCH_TILE = 8      # small test tile -> grid=(2,), exercises the batch grid

    key = jax.random.PRNGKey(0)
    k_x, k_p = jax.random.split(key)
    x = jax.random.normal(k_x, (BATCH, NUM_INPUTS), dtype=jnp.float32)
    kernel_params, flat_params = build_params(k_p, NUM_INPUTS, NUM_ACTIONS,
                                              NUM_ATOMS, hidden=HIDDEN,
                                              atoms_pad=ATOMS_PAD)

    out = rainbow_forward(x, kernel_params, NUM_ACTIONS, NUM_ATOMS,
                          atoms_pad=ATOMS_PAD, hidden=HIDDEN,
                          batch_tile=BATCH_TILE)
    out = jax.block_until_ready(out)

    # sanity: shape, finiteness, proper probability distribution over atoms
    assert out.shape == (BATCH, NUM_ACTIONS, NUM_ATOMS), out.shape
    assert bool(jnp.all(jnp.isfinite(out)))
    sums = jnp.sum(out, axis=-1)
    assert bool(jnp.all(jnp.abs(sums - 1.0) < 1e-4)), "softmax not normalized"

    # comparison against the f32 reference (bf16 weight storage introduces
    # small, well-bounded differences)
    ref = reference_forward(x, flat_params, NUM_ACTIONS, NUM_ATOMS)
    assert bool(jnp.max(jnp.abs(out - ref)) < 5e-2), "mismatch vs reference"

    print("KERNEL_OK")
</pallas_src>

<mosaic_0001>
module attributes {stable_mosaic.version = 11 : i64} {
  func.func @rainbow_kernel(%arg0: i32, %arg1: memref<8x16xf32, #tpu.memory_space<vmem>>, %arg2: memref<16x512xbf16, #tpu.memory_space<vmem>>, %arg3: memref<1x512xf32, #tpu.memory_space<vmem>>, %arg4: memref<512x512xbf16, #tpu.memory_space<vmem>>, %arg5: memref<1x512xf32, #tpu.memory_space<vmem>>, %arg6: memref<512x512xbf16, #tpu.memory_space<vmem>>, %arg7: memref<1x512xf32, #tpu.memory_space<vmem>>, %arg8: memref<512x512xbf16, #tpu.memory_space<vmem>>, %arg9: memref<1x512xf32, #tpu.memory_space<vmem>>, %arg10: memref<512x512xbf16, #tpu.memory_space<vmem>>, %arg11: memref<1x512xf32, #tpu.memory_space<vmem>>, %arg12: memref<512x1024xbf16, #tpu.memory_space<vmem>>, %arg13: memref<1x1024xf32, #tpu.memory_space<vmem>>, %arg14: memref<512x128xbf16, #tpu.memory_space<vmem>>, %arg15: memref<1x128xf32, #tpu.memory_space<vmem>>, %arg16: memref<512x512xbf16, #tpu.memory_space<vmem>>, %arg17: memref<1x512xf32, #tpu.memory_space<vmem>>, %arg18: memref<8x512xf32, #tpu.memory_space<vmem>>) attributes {dimension_semantics = [#tpu.dimension_semantics<parallel>], iteration_bounds = array<i64: 2>, scalar_prefetch = 0 : i64, scratch_operands = 0 : i64, tpu.core_type = #tpu.core_type<tc>, window_params = [{transform_indices = @transform_0, window_bounds = array<i64: 8, 16>}, {pipeline_mode = #tpu.pipeline_mode<synchronous>, transform_indices = @transform_1, window_bounds = array<i64: 16, 512>}, {pipeline_mode = #tpu.pipeline_mode<synchronous>, transform_indices = @transform_2, window_bounds = array<i64: 1, 512>}, {pipeline_mode = #tpu.pipeline_mode<synchronous>, transform_indices = @transform_3, window_bounds = array<i64: 512, 512>}, {pipeline_mode = #tpu.pipeline_mode<synchronous>, transform_indices = @transform_4, window_bounds = array<i64: 1, 512>}, {pipeline_mode = #tpu.pipeline_mode<synchronous>, transform_indices = @transform_5, window_bounds = array<i64: 512, 512>}, {pipeline_mode = #tpu.pipeline_mode<synchronous>, transform_indices = @transform_6, window_bounds = array<i64: 1, 512>}, {pipeline_mode = #tpu.pipeline_mode<synchronous>, transform_indices = @transform_7, window_bounds = array<i64: 512, 512>}, {pipeline_mode = #tpu.pipeline_mode<synchronous>, transform_indices = @transform_8, window_bounds = array<i64: 1, 512>}, {pipeline_mode = #tpu.pipeline_mode<synchronous>, transform_indices = @transform_9, window_bounds = array<i64: 512, 512>}, {pipeline_mode = #tpu.pipeline_mode<synchronous>, transform_indices = @transform_10, window_bounds = array<i64: 1, 512>}, {pipeline_mode = #tpu.pipeline_mode<synchronous>, transform_indices = @transform_11, window_bounds = array<i64: 512, 1024>}, {pipeline_mode = #tpu.pipeline_mode<synchronous>, transform_indices = @transform_12, window_bounds = array<i64: 1, 1024>}, {pipeline_mode = #tpu.pipeline_mode<synchronous>, transform_indices = @transform_13, window_bounds = array<i64: 512, 128>}, {pipeline_mode = #tpu.pipeline_mode<synchronous>, transform_indices = @transform_14, window_bounds = array<i64: 1, 128>}, {pipeline_mode = #tpu.pipeline_mode<synchronous>, transform_indices = @transform_15, window_bounds = array<i64: 512, 512>}, {pipeline_mode = #tpu.pipeline_mode<synchronous>, transform_indices = @transform_16, window_bounds = array<i64: 1, 512>}, {transform_indices = @transform_17, window_bounds = array<i64: 8, 512>}]} {
    %c0 = arith.constant 0 : index
    %c0_0 = arith.constant 0 : index
    %0 = vector.load %arg1[%c0, %c0_0] : memref<8x16xf32, #tpu.memory_space<vmem>>, vector<8x16xf32>
    %1 = arith.truncf %0 : vector<8x16xf32> to vector<8x16xbf16>
    %c0_1 = arith.constant 0 : index
    %c0_2 = arith.constant 0 : index
    %2 = vector.load %arg2[%c0_1, %c0_2] : memref<16x512xbf16, #tpu.memory_space<vmem>>, vector<16x512xbf16>
    %cst = arith.constant dense<0.000000e+00> : vector<8x512xf32>
    %3 = tpu.matmul %1, %2, %cst {dimension_numbers = #tpu.dot_dimension_numbers<[1], [0], [0], [1], [0, 0, 1, 1], [], []>} : vector<8x16xbf16>, vector<16x512xbf16>, vector<8x512xf32> -> vector<8x512xf32>
    %c0_3 = arith.constant 0 : index
    %c0_4 = arith.constant 0 : index
    %4 = vector.load %arg3[%c0_3, %c0_4] : memref<1x512xf32, #tpu.memory_space<vmem>>, vector<1x512xf32>
    %5 = vector.broadcast %4 : vector<1x512xf32> to vector<8x512xf32>
    %6 = arith.addf %3, %5 : vector<8x512xf32>
    %cst_5 = arith.constant 0.000000e+00 : f32
    %7 = vector.broadcast %cst_5 : f32 to vector<8x512xf32>
    %8 = arith.maximumf %6, %7 : vector<8x512xf32>
    %9 = arith.truncf %8 : vector<8x512xf32> to vector<8x512xbf16>
    %c0_6 = arith.constant 0 : index
    %c0_7 = arith.constant 0 : index
    %10 = vector.load %arg4[%c0_6, %c0_7] : memref<512x512xbf16, #tpu.memory_space<vmem>>, vector<512x512xbf16>
    %cst_8 = arith.constant dense<0.000000e+00> : vector<8x512xf32>
    %11 = tpu.matmul %9, %10, %cst_8 {dimension_numbers = #tpu.dot_dimension_numbers<[1], [0], [0], [1], [0, 0, 1, 1], [], []>} : vector<8x512xbf16>, vector<512x512xbf16>, vector<8x512xf32> -> vector<8x512xf32>
    %c0_9 = arith.constant 0 : index
    %c0_10 = arith.constant 0 : index
    %12 = vector.load %arg5[%c0_9, %c0_10] : memref<1x512xf32, #tpu.memory_space<vmem>>, vector<1x512xf32>
    %13 = vector.broadcast %12 : vector<1x512xf32> to vector<8x512xf32>
    %14 = arith.addf %11, %13 : vector<8x512xf32>
    %cst_11 = arith.constant 0.000000e+00 : f32
    %15 = vector.broadcast %cst_11 : f32 to vector<8x512xf32>
    %16 = arith.maximumf %14, %15 : vector<8x512xf32>
    %17 = arith.truncf %16 : vector<8x512xf32> to vector<8x512xbf16>
    %c0_12 = arith.constant 0 : index
    %c0_13 = arith.constant 0 : index
    %18 = vector.load %arg6[%c0_12, %c0_13] : memref<512x512xbf16, #tpu.memory_space<vmem>>, vector<512x512xbf16>
    %cst_14 = arith.constant dense<0.000000e+00> : vector<8x512xf32>
    %19 = tpu.matmul %17, %18, %cst_14 {dimension_numbers = #tpu.dot_dimension_numbers<[1], [0], [0], [1], [0, 0, 1, 1], [], []>} : vector<8x512xbf16>, vector<512x512xbf16>, vector<8x512xf32> -> vector<8x512xf32>
    %c0_15 = arith.constant 0 : index
    %c0_16 = arith.constant 0 : index
    %20 = vector.load %arg7[%c0_15, %c0_16] : memref<1x512xf32, #tpu.memory_space<vmem>>, vector<1x512xf32>
    %21 = vector.broadcast %20 : vector<1x512xf32> to vector<8x512xf32>
    %22 = arith.addf %19, %21 : vector<8x512xf32>
    %cst_17 = arith.constant 0.000000e+00 : f32
    %23 = vector.broadcast %cst_17 : f32 to vector<8x512xf32>
    %24 = arith.maximumf %22, %23 : vector<8x512xf32>
    %25 = arith.truncf %24 : vector<8x512xf32> to vector<8x512xbf16>
    %c0_18 = arith.constant 0 : index
    %c0_19 = arith.constant 0 : index
    %26 = vector.load %arg8[%c0_18, %c0_19] : memref<512x512xbf16, #tpu.memory_space<vmem>>, vector<512x512xbf16>
    %cst_20 = arith.constant dense<0.000000e+00> : vector<8x512xf32>
    %27 = tpu.matmul %25, %26, %cst_20 {dimension_numbers = #tpu.dot_dimension_numbers<[1], [0], [0], [1], [0, 0, 1, 1], [], []>} : vector<8x512xbf16>, vector<512x512xbf16>, vector<8x512xf32> -> vector<8x512xf32>
    %c0_21 = arith.constant 0 : index
    %c0_22 = arith.constant 0 : index
    %28 = vector.load %arg9[%c0_21, %c0_22] : memref<1x512xf32, #tpu.memory_space<vmem>>, vector<1x512xf32>
    %29 = vector.broadcast %28 : vector<1x512xf32> to vector<8x512xf32>
    %30 = arith.addf %27, %29 : vector<8x512xf32>
    %cst_23 = arith.constant 0.000000e+00 : f32
    %31 = vector.broadcast %cst_23 : f32 to vector<8x512xf32>
    %32 = arith.maximumf %30, %31 : vector<8x512xf32>
    %33 = arith.truncf %32 : vector<8x512xf32> to vector<8x512xbf16>
    %c0_24 = arith.constant 0 : index
    %c0_25 = arith.constant 0 : index
    %34 = vector.load %arg10[%c0_24, %c0_25] : memref<512x512xbf16, #tpu.memory_space<vmem>>, vector<512x512xbf16>
    %cst_26 = arith.constant dense<0.000000e+00> : vector<8x512xf32>
    %35 = tpu.matmul %33, %34, %cst_26 {dimension_numbers = #tpu.dot_dimension_numbers<[1], [0], [0], [1], [0, 0, 1, 1], [], []>} : vector<8x512xbf16>, vector<512x512xbf16>, vector<8x512xf32> -> vector<8x512xf32>
    %c0_27 = arith.constant 0 : index
    %c0_28 = arith.constant 0 : index
    %36 = vector.load %arg11[%c0_27, %c0_28] : memref<1x512xf32, #tpu.memory_space<vmem>>, vector<1x512xf32>
    %37 = vector.broadcast %36 : vector<1x512xf32> to vector<8x512xf32>
    %38 = arith.addf %35, %37 : vector<8x512xf32>
    %cst_29 = arith.constant 0.000000e+00 : f32
    %39 = vector.broadcast %cst_29 : f32 to vector<8x512xf32>
    %40 = arith.maximumf %38, %39 : vector<8x512xf32>
    %41 = arith.truncf %40 : vector<8x512xf32> to vector<8x512xbf16>
    %c0_30 = arith.constant 0 : index
    %c0_31 = arith.constant 0 : index
    %42 = vector.load %arg12[%c0_30, %c0_31] : memref<512x1024xbf16, #tpu.memory_space<vmem>>, vector<512x1024xbf16>
    %cst_32 = arith.constant dense<0.000000e+00> : vector<8x1024xf32>
    %43 = tpu.matmul %41, %42, %cst_32 {dimension_numbers = #tpu.dot_dimension_numbers<[1], [0], [0], [1], [0, 0, 1, 1], [], []>} : vector<8x512xbf16>, vector<512x1024xbf16>, vector<8x1024xf32> -> vector<8x1024xf32>
    %c0_33 = arith.constant 0 : index
    %c0_34 = arith.constant 0 : index
    %44 = vector.load %arg13[%c0_33, %c0_34] : memref<1x1024xf32, #tpu.memory_space<vmem>>, vector<1x1024xf32>
    %45 = vector.broadcast %44 : vector<1x1024xf32> to vector<8x1024xf32>
    %46 = arith.addf %43, %45 : vector<8x1024xf32>
    %cst_35 = arith.constant 0.000000e+00 : f32
    %47 = vector.broadcast %cst_35 : f32 to vector<8x1024xf32>
    %48 = arith.maximumf %46, %47 : vector<8x1024xf32>
    %49 = vector.extract_strided_slice %48 {offsets = [0, 0], sizes = [8, 512], strides = [1, 1]} : vector<8x1024xf32> to vector<8x512xf32>
    %50 = vector.extract_strided_slice %48 {offsets = [0, 512], sizes = [8, 512], strides = [1, 1]} : vector<8x1024xf32> to vector<8x512xf32>
    %51 = arith.truncf %49 : vector<8x512xf32> to vector<8x512xbf16>
    %c0_36 = arith.constant 0 : index
    %c0_37 = arith.constant 0 : index
    %52 = vector.load %arg14[%c0_36, %c0_37] : memref<512x128xbf16, #tpu.memory_space<vmem>>, vector<512x128xbf16>
    %cst_38 = arith.constant dense<0.000000e+00> : vector<8x128xf32>
    %53 = tpu.matmul %51, %52, %cst_38 {dimension_numbers = #tpu.dot_dimension_numbers<[1], [0], [0], [1], [0, 0, 1, 1], [], []>} : vector<8x512xbf16>, vector<512x128xbf16>, vector<8x128xf32> -> vector<8x128xf32>
    %c0_39 = arith.constant 0 : index
    %c0_40 = arith.constant 0 : index
    %54 = vector.load %arg15[%c0_39, %c0_40] : memref<1x128xf32, #tpu.memory_space<vmem>>, vector<1x128xf32>
    %55 = vector.broadcast %54 : vector<1x128xf32> to vector<8x128xf32>
    %56 = arith.addf %53, %55 : vector<8x128xf32>
    %57 = arith.truncf %50 : vector<8x512xf32> to vector<8x512xbf16>
    %c0_41 = arith.constant 0 : index
    %c0_42 = arith.constant 0 : index
    %58 = vector.load %arg16[%c0_41, %c0_42] : memref<512x512xbf16, #tpu.memory_space<vmem>>, vector<512x512xbf16>
    %cst_43 = arith.constant dense<0.000000e+00> : vector<8x512xf32>
    %59 = tpu.matmul %57, %58, %cst_43 {dimension_numbers = #tpu.dot_dimension_numbers<[1], [0], [0], [1], [0, 0, 1, 1], [], []>} : vector<8x512xbf16>, vector<512x512xbf16>, vector<8x512xf32> -> vector<8x512xf32>
    %c0_44 = arith.constant 0 : index
    %c0_45 = arith.constant 0 : index
    %60 = vector.load %arg17[%c0_44, %c0_45] : memref<1x512xf32, #tpu.memory_space<vmem>>, vector<1x512xf32>
    %61 = vector.broadcast %60 : vector<1x512xf32> to vector<8x512xf32>
    %62 = arith.addf %59, %61 : vector<8x512xf32>
    %63 = vector.extract_strided_slice %62 {offsets = [0, 0], sizes = [8, 128], strides = [1, 1]} : vector<8x512xf32> to vector<8x128xf32>
    %64 = vector.extract_strided_slice %62 {offsets = [0, 128], sizes = [8, 128], strides = [1, 1]} : vector<8x512xf32> to vector<8x128xf32>
    %65 = vector.extract_strided_slice %62 {offsets = [0, 256], sizes = [8, 128], strides = [1, 1]} : vector<8x512xf32> to vector<8x128xf32>
    %66 = vector.extract_strided_slice %62 {offsets = [0, 384], sizes = [8, 128], strides = [1, 1]} : vector<8x512xf32> to vector<8x128xf32>
    %cst_46 = arith.constant 0.000000e+00 : f32
    %67 = vector.broadcast %cst_46 : f32 to vector<8x128xf32>
    %68 = arith.addf %67, %63 : vector<8x128xf32>
    %69 = arith.addf %68, %64 : vector<8x128xf32>
    %70 = arith.addf %69, %65 : vector<8x128xf32>
    %71 = arith.addf %70, %66 : vector<8x128xf32>
    %cst_47 = arith.constant 2.500000e-01 : f32
    %72 = vector.broadcast %cst_47 : f32 to vector<8x128xf32>
    %73 = arith.mulf %71, %72 : vector<8x128xf32>
    %74 = arith.subf %56, %73 : vector<8x128xf32>
    %75 = tpu.iota {dimensions = array<i32: 1>} : vector<8x128xi32>
    %c101_i32 = arith.constant 101 : i32
    %76 = vector.broadcast %c101_i32 : i32 to vector<8x128xi32>
    %77 = arith.cmpi slt, %75, %76 : vector<8x128xi32>
    %78 = arith.addf %74, %63 : vector<8x128xf32>
    %cst_48 = arith.constant -1.000000e+30 : f32
    %79 = vector.broadcast %cst_48 : f32 to vector<8x128xf32>
    %80 = arith.select %77, %78, %79 : vector<8x128xi1>, vector<8x128xf32>
    %cst_49 = arith.constant dense<0xFF800000> : vector<8xf32>
    %81 = vector.multi_reduction <maximumf>, %80, %cst_49 [1] : vector<8x128xf32> to vector<8xf32>
    %82 = vector.shape_cast %81 : vector<8xf32> to vector<8x1xf32>
    %83 = vector.broadcast %82 : vector<8x1xf32> to vector<8x128xf32>
    %84 = arith.subf %80, %83 : vector<8x128xf32>
    %85 = math.exp %84 : vector<8x128xf32>
    %cst_50 = arith.constant dense<0.000000e+00> : vector<8xf32>
    %86 = vector.multi_reduction <add>, %85, %cst_50 [1] : vector<8x128xf32> to vector<8xf32>
    %87 = vector.shape_cast %86 : vector<8xf32> to vector<8x1xf32>
    %88 = tpu.reciprocal %87 : vector<8x1xf32> -> vector<8x1xf32>
    %89 = vector.broadcast %88 : vector<8x1xf32> to vector<8x128xf32>
    %90 = arith.mulf %85, %89 : vector<8x128xf32>
    %c0_51 = arith.constant 0 : index
    %c0_52 = arith.constant 0 : index
    %91 = vector.load %arg18[%c0_51, %c0_52] : memref<8x512xf32, #tpu.memory_space<vmem>>, vector<8x128xf32>
    tpu.vector_store %arg18[%c0_51, %c0_52], %90 {strides = array<i32>} : memref<8x512xf32, #tpu.memory_space<vmem>>, vector<8x128xf32>,
    %92 = arith.addf %74, %64 : vector<8x128xf32>
    %cst_53 = arith.constant -1.000000e+30 : f32
    %93 = vector.broadcast %cst_53 : f32 to vector<8x128xf32>
    %94 = arith.select %77, %92, %93 : vector<8x128xi1>, vector<8x128xf32>
    %cst_54 = arith.constant dense<0xFF800000> : vector<8xf32>
    %95 = vector.multi_reduction <maximumf>, %94, %cst_54 [1] : vector<8x128xf32> to vector<8xf32>
    %96 = vector.shape_cast %95 : vector<8xf32> to vector<8x1xf32>
    %97 = vector.broadcast %96 : vector<8x1xf32> to vector<8x128xf32>
    %98 = arith.subf %94, %97 : vector<8x128xf32>
    %99 = math.exp %98 : vector<8x128xf32>
    %cst_55 = arith.constant dense<0.000000e+00> : vector<8xf32>
    %100 = vector.multi_reduction <add>, %99, %cst_55 [1] : vector<8x128xf32> to vector<8xf32>
    %101 = vector.shape_cast %100 : vector<8xf32> to vector<8x1xf32>
    %102 = tpu.reciprocal %101 : vector<8x1xf32> -> vector<8x1xf32>
    %103 = vector.broadcast %102 : vector<8x1xf32> to vector<8x128xf32>
    %104 = arith.mulf %99, %103 : vector<8x128xf32>
    %c0_56 = arith.constant 0 : index
    %c128 = arith.constant 128 : index
    %105 = vector.load %arg18[%c0_56, %c128] : memref<8x512xf32, #tpu.memory_space<vmem>>, vector<8x128xf32>
    tpu.vector_store %arg18[%c0_56, %c128], %104 {strides = array<i32>} : memref<8x512xf32, #tpu.memory_space<vmem>>, vector<8x128xf32>,
    %106 = arith.addf %74, %65 : vector<8x128xf32>
    %cst_57 = arith.constant -1.000000e+30 : f32
    %107 = vector.broadcast %cst_57 : f32 to vector<8x128xf32>
    %108 = arith.select %77, %106, %107 : vector<8x128xi1>, vector<8x128xf32>
    %cst_58 = arith.constant dense<0xFF800000> : vector<8xf32>
    %109 = vector.multi_reduction <maximumf>, %108, %cst_58 [1] : vector<8x128xf32> to vector<8xf32>
    %110 = vector.shape_cast %109 : vector<8xf32> to vector<8x1xf32>
    %111 = vector.broadcast %110 : vector<8x1xf32> to vector<8x128xf32>
    %112 = arith.subf %108, %111 : vector<8x128xf32>
    %113 = math.exp %112 : vector<8x128xf32>
    %cst_59 = arith.constant dense<0.000000e+00> : vector<8xf32>
    %114 = vector.multi_reduction <add>, %113, %cst_59 [1] : vector<8x128xf32> to vector<8xf32>
    %115 = vector.shape_cast %114 : vector<8xf32> to vector<8x1xf32>
    %116 = tpu.reciprocal %115 : vector<8x1xf32> -> vector<8x1xf32>
    %117 = vector.broadcast %116 : vector<8x1xf32> to vector<8x128xf32>
    %118 = arith.mulf %113, %117 : vector<8x128xf32>
    %c0_60 = arith.constant 0 : index
    %c256 = arith.constant 256 : index
    %119 = vector.load %arg18[%c0_60, %c256] : memref<8x512xf32, #tpu.memory_space<vmem>>, vector<8x128xf32>
    tpu.vector_store %arg18[%c0_60, %c256], %118 {strides = array<i32>} : memref<8x512xf32, #tpu.memory_space<vmem>>, vector<8x128xf32>,
    %120 = arith.addf %74, %66 : vector<8x128xf32>
    %cst_61 = arith.constant -1.000000e+30 : f32
    %121 = vector.broadcast %cst_61 : f32 to vector<8x128xf32>
    %122 = arith.select %77, %120, %121 : vector<8x128xi1>, vector<8x128xf32>
    %cst_62 = arith.constant dense<0xFF800000> : vector<8xf32>
    %123 = vector.multi_reduction <maximumf>, %122, %cst_62 [1] : vector<8x128xf32> to vector<8xf32>
    %124 = vector.shape_cast %123 : vector<8xf32> to vector<8x1xf32>
    %125 = vector.broadcast %124 : vector<8x1xf32> to vector<8x128xf32>
    %126 = arith.subf %122, %125 : vector<8x128xf32>
    %127 = math.exp %126 : vector<8x128xf32>
    %cst_63 = arith.constant dense<0.000000e+00> : vector<8xf32>
    %128 = vector.multi_reduction <add>, %127, %cst_63 [1] : vector<8x128xf32> to vector<8xf32>
    %129 = vector.shape_cast %128 : vector<8xf32> to vector<8x1xf32>
    %130 = tpu.reciprocal %129 : vector<8x1xf32> -> vector<8x1xf32>
    %131 = vector.broadcast %130 : vector<8x1xf32> to vector<8x128xf32>
    %132 = arith.mulf %127, %131 : vector<8x128xf32>
    %c0_64 = arith.constant 0 : index
    %c384 = arith.constant 384 : index
    %133 = vector.load %arg18[%c0_64, %c384] : memref<8x512xf32, #tpu.memory_space<vmem>>, vector<8x128xf32>
    tpu.vector_store %arg18[%c0_64, %c384], %132 {strides = array<i32>} : memref<8x512xf32, #tpu.memory_space<vmem>>, vector<8x128xf32>,
    return
  }
  func.func @transform_0(%arg0: i32) -> (i32, i32) {
    %c0_i32 = arith.constant 0 : i32
    %c0_i32_0 = arith.constant 0 : i32
    return %arg0, %c0_i32 : i32, i32
  }
  func.func @transform_1(%arg0: i32) -> (i32, i32) {
    %c0_i32 = arith.constant 0 : i32
    %c0_i32_0 = arith.constant 0 : i32
    %c0_i32_1 = arith.constant 0 : i32
    return %c0_i32, %c0_i32_0 : i32, i32
  }
  func.func @transform_2(%arg0: i32) -> (i32, i32) {
    %c0_i32 = arith.constant 0 : i32
    %c0_i32_0 = arith.constant 0 : i32
    %c0_i32_1 = arith.constant 0 : i32
    return %c0_i32, %c0_i32_0 : i32, i32
  }
  func.func @transform_3(%arg0: i32) -> (i32, i32) {
    %c0_i32 = arith.constant 0 : i32
    %c0_i32_0 = arith.constant 0 : i32
    %c0_i32_1 = arith.constant 0 : i32
    return %c0_i32, %c0_i32_0 : i32, i32
  }
  func.func @transform_4(%arg0: i32) -> (i32, i32) {
    %c0_i32 = arith.constant 0 : i32
    %c0_i32_0 = arith.constant 0 : i32
    %c0_i32_1 = arith.constant 0 : i32
    return %c0_i32, %c0_i32_0 : i32, i32
  }
  func.func @transform_5(%arg0: i32) -> (i32, i32) {
    %c0_i32 = arith.constant 0 : i32
    %c0_i32_0 = arith.constant 0 : i32
    %c0_i32_1 = arith.constant 0 : i32
    return %c0_i32, %c0_i32_0 : i32, i32
  }
  func.func @transform_6(%arg0: i32) -> (i32, i32) {
    %c0_i32 = arith.constant 0 : i32
    %c0_i32_0 = arith.constant 0 : i32
    %c0_i32_1 = arith.constant 0 : i32
    return %c0_i32, %c0_i32_0 : i32, i32
  }
  func.func @transform_7(%arg0: i32) -> (i32, i32) {
    %c0_i32 = arith.constant 0 : i32
    %c0_i32_0 = arith.constant 0 : i32
    %c0_i32_1 = arith.constant 0 : i32
    return %c0_i32, %c0_i32_0 : i32, i32
  }
  func.func @transform_8(%arg0: i32) -> (i32, i32) {
    %c0_i32 = arith.constant 0 : i32
    %c0_i32_0 = arith.constant 0 : i32
    %c0_i32_1 = arith.constant 0 : i32
    return %c0_i32, %c0_i32_0 : i32, i32
  }
  func.func @transform_9(%arg0: i32) -> (i32, i32) {
    %c0_i32 = arith.constant 0 : i32
    %c0_i32_0 = arith.constant 0 : i32
    %c0_i32_1 = arith.constant 0 : i32
    return %c0_i32, %c0_i32_0 : i32, i32
  }
  func.func @transform_10(%arg0: i32) -> (i32, i32) {
    %c0_i32 = arith.constant 0 : i32
    %c0_i32_0 = arith.constant 0 : i32
    %c0_i32_1 = arith.constant 0 : i32
    return %c0_i32, %c0_i32_0 : i32, i32
  }
  func.func @transform_11(%arg0: i32) -> (i32, i32) {
    %c0_i32 = arith.constant 0 : i32
    %c0_i32_0 = arith.constant 0 : i32
    %c0_i32_1 = arith.constant 0 : i32
    return %c0_i32, %c0_i32_0 : i32, i32
  }
  func.func @transform_12(%arg0: i32) -> (i32, i32) {
    %c0_i32 = arith.constant 0 : i32
    %c0_i32_0 = arith.constant 0 : i32
    %c0_i32_1 = arith.constant 0 : i32
    return %c0_i32, %c0_i32_0 : i32, i32
  }
  func.func @transform_13(%arg0: i32) -> (i32, i32) {
    %c0_i32 = arith.constant 0 : i32
    %c0_i32_0 = arith.constant 0 : i32
    %c0_i32_1 = arith.constant 0 : i32
    return %c0_i32, %c0_i32_0 : i32, i32
  }
  func.func @transform_14(%arg0: i32) -> (i32, i32) {
    %c0_i32 = arith.constant 0 : i32
    %c0_i32_0 = arith.constant 0 : i32
    %c0_i32_1 = arith.constant 0 : i32
    return %c0_i32, %c0_i32_0 : i32, i32
  }
  func.func @transform_15(%arg0: i32) -> (i32, i32) {
    %c0_i32 = arith.constant 0 : i32
    %c0_i32_0 = arith.constant 0 : i32
    %c0_i32_1 = arith.constant 0 : i32
    return %c0_i32, %c0_i32_0 : i32, i32
  }
  func.func @transform_16(%arg0: i32) -> (i32, i32) {
    %c0_i32 = arith.constant 0 : i32
    %c0_i32_0 = arith.constant 0 : i32
    %c0_i32_1 = arith.constant 0 : i32
    return %c0_i32, %c0_i32_0 : i32, i32
  }
  func.func @transform_17(%arg0: i32) -> (i32, i32) {
    %c0_i32 = arith.constant 0 : i32
    %c0_i32_0 = arith.constant 0 : i32
    return %arg0, %c0_i32 : i32, i32
  }
}

</mosaic_0001>

<bundles_post_ra>
// kernel: tpu_custom_call.1
= control target key start
LH: loop header
LB: loop body
LE: loop exit
PB: predicated region body
PF: predicated region fallthrough
CT: control target
= control target key end

     0   :  { %s11391_s0 = inlined_call_operand.hbm [shape: f32[16,16], index: 0, kind: input, shape index: {}]   ;;  %s11392_s1 = inlined_call_operand.hbm [shape: bf16[16,512], index: 1, kind: input, shape index: {}]   ;;  %s11393_s2 = inlined_call_operand.hbm [shape: f32[1,512], index: 2, kind: input, shape index: {}]   ;;  %s11394_s3 = inlined_call_operand.hbm [shape: bf16[512,512], index: 3, kind: input, shape index: {}]   ;;  %s11395_s4 = inlined_call_operand.vmem [shape: f32[1,512], index: 4, kind: input, shape index: {}]   ;;  %s11396_s5 = inlined_call_operand.hbm [shape: bf16[512,512], index: 5, kind: input, shape index: {}]   ;;  %s11397_s6 = inlined_call_operand.vmem [shape: f32[1,512], index: 6, kind: input, shape index: {}]   ;;  %s11398_s7 = inlined_call_operand.hbm [shape: bf16[512,512], index: 7, kind: input, shape index: {}]   ;;  %s11399_s8 = inlined_call_operand.hbm [shape: f32[1,512], index: 8, kind: input, shape index: {}]   ;;  %s11400_s9 = inlined_call_operand.hbm [shape: bf16[512,512], index: 9, kind: input, shape index: {}]   ;;  %s11401_s10 = inlined_call_operand.hbm [shape: f32[1,512], index: 10, kind: input, shape index: {}]   ;;  %s11402_s11 = inlined_call_operand.hbm [shape: bf16[512,1024], index: 11, kind: input, shape index: {}]   ;;  %s11403_s12 = inlined_call_operand.vmem [shape: f32[1,1024], index: 12, kind: input, shape index: {}]   ;;  %s11404_s13 = inlined_call_operand.hbm [shape: bf16[512,128], index: 13, kind: input, shape index: {}]   ;;  %s11405_s14 = inlined_call_operand.vmem [shape: f32[1,128], index: 14, kind: input, shape index: {}]   ;;  %s11406_s15 = inlined_call_operand.hbm [shape: bf16[512,512], index: 15, kind: input, shape index: {}]   ;;  %s11407_s16 = inlined_call_operand.vmem [shape: f32[1,512], index: 16, kind: input, shape index: {}]   ;;  %s11408_s17 = inlined_call_operand.hbm [shape: f32[16,512], index: 17, kind: output, shape index: {}]  }
   0x1   :  { %11419 = sst [smem:[#allocation31_spill]] %s11391_s0 }
   0x2   :  { %11420 = sst [smem:[#allocation32_spill]] %s11392_s1 }
   0x3   :  { %11421 = sst [smem:[#allocation33_spill]] %s11393_s2 }
   0x4   :  { %11422 = sst [smem:[#allocation34_spill]] %s11394_s3 }
   0x5   :  { %11423 = sst [smem:[#allocation35_spill]] %s11396_s5 }
   0x6   :  { %11424 = sst [smem:[#allocation36_spill]] %s11398_s7 }
   0x7   :  { %11425 = sst [smem:[#allocation37_spill]] %s11399_s8 }
   0x8   :  { %11426 = sst [smem:[#allocation38_spill]] %s11400_s9 }
   0x9   :  { %11427 = sst [smem:[#allocation39_spill]] %s11401_s10 }
   0xa   :  { %11428 = sst [smem:[#allocation40_spill]] %s11402_s11 }
   0xb   :  { %11429 = sst [smem:[#allocation41_spill]] %s11405_s14 }
   0xc   :  { %11430 = sst [smem:[#allocation42_spill]] %s11407_s16 }
   0xd   :  { %11431 = sst [smem:[#allocation43_spill]] %s11408_s17 }
   0xe   :  { %22 = vsyncpa [#allocation3], 0 }
   0xf   :  { %24 = vsyncpa [#allocation3 + $0x1], 0 }
  0x10   :  { %25 = vsyncpa [#allocation6], 0 }
  0x11   :  { %26 = vsyncpa [#allocation9], 0 }
  0x12   :  { %27 = vsyncpa [#allocation12], 0 }
  0x13   :  { %28 = vsyncpa [#allocation15], 0 }
  0x14   :  { %29 = vsyncpa [#allocation18], 0 }
  0x15   :  { %30 = vsyncpa [#allocation21], 0 }
  0x16   :  { %31 = vsyncpa [#allocation4], 0 }
  0x17   :  { %33 = vsyncpa [#allocation4 + $0x1], 0  ;;  %s10882_s24 = smov 0   ;;  %s10884_s25 = smov 0  }
  0x18   :  { %s10886_s26 = smov 0   ;;  %s10888_s27 = smov 0  }
  0x19 LB: > { %s10772_s28 = smov [#allocation5]   ;;  %s10903_s0 = sadd.s32 4294967295, %s10770_s27   ;;  %s10770_s27 = sphi %s10888_s27, %s11475_s27   ;;  %s10766_s26 = sphi %s10886_s26, %s11474_s26   ;;  %s10762_s25 = sphi %s10884_s25, %s11473_s25   ;;  %s10758_s24 = sphi %s10882_s24, %s11472_s24  }
  0x1a   : > { %s444_s29 = sshll.u32 %s10772_s28, 4  ;;  %p8176_p0 = scmp.ge.s32.totalorder %s10770_s27, 1  ;;  %s445_s29 = int_to_ptr.vmem [resolvable:$true] %s444_s29 }
  0x1b   : > { %p11415_p1 = scmp.eq.s32.totalorder %s10903_s0, 0  ;;  %p432_p2 = scmp.lt.s32.totalorder %s10770_s27, 3 }
  0x1c   : > { %s10773_s18 = smov [#allocation8]   ;;  %s10774_s20 = smov [#allocation11]  }
  0x1d   : > { %p10908_p3 = pnand %p8176_p0, %p432_p2  ;;  %s468_s19 = sshll.u32 %s10773_s18, 4  ;;  %s10921_s19 = int_to_ptr.vmem [resolvable:$true] %s468_s19 }
  0x1e   : > { %s500_s21 = sshll.u32 %s10774_s20, 4  ;;  %s10379_s23 = scalar_lea.vmem %s445_s29, 512  ;;  %s10923_s21 = int_to_ptr.vmem [resolvable:$true] %s500_s21 }
  0x1f   : > { %s11432_s30 = scalar_select %p10908_p3, 1, 0 }
  0x20   : > { %p9238_p5 = pneg %p10908_p3  ;;  %p10380_p8 = scmp.ne.s32.totalorder %s445_s29, %s10379_s23 }
  0x21   : > { %p10387_p11 = scmp.lt.s32.totalorder %s445_s29, %s445_s29  ;;  %p10388_p12 = scmp.lt.s32.totalorder %s10379_s23, %s10379_s23 }
  0x22   : > { %p10917_p6 = pnand %p9238_p5, %p11415_p1 }
  0x23   : > { %p10389_p13 = por %p10388_p12, %p10387_p11 }
  0x24   : > { %p10927_p7 = pneg %p10917_p6 }
  0x26   : > { %p10382_p9 = pnand %p10380_p8, %p10927_p7 }
  0x28   : > { %p10383_p10 = pneg %p10382_p9 }
  0x2a   : > { %p10390_p0 = pnand %p10389_p13, %p10383_p10 }
  0x2c   : > { %10393 = shalt.err (!%p10390_p0)
}
  0x2d   : > { %s11411_s28 = smov 256   ;;  %s11413_s18 = smov 16  }
  0x2e   : > { %s11435_s16 = sld [smem:[#allocation32_spill]]  ;;  %s10405_s14 = scalar_lea.vmem %s10921_s19, 16384 }
  0x2f   : > { %p10406_p2 = scmp.ne.s32.totalorder %s10921_s19, %s10405_s14  ;;  %p10413_p9 = scmp.lt.s32.totalorder %s10921_s19, %s10921_s19 }
  0x30   : > { %p10414_p10 = scmp.lt.s32.totalorder %s10405_s14, %s10405_s14 }
  0x31   : > { %p10408_p5 = pnand %p10406_p2, %p10927_p7 }
  0x32   : > { %p10415_p11 = por %p10414_p10, %p10413_p9 }
  0x33   : > { %p10409_p8 = pneg %p10408_p5 }
  0x34   : > { %9241 = dma.hbm_to_vmem [thread:$0]  (!%p10917_p6), %s11435_s16, 512, %s445_s29, [#allocation6], %s11411_s28, %s11411_s28, %s11413_s18  }
  0x35   : > { %p10416_p12 = pnand %p10415_p11, %p10409_p8 }
  0x37   : > { %10419 = shalt.err (!%p10416_p12)
}
  0x38   : > { %s11436_s3 = sld [smem:[#allocation34_spill]]  ;;  %s10431_s16 = scalar_lea.vmem %s10923_s21, 16384 }
  0x39   : > { %p10432_p13 = scmp.ne.s32.totalorder %s10923_s21, %s10431_s16  ;;  %p10439_p5 = scmp.lt.s32.totalorder %s10923_s21, %s10923_s21 }
  0x3a   : > { %p10440_p8 = scmp.lt.s32.totalorder %s10431_s16, %s10431_s16 }
  0x3b   : > { %p10434_p0 = pnand %p10432_p13, %p10927_p7 }
  0x3c   : > { %p10441_p9 = por %p10440_p8, %p10439_p5 }
  0x3d   : > { %p10435_p2 = pneg %p10434_p0 }
  0x3e   : > { %9247 = dma.hbm_to_vmem [thread:$0]  (!%p10917_p6), %s11436_s3, 16384, %s10921_s19, [#allocation9], %s11411_s28, %s11411_s28, %s11413_s18  }
  0x3f   : > { %p10442_p10 = pnand %p10441_p9, %p10435_p2 }
  0x41   : > { %10445 = shalt.err (!%p10442_p10)
}
  0x42   : > { %s11437_s7 = sld [smem:[#allocation36_spill]]  ;;  %s10777_s19 = smov [#allocation14]  }
  0x43   : > { %s524_s20 = sshll.u32 %s10777_s19, 4  ;;  %s10778_s23 = smov [#allocation17]   ;;  %s525_s20 = int_to_ptr.vmem [resolvable:$true] %s524_s20 }
  0x44   : > { %s548_s17 = sshll.u32 %s10778_s23, 4  ;;  %s10457_s16 = scalar_lea.vmem %s525_s20, 16384  ;;  %s549_s17 = int_to_ptr.vmem [resolvable:$true] %s548_s17 }
  0x45   : > { %p10458_p11 = scmp.ne.s32.totalorder %s525_s20, %s10457_s16  ;;  %p10465_p0 = scmp.lt.s32.totalorder %s525_s20, %s525_s20 }
  0x46   : > { %p10466_p2 = scmp.lt.s32.totalorder %s10457_s16, %s10457_s16 }
  0x47   : > { %p10460_p12 = pnand %p10458_p11, %p10927_p7 }
  0x48   : > { %9253 = dma.hbm_to_vmem [thread:$0]  (!%p10917_p6), %s11437_s7, 16384, %s10923_s21, [#allocation12], %s11411_s28, %s11411_s28, %s11413_s18  }
  0x49   : > { %p10461_p13 = pneg %p10460_p12  ;;  %p10467_p5 = por %p10466_p2, %p10465_p0 }
  0x4b   : > { %p10468_p8 = pnand %p10467_p5, %p10461_p13 }
  0x4d   : > { %10471 = shalt.err (!%p10468_p8)
}
  0x4e   : > { %s11438_s9 = sld [smem:[#allocation38_spill]]  ;;  %s10483_s29 = scalar_lea.vmem %s549_s17, 32768 }
  0x4f   : > { %p10484_p9 = scmp.ne.s32.totalorder %s549_s17, %s10483_s29  ;;  %p10491_p12 = scmp.lt.s32.totalorder %s549_s17, %s549_s17 }
  0x50   : > { %p10492_p0 = scmp.lt.s32.totalorder %s10483_s29, %s10483_s29 }
  0x51   : > { %p10486_p10 = pnand %p10484_p9, %p10927_p7 }
  0x52   : > { %p10493_p13 = por %p10492_p0, %p10491_p12 }
  0x53   : > { %p10487_p11 = pneg %p10486_p10 }
  0x54   : > { %9259 = dma.hbm_to_vmem [thread:$0]  (!%p10917_p6), %s11438_s9, 16384, %s525_s20, [#allocation15], %s11411_s28, %s11411_s28, %s11413_s18  }
  0x55   : > { %p10494_p2 = pnand %p10493_p13, %p10487_p11 }
  0x57   : > { %10497 = shalt.err (!%p10494_p2)
}
  0x58   : > { %s10779_s19 = smov 512   ;;  %s10780_s23 = smov 32  }
  0x59   : > { %s11439_s11 = sld [smem:[#allocation40_spill]]  ;;  %s10781_s20 = smov [#allocation7]  }
  0x5a   : > { %s458_s14 = sshll.u32 %s10781_s20, 4  ;;  %s10782_s28 = smov [#allocation10]   ;;  %s459_s14 = int_to_ptr.vmem [resolvable:$true] %s458_s14 }
  0x5b   : > { %s484_s18 = sshll.u32 %s10782_s28, 4  ;;  %s10509_s3 = scalar_lea.vmem %s459_s14, 64  ;;  %s485_s18 = int_to_ptr.vmem [resolvable:$true] %s484_s18 }
  0x5c   : > { %p10510_p5 = scmp.ne.s32.totalorder %s459_s14, %s10509_s3  ;;  %p10517_p10 = scmp.lt.s32.totalorder %s459_s14, %s459_s14 }
  0x5d   : > { %p10518_p11 = scmp.lt.s32.totalorder %s10509_s3, %s10509_s3 }
  0x5e   : > { %p10512_p8 = pnand %p10510_p5, %p10927_p7 }
  0x5f   : > { %9265 = dma.hbm_to_vmem [thread:$0]  (!%p10917_p6), %s11439_s11, 32768, %s549_s17, [#allocation18], %s10779_s19, %s10779_s19, %s10780_s23  }
  0x60   : > { %p10513_p9 = pneg %p10512_p8  ;;  %p10519_p12 = por %p10518_p11, %p10517_p10 }
  0x62   : > { %p10520_p0 = pnand %p10519_p12, %p10513_p9 }
  0x64   : > { %10523 = shalt.err (!%p10520_p0)
}
  0x65   : > { %s11440_s2 = sld [smem:[#allocation33_spill]]  ;;  %s10535_s17 = scalar_lea.vmem %s485_s18, 16384 }
  0x66   : > { %p10536_p13 = scmp.ne.s32.totalorder %s485_s18, %s10535_s17  ;;  %p10543_p5 = scmp.lt.s32.totalorder %s485_s18, %s485_s18 }
  0x67   : > { %p10544_p8 = scmp.lt.s32.totalorder %s10535_s17, %s10535_s17 }
  0x68   : > { %p10538_p2 = pnand %p10536_p13, %p10927_p7 }
  0x69   : > { %p10545_p1 = por %p10544_p8, %p10543_p5 }
  0x6a   : > { %p10539_p4 = pneg %p10538_p2 }
  0x6b   : > { %9244 = dma.hbm_to_vmem [thread:$0]  (!%p10917_p6), %s11440_s2, 64, %s459_s14, [#allocation6]  }
  0x6c   : > { %p10546_p3 = pnand %p10545_p1, %p10539_p4 }
  0x6e   : > { %10549 = shalt.err (!%p10546_p3)
}
  0x6f   : > { %s11441_s3 = smov 16   ;;  %s11442_s28 = smov 256  }
  0x70   : > { %s11443_s5 = sld [smem:[#allocation35_spill]]  ;;  %s10783_s21 = smov [#allocation13]  }
  0x71   : > { %s514_s20 = sshll.u32 %s10783_s21, 4  ;;  %s10784_s14 = smov [#allocation16]   ;;  %s515_s20 = int_to_ptr.vmem [resolvable:$true] %s514_s20 }
  0x72   : > { %s538_s29 = sshll.u32 %s10784_s14, 4  ;;  %s10561_s16 = scalar_lea.vmem %s515_s20, 64  ;;  %s539_s29 = int_to_ptr.vmem [resolvable:$true] %s538_s29 }
  0x73   : > { %p10562_p9 = scmp.ne.s32.totalorder %s515_s20, %s10561_s16  ;;  %p10569_p4 = scmp.lt.s32.totalorder %s515_s20, %s515_s20 }
  0x74   : > { %p10570_p10 = scmp.lt.s32.totalorder %s10561_s16, %s10561_s16 }
  0x75   : > { %p10564_p1 = pnand %p10562_p9, %p10927_p7 }
  0x76   : > { %9250 = dma.hbm_to_vmem [thread:$0]  (!%p10917_p6), %s11443_s5, 16384, %s485_s18, [#allocation9], %s11442_s28, %s11442_s28, %s11441_s3  }
  0x77   : > { %p10565_p3 = pneg %p10564_p1  ;;  %p10571_p11 = por %p10570_p10, %p10569_p4 }
  0x79   : > { %p10572_p12 = pnand %p10571_p11, %p10565_p3 }
  0x7b   : > { %10575 = shalt.err (!%p10572_p12)
}
  0x7c   : > { %s11444_s8 = sld [smem:[#allocation37_spill]]  ;;  %s10587_s18 = scalar_lea.vmem %s539_s29, 64 }
  0x7d   : > { %p10588_p0 = scmp.ne.s32.totalorder %s539_s29, %s10587_s18  ;;  %p10595_p5 = scmp.lt.s32.totalorder %s539_s29, %s539_s29 }
  0x7e   : > { %p10596_p8 = scmp.lt.s32.totalorder %s10587_s18, %s10587_s18 }
  0x7f   : > { %p10590_p13 = pnand %p10588_p0, %p10927_p7 }
  0x80   : > { %p10597_p9 = por %p10596_p8, %p10595_p5 }
  0x81   : > { %p10591_p2 = pneg %p10590_p13 }
  0x82   : > { %9256 = dma.hbm_to_vmem [thread:$0]  (!%p10917_p6), %s11444_s8, 64, %s515_s20, [#allocation12]  }
  0x83   : > { %p10598_p1 = pnand %p10597_p9, %p10591_p2 }
  0x85   : > { %10601 = shalt.err (!%p10598_p1)
}
  0x86   : > { %s11445_s10 = sld [smem:[#allocation39_spill]]  ;;  %s10785_s14 = smov [#allocation19]  }
  0x87   : > { %s564_s20 = sshll.u32 %s10785_s14, 4  ;;  %s565_s20 = int_to_ptr.vmem [resolvable:$true] %s564_s20 }
  0x88   : > { %s10613_s16 = scalar_lea.vmem %s565_s20, 4096  ;;  %p10621_p11 = scmp.lt.s32.totalorder %s565_s20, %s565_s20 }
  0x89   : > { %p10614_p3 = scmp.ne.s32.totalorder %s565_s20, %s10613_s16  ;;  %p10622_p12 = scmp.lt.s32.totalorder %s10613_s16, %s10613_s16 }
  0x8b   : > { %p10616_p4 = pnand %p10614_p3, %p10927_p7  ;;  %p10623_p0 = por %p10622_p12, %p10621_p11 }
  0x8c   : > { %9262 = dma.hbm_to_vmem [thread:$0]  (!%p10917_p6), %s11445_s10, 64, %s539_s29, [#allocation15]  }
  0x8d   : > { %p10617_p10 = pneg %p10616_p4 }
  0x8f   : > { %p10624_p13 = pnand %p10623_p0, %p10617_p10 }
  0x91   : > { %10627 = shalt.err (!%p10624_p13)
}
  0x92   : > { %s10786_s17 = smov 64   ;;  %s10787_s19 = smov 4  }
  0x93   : > { %9268 = dma.hbm_to_vmem [thread:$0]  (!%p10917_p6), %s11404_s13, 4096, %s565_s20, [#allocation18], %s10786_s17, %s10786_s17, %s10787_s19  }
  0x94   : > { %s10788_s23 = smov [#allocation20]  }
  0x95   : > { %s580_s21 = sshll.u32 %s10788_s23, 4  ;;  %s581_s21 = int_to_ptr.vmem [resolvable:$true] %s580_s21 }
  0x96   : > { %s10639_s14 = scalar_lea.vmem %s581_s21, 16384  ;;  %p10647_p9 = scmp.lt.s32.totalorder %s581_s21, %s581_s21 }
  0x97   : > { %p10640_p2 = scmp.ne.s32.totalorder %s581_s21, %s10639_s14  ;;  %p10648_p1 = scmp.lt.s32.totalorder %s10639_s14, %s10639_s14 }
  0x99   : > { %p10642_p5 = pnand %p10640_p2, %p10927_p7  ;;  %p10649_p3 = por %p10648_p1, %p10647_p9 }
  0x9b   : > { %p10643_p8 = pneg %p10642_p5 }
  0x9d   : > { %p10650_p4 = pnand %p10649_p3, %p10643_p8 }
  0x9f   : > { %10653 = shalt.err (!%p10650_p4)
}
  0xa0   : > { %9271 = dma.hbm_to_vmem [thread:$0]  (!%p10917_p6), %s11406_s15, 16384, %s581_s21, [#allocation21], %s11442_s28, %s11442_s28, %s11441_s3  }
  0xa1   : > { %s8175_s1 = sadd.s32 4294967294, %s10770_s27   ;;  %s11038_s22 = sadd.s32 1, %s10770_s27  }
  0xa2   : > { %s46_s17 = sadd.s32 1, %s10766_s26  ;;  %s43_s19 = ssub.s32 %s10770_s27, %s11038_s22 }
  0xa3   : > { %p53_p7 = scmp.ne.s32.totalorder %s10766_s26, %s10762_s25  ;;  %p44_p10 = scmp.eq.s32.totalorder %s43_s19, 0 }
  0xa4   : > { %p54_p11 = scmp.eq.s32.totalorder %s10770_s27, 0  ;;  %p59_p12 = scmp.ne.s32.totalorder %s10762_s25, %s10758_s24 }
  0xa5   : > { %p419_p0 = scmp.eq.s32.totalorder %s10903_s0, 1  ;;  %p11446_p2 = scmp.eq.s32.totalorder %s10903_s0, 0 }
  0xa6   : > { %s11050_s18 = scalar_select %p44_p10, %s10766_s26, %s46_s17  }
  0xa7   : > { %p55_p13 = por %p54_p11, %p53_p7  ;;  %p11054_p5 = por %p11446_p2, %p59_p12 }
  0xa8   : > { %p11058_p6 = por %p419_p0, %p53_p7  ;;  %p425_p8 = scmp.eq.s32.totalorder %s8175_s1, 1 }
  0xa9   : > { %s11447_s29 = scalar_select %p11054_p5, 1, 0 }
  0xaa   : > { %s11448_s3 = scalar_select %p11058_p6, 1, 0 }
  0xab   : > { %p9291_p9 = scmp.lt.s32.totalorder %s10770_s27, 2  ;;  %s597_s28 = sand.u32 1, %s10766_s26  }
  0xac   : > { %p11064_p1 = por %p425_p8, %p59_p12  ;;  %s8189_s21 = sshll.u32 %s597_s28, 3 }
  0xad   : > { %s8190_s14 = sshll.u32 %s10770_s27, 7  ;;  %s11450_s17 = sld [smem:[#allocation31_spill]] }
  0xae   : > { %s11449_s23 = scalar_select %p11064_p1, 1, 0 }
  0xaf   : > { %s601_s2 = scalar_lea.vmem [#allocation2], %s8189_s21  ;;  %p11074_p3 = pnand %p9291_p9, %p55_p13 }
  0xb0   : > { %s608_s5 = sshll.u32 %s601_s2, 4  ;;  %s598_s7 = scalar_lea.sflag [#allocation3], %s597_s28  ;;  %s609_s5 = int_to_ptr.vmem [resolvable:$true] %s608_s5 }
  0xb1   : > { %p10656_p7 = pneg %p11074_p3 }
  0xb3   : > { %s11072_s19 = scalar_lea.hbm %s11450_s17, %s8190_s14  ;;  %s10659_s20 = scalar_lea.hbm %s11450_s17, 256 }
  0xb4   : > { %s10654_s8 = scalar_lea.hbm %s11072_s19, 128  ;;  %p10660_p12 = scmp.lt.s32.totalorder %s11072_s19, %s11450_s17 }
  0xb5   : > { %p10655_p4 = scmp.ne.s32.totalorder %s11072_s19, %s10654_s8  ;;  %p10661_p0 = scmp.lt.s32.totalorder %s10659_s20, %s10654_s8 }
  0xb7   : > { %p10657_p10 = pnand %p10656_p7, %p10655_p4  ;;  %p10662_p13 = por %p10661_p0, %p10660_p12 }
  0xb9   : > { %p10658_p11 = pneg %p10657_p10 }
  0xbb   : > { %p10663_p2 = pnand %p10662_p13, %p10658_p11 }
  0xbd   : > { %10666 = shalt.err (!%p10663_p2)
}
  0xbe   : > { %s10667_s2 = scalar_lea.vmem %s609_s5, 128  ;;  %s10789_s28 = smov [#allocation2]  }
  0xbf   : > { %p10668_p8 = scmp.ne.s32.totalorder %s609_s5, %s10667_s2  ;;  %s10672_s10 = sshll.u32 %s10789_s28, 4  ;;  %s10673_s10 = int_to_ptr.vmem [resolvable:$false] %s10672_s10 }
  0xc0   : > { %s10674_s11 = scalar_lea.vmem %s10673_s10, 256  ;;  %p10675_p4 = scmp.lt.s32.totalorder %s609_s5, %s10673_s10 }
  0xc1   : > { %p10670_p9 = pnand %p10668_p8, %p10656_p7  ;;  %p10676_p10 = scmp.lt.s32.totalorder %s10674_s11, %s10667_s2 }
  0xc3   : > { %p10671_p1 = pneg %p10670_p9  ;;  %p10677_p6 = por %p10676_p10, %p10675_p4 }
  0xc5   : > { %p10678_p5 = pnand %p10677_p6, %p10671_p1 }
  0xc7   : > { %10681 = shalt.err (!%p10678_p5)
}
  0xc8   : > { %9275 = dma.hbm_to_vmem [thread:$0]  (!%p11074_p3), %s11072_s19, 128, %s609_s5, %s598_s7  }
  0xc9   : > { %p11452_p11 = scmp.ne.s32.totalorder %s11432_s30, 0 }
  0xca   : > { %s11095_s8 = sand.u32 (!%p11452_p11), 1, %s10762_s25   ;;  %p11453_p7 = scmp.ne.s32.totalorder (!%p11452_p11), %s11447_s29, 0 }
  0xcb   : > { %617 = sbr.rel (%p11452_p11) target bundleno = 2497 (0x9c1), region = 88  ;;  %s8192_s9 = sshll.u32 (!%p11452_p11), %s11095_s8, 3 }
  0xcc   : > { %s620_s14 = scalar_lea.sflag (!%p11452_p11), [#allocation3], %s11095_s8  ;;  %s623_s10 = scalar_lea.vmem (!%p11452_p11), [#allocation2], %s8192_s9 }
  0xd0   : > { %10725 = dma.done.wait (%p11453_p7), %s620_s14, 128  }
  0xd1   : > { %10727 = vsyncadd (%p11453_p7), %s620_s14, 4294967168  ;;  %p11454_p5 = scmp.eq.s32.totalorder %s10903_s0, 0 }
  0xd3   : > { %10729 = dma.done.wait (%p11454_p5), [#allocation6], 576   ;;  %p11455_p6 = pmov %p11454_p5 }
  0xd4   : > { %p11456_p1 = pmov %p11454_p5 }
  0xd5   : > { %10731 = vsyncadd (%p11455_p6), [#allocation6], 4294966720 }
  0xd6   : > { %10733 = dma.done.wait (%p11456_p1), [#allocation9], 32768   ;;  %p11457_p3 = pmov %p11456_p1 }
  0xd7   : > { %p11458_p12 = pmov %p11456_p1 }
  0xd8   : > { %10735 = vsyncadd (%p11457_p3), [#allocation9], 4294934528 }
  0xd9   : > { %10737 = dma.done.wait (%p11458_p12), [#allocation12], 16448   ;;  %p11459_p0 = pmov %p11456_p1 }
  0xdb   : > { %10739 = vsyncadd (%p11459_p0), [#allocation12], 4294950848  ;;  %p11460_p13 = pmov %p11459_p0 }
  0xdc   : > { %p11461_p2 = pmov %p11459_p0 }
  0xdd   : > { %10741 = dma.done.wait (%p11460_p13), [#allocation15], 16448  }
  0xde   : > { %10743 = vsyncadd (%p11461_p2), [#allocation15], 4294950848  ;;  %p11462_p8 = pmov %p11459_p0 }
  0xdf   : > { %p11463_p9 = pmov %p11459_p0 }
  0xe0   : > { %10745 = dma.done.wait (%p11462_p8), [#allocation18], 36864  }
  0xe1   : > { %10747 = vsyncadd (%p11463_p9), [#allocation18], 4294930432  ;;  %p11464_p4 = pmov %p11459_p0 }
  0xe2   : > { %p11465_p10 = pmov %p11459_p0 }
  0xe3   : > { %10749 = dma.done.wait (%p11464_p4), [#allocation21], 16384  }
  0xe4   : > { %10751 = vsyncadd (%p11465_p10), [#allocation21], 4294950912  ;;  %v10790_v0 = vmov 0   ;;  %v9354_v1 = vld [vmem:[#allocation5 + $0x4] ss:$16 sps:$4 sm:$0xff]   ;;  %vm767_vm0 = vcmask 130048  }
  0xe5   : > { %803 = vmatprep.mubr.bf16.mxu0 %v10790_v0  ;;  %844 = vmatprep.mubr.bf16.mxu1 %v10790_v0  ;;  %v9356_v2 = vld [vmem:[#allocation5 + $0xc] ss:$16 sps:$4 sm:$0xff]   ;;  %v9358_v3 = vld [vmem:[#allocation5] ss:$16 sps:$4 sm:$0xff]   ;;  %v9359_v4 = vld [vmem:[#allocation5 + $0x8] ss:$16 sps:$4 sm:$0xff]  }
  0xe6   : > { %785 = vmatprep.subr.bf16.mxu0 %v9354_v1  ;;  %v719_v5 = vld [vmem:[%s623_s10] sm:$0xff]  ;;  %826 = vmatprep.subr.bf16.mxu1 %v9356_v2  ;;  %s11466_s20 = sld [smem:[#allocation41_spill]]  ;;  %s8204_s9 = sshll.u32 %s11095_s8, 5 }
  0xe7   : > { %v720_v6 = vpack.c.bf16 %v719_v5, %v719_v5  ;;  %v9360_v7 = vld [vmem:[#allocation8 + $0xe0] ss:$16 sps:$4 sm:$0xff]   ;;  %786 = vmatpush1.bf16.msra.mxu0 %v9358_v3  ;;  %827 = vmatpush1.bf16.msra.mxu1 %v9359_v4  ;;  %v9362_v8 = vld [vmem:[#allocation8 + $0xe4] ss:$16 sps:$4 sm:$0xff]   ;;  %s11467_s28 = sld [smem:[#allocation42_spill]]  ;;  %s717_s14 = scalar_lea.vmem [#allocation22], %s8204_s9 }
  0xe8   : > { %v9363_v9 = vld [vmem:[#allocation8 + $0x2e0] ss:$16 sps:$4 sm:$0xff]   ;;  %v9365_v10 = vld [vmem:[#allocation8 + $0x2e4] ss:$16 sps:$4 sm:$0xff]   ;;  %1651 = vmatprep.subr.bf16.mxu0 %v9362_v8  ;;  %v9461_v8 = vld [vmem:[#allocation8 + $0x2ec] ss:$16 sps:$4 sm:$0xff]  }
  0xe9   : > { %v9368_v11 = vld [vmem:[#allocation8 + $0xc4] ss:$16 sps:$4 sm:$0xff]   ;;  %v9366_v12 = vld [vmem:[#allocation8 + $0xc0] ss:$16 sps:$4 sm:$0xff]   ;;  %1692 = vmatprep.subr.bf16.mxu1 %v9365_v10  ;;  %s9145_s10 = sshll.u32 %s10903_s0, 9  ;;  %s8000_s5 = sshll.u32 %s717_s14, 4  ;;  %s8001_s5 = int_to_ptr.vmem [resolvable:$true] %s8000_s5 }
  0xea   : > { %8209 = vmatmul.mubr.msk.bf16.vlgmr.msra.gmra.mxu0 %vm767_vm0, %v720_v6  ;;  %8210 = vmatmul.mubr.msk.bf16.vlgmr.msra.gmra.mxu1 %vm767_vm0, %v720_v6  ;;  %v9371_v13 = vld [vmem:[#allocation8 + $0x2c4] ss:$16 sps:$4 sm:$0xff]   ;;  %v9369_v14 = vld [vmem:[#allocation8 + $0x2c0] ss:$16 sps:$4 sm:$0xff]   ;;  %s11468_s30 = sld [smem:[#allocation43_spill]]  ;;  %s7986_s19 = scalar_lea.sflag [#allocation4], %s11095_s8 }
  0xeb   : > { %1652 = vmatpush1.bf16.msra.mxu0 %v9360_v7  ;;  %1693 = vmatpush1.bf16.msra.mxu1 %v9363_v9  ;;  %v9374_v15 = vld [vmem:[#allocation8 + $0xa4] ss:$16 sps:$4 sm:$0xff]   ;;  %v9372_v17 = vld [vmem:[#allocation8 + $0xa0] ss:$16 sps:$4 sm:$0xff]   ;;  %v9458_v7 = vld [vmem:[#allocation8 + $0xec] ss:$16 sps:$4 sm:$0xff]   ;;  %v727_v9 = vlaneseq }
  0xec   : > { %1653 = vmatprep.subr.bf16.mxu0 %v9368_v11  ;;  %1694 = vmatprep.subr.bf16.mxu1 %v9371_v13  ;;  %v9377_v16 = vld [vmem:[#allocation8 + $0x2a4] ss:$16 sps:$4 sm:$0xff]   ;;  %v9375_v18 = vld [vmem:[#allocation8 + $0x2a0] ss:$16 sps:$4 sm:$0xff]   ;;  %v725_v11 = vld [vmem:[#allocation7] sm:$0xf] }
  0xed   : > { %v9380_v19 = vld [vmem:[#allocation8 + $0x84] ss:$16 sps:$4 sm:$0xff]   ;;  %v9378_v21 = vld [vmem:[#allocation8 + $0x80] ss:$16 sps:$4 sm:$0xff]   ;;  %v11128_v10 = vshrl.u32 %v727_v9, 7  ;;  %s10682_s1 = scalar_lea.vmem %s8001_s5, 512 }
  0xee   : > { %v9383_v20 = vld [vmem:[#allocation8 + $0x284] ss:$16 sps:$4 sm:$0xff]   ;;  %v9381_v22 = vld [vmem:[#allocation8 + $0x280] ss:$16 sps:$4 sm:$0xff]   ;;  %p10683_p11 = scmp.ne.s32.totalorder %s8001_s5, %s10682_s1  ;;  %p11469_p7 = scmp.ne.s32.totalorder %s11448_s3, 0 }
  0xef   : > { %1654 = vmatpush1.bf16.msra.mxu0 %v9366_v12  ;;  %1695 = vmatpush1.bf16.msra.mxu1 %v9369_v14  ;;  %v9386_v23 = vld [vmem:[#allocation8 + $0x64] ss:$16 sps:$4 sm:$0xff]   ;;  %v9384_v25 = vld [vmem:[#allocation8 + $0x60] ss:$16 sps:$4 sm:$0xff]   ;;  %v11131_v12 = vsub.s32 0, %v11128_v10  ;;  %v11134_v13 = vsub.s32 2, %v11128_v10 }
  0xf0   : > { %1655 = vmatprep.subr.bf16.mxu0 %v9374_v15  ;;  %1696 = vmatprep.subr.bf16.mxu1 %v9377_v16  ;;  %v9389_v24 = vld [vmem:[#allocation8 + $0x264] ss:$16 sps:$4 sm:$0xff]   ;;  %v9387_v26 = vld [vmem:[#allocation8 + $0x260] ss:$16 sps:$4 sm:$0xff]   ;;  %v11137_v14 = vsub.s32 1, %v11128_v10  ;;  %v11140_v15 = vsub.s32 3, %v11128_v10  ;;  %s7998_s29 = scalar_lea.hbm %s11468_s30, %s9145_s10  ;;  %p10684_p5 = pnand %p10683_p11, %p11469_p7 }
  0xf1   : > { %v9392_v27 = vld [vmem:[#allocation8 + $0x44] ss:$16 sps:$4 sm:$0xff]   ;;  %v9390_v29 = vld [vmem:[#allocation8 + $0x40] ss:$16 sps:$4 sm:$0xff]   ;;  %v730_v16 = vrot.slane %v725_v11, %v11131_v12  ;;  %s10791_s16 = smov [#allocation22]  }
  0xf2   : > { %v9395_v28 = vld [vmem:[#allocation8 + $0x244] ss:$16 sps:$4 sm:$0xff]   ;;  %v9393_v30 = vld [vmem:[#allocation8 + $0x240] ss:$16 sps:$4 sm:$0xff]   ;;  %p10685_p6 = pneg %p10684_p5 }
  0xf3   : > { %1656 = vmatpush1.bf16.msra.mxu0 %v9372_v17  ;;  %1697 = vmatpush1.bf16.msra.mxu1 %v9375_v18  ;;  %v9398_v31 = vld [vmem:[#allocation8 + $0x24] ss:$16 sps:$4 sm:$0xff]   ;;  %v9396_v33 = vld [vmem:[#allocation8 + $0x20] ss:$16 sps:$4 sm:$0xff]   ;;  %v738_v17 = vrot.slane %v725_v11, %v11134_v13  ;;  %v734_v18 = vrot.slane %v725_v11, %v11137_v14 }
  0xf4   : > { %1657 = vmatprep.subr.bf16.mxu0 %v9380_v19  ;;  %1698 = vmatprep.subr.bf16.mxu1 %v9383_v20  ;;  %v9401_v32 = vld [vmem:[#allocation8 + $0x224] ss:$16 sps:$4 sm:$0xff]   ;;  %v9399_v34 = vld [vmem:[#allocation8 + $0x220] ss:$16 sps:$4 sm:$0xff]   ;;  %v742_v19 = vrot.slane %v725_v11, %v11140_v15  ;;  %v9507_v11 = vld [vmem:[#allocation8 + $0x3e8] ss:$16 sps:$4 sm:$0xff]  }
  0xf5   : > { %v9404_v35 = vld [vmem:[#allocation8 + $0x4] ss:$16 sps:$4 sm:$0xff]   ;;  %v9402_v37 = vld [vmem:[#allocation8] ss:$16 sps:$4 sm:$0xff]  }
  0xf6   : > { %v9407_v36 = vld [vmem:[#allocation8 + $0x204] ss:$16 sps:$4 sm:$0xff]   ;;  %v9405_v38 = vld [vmem:[#allocation8 + $0x200] ss:$16 sps:$4 sm:$0xff]  }
  0xf7   : > { %1658 = vmatpush1.bf16.msra.mxu0 %v9378_v21  ;;  %1699 = vmatpush1.bf16.msra.mxu1 %v9381_v22  ;;  %v9410_v39 = vld [vmem:[#allocation8 + $0x1e4] ss:$16 sps:$4 sm:$0xff]   ;;  %v9408_v41 = vld [vmem:[#allocation8 + $0x1e0] ss:$16 sps:$4 sm:$0xff]  }
  0xf8   : > { %1659 = vmatprep.subr.bf16.mxu0 %v9386_v23  ;;  %1700 = vmatprep.subr.bf16.mxu1 %v9389_v24  ;;  %v9413_v40 = vld [vmem:[#allocation8 + $0x3e4] ss:$16 sps:$4 sm:$0xff]   ;;  %v9411_v42 = vld [vmem:[#allocation8 + $0x3e0] ss:$16 sps:$4 sm:$0xff]  }
  0xf9   : > { %v9416_v43 = vld [vmem:[#allocation8 + $0x1c4] ss:$16 sps:$4 sm:$0xff]   ;;  %v9414_v44 = vld [vmem:[#allocation8 + $0x1c0] ss:$16 sps:$4 sm:$0xff]  }
  0xfa   : > { %v9419_v45 = vld [vmem:[#allocation8 + $0x3c4] ss:$16 sps:$4 sm:$0xff]   ;;  %v9417_v46 = vld [vmem:[#allocation8 + $0x3c0] ss:$16 sps:$4 sm:$0xff]  }
  0xfb   : > { %1660 = vmatpush1.bf16.msra.mxu0 %v9384_v25  ;;  %1701 = vmatpush1.bf16.msra.mxu1 %v9387_v26  ;;  %v9422_v47 = vld [vmem:[#allocation8 + $0x1a4] ss:$16 sps:$4 sm:$0xff]   ;;  %v9420_v49 = vld [vmem:[#allocation8 + $0x1a0] ss:$16 sps:$4 sm:$0xff]  }
  0xfc   : > { %1661 = vmatprep.subr.bf16.mxu0 %v9392_v27  ;;  %1702 = vmatprep.subr.bf16.mxu1 %v9395_v28  ;;  %v9425_v48 = vld [vmem:[#allocation8 + $0x3a4] ss:$16 sps:$4 sm:$0xff]   ;;  %v9423_v50 = vld [vmem:[#allocation8 + $0x3a0] ss:$16 sps:$4 sm:$0xff]  }
  0xfd   : > { %v9428_v51 = vld [vmem:[#allocation8 + $0x184] ss:$16 sps:$4 sm:$0xff]   ;;  %v9426_v53 = vld [vmem:[#allocation8 + $0x180] ss:$16 sps:$4 sm:$0xff]  }
  0xfe   : > { %v9431_v52 = vld [vmem:[#allocation8 + $0x384] ss:$16 sps:$4 sm:$0xff]   ;;  %v9429_v54 = vld [vmem:[#allocation8 + $0x380] ss:$16 sps:$4 sm:$0xff]  }
  0xff   : > { %1662 = vmatpush1.bf16.msra.mxu0 %v9390_v29  ;;  %1703 = vmatpush1.bf16.msra.mxu1 %v9393_v30  ;;  %v9434_v55 = vld [vmem:[#allocation8 + $0x164] ss:$16 sps:$4 sm:$0xff]   ;;  %v9432_v57 = vld [vmem:[#allocation8 + $0x160] ss:$16 sps:$4 sm:$0xff]  }
 0x100   : > { %1663 = vmatprep.subr.bf16.mxu0 %v9398_v31  ;;  %1704 = vmatprep.subr.bf16.mxu1 %v9401_v32  ;;  %v9437_v56 = vld [vmem:[#allocation8 + $0x364] ss:$16 sps:$4 sm:$0xff]   ;;  %v9435_v58 = vld [vmem:[#allocation8 + $0x360] ss:$16 sps:$4 sm:$0xff]  }
 0x101   : > { %v9440_v59 = vld [vmem:[#allocation8 + $0x144] ss:$16 sps:$4 sm:$0xff]   ;;  %v9438_v61 = vld [vmem:[#allocation8 + $0x140] ss:$16 sps:$4 sm:$0xff]  }
 0x102   : > { %v9443_v60 = vld [vmem:[#allocation8 + $0x344] ss:$16 sps:$4 sm:$0xff]   ;;  %v9441_v62 = vld [vmem:[#allocation8 + $0x340] ss:$16 sps:$4 sm:$0xff]  }
 0x103   : > { %1664 = vmatpush1.bf16.msra.mxu0 %v9396_v33  ;;  %1705 = vmatpush1.bf16.msra.mxu1 %v9399_v34  ;;  %v9446_v63 = vld [vmem:[#allocation8 + $0x124] ss:$16 sps:$4 sm:$0xff]   ;;  %v9444_v1 = vld [vmem:[#allocation8 + $0x120] ss:$16 sps:$4 sm:$0xff]   ;;  %v9456_v34 = vld [vmem:[#allocation8 + $0xe8] ss:$16 sps:$4 sm:$0xff]  }
 0x104   : > { %1665 = vmatprep.subr.bf16.mxu0 %v9404_v35  ;;  %1706 = vmatprep.subr.bf16.mxu1 %v9407_v36  ;;  %v9449_v0 = vld [vmem:[#allocation8 + $0x324] ss:$16 sps:$4 sm:$0xff]   ;;  %v9447_v2 = vld [vmem:[#allocation8 + $0x320] ss:$16 sps:$4 sm:$0xff]   ;;  %v9459_v35 = vld [vmem:[#allocation8 + $0x2e8] ss:$16 sps:$4 sm:$0xff]  }
 0x105   : > { %v9452_v3 = vld [vmem:[#allocation8 + $0x104] ss:$16 sps:$4 sm:$0xff]   ;;  %v9450_v5 = vld [vmem:[#allocation8 + $0x100] ss:$16 sps:$4 sm:$0xff]  }
 0x106   : > { %v9455_v4 = vld [vmem:[#allocation8 + $0x304] ss:$16 sps:$4 sm:$0xff]   ;;  %v9453_v6 = vld [vmem:[#allocation8 + $0x300] ss:$16 sps:$4 sm:$0xff]  }
 0x107   : > { %1666 = vmatpush1.bf16.msra.mxu0 %v9402_v37  ;;  %1707 = vmatpush1.bf16.msra.mxu1 %v9405_v38 }
 0x108   : > { %1667 = vmatprep.subr.bf16.mxu0 %v9410_v39  ;;  %1708 = vmatprep.subr.bf16.mxu1 %v9413_v40 }
 0x10b   : > { %1668 = vmatpush2.bf16.msra.mxu0 %v9408_v41  ;;  %1709 = vmatpush2.bf16.msra.mxu1 %v9411_v42  ;;  %v9464_v41 = vld [vmem:[#allocation8 + $0xcc] ss:$16 sps:$4 sm:$0xff]  }
 0x10c   : > { %1669 = vmatprep.subr.bf16.mxu0 %v9416_v43  ;;  %1710 = vmatprep.subr.bf16.mxu1 %v9419_v45  ;;  %v9467_v42 = vld [vmem:[#allocation8 + $0x2cc] ss:$16 sps:$4 sm:$0xff]   ;;  %v9465_v45 = vld [vmem:[#allocation8 + $0x2c8] ss:$16 sps:$4 sm:$0xff]  }
 0x10f   : > { %1670 = vmatpush2.bf16.msra.mxu0 %v9414_v44  ;;  %1711 = vmatpush2.bf16.msra.mxu1 %v9417_v46  ;;  %v9462_v44 = vld [vmem:[#allocation8 + $0xc8] ss:$16 sps:$4 sm:$0xff]   ;;  %v9470_v46 = vld [vmem:[#allocation8 + $0xac] ss:$16 sps:$4 sm:$0xff]  }
 0x110   : > { %1671 = vmatprep.subr.bf16.mxu0 %v9422_v47  ;;  %1712 = vmatprep.subr.bf16.mxu1 %v9425_v48  ;;  %v9473_v47 = vld [vmem:[#allocation8 + $0x2ac] ss:$16 sps:$4 sm:$0xff]   ;;  %v9468_v48 = vld [vmem:[#allocation8 + $0xa8] ss:$16 sps:$4 sm:$0xff]  }
 0x113   : > { %1672 = vmatpush2.bf16.msra.mxu0 %v9420_v49  ;;  %1713 = vmatpush2.bf16.msra.mxu1 %v9423_v50  ;;  %v9471_v49 = vld [vmem:[#allocation8 + $0x2a8] ss:$16 sps:$4 sm:$0xff]   ;;  %v9476_v50 = vld [vmem:[#allocation8 + $0x8c] ss:$16 sps:$4 sm:$0xff]  }
 0x114   : > { %1673 = vmatprep.subr.bf16.mxu0 %v9428_v51  ;;  %1714 = vmatprep.subr.bf16.mxu1 %v9431_v52  ;;  %v9479_v51 = vld [vmem:[#allocation8 + $0x28c] ss:$16 sps:$4 sm:$0xff]   ;;  %v9474_v52 = vld [vmem:[#allocation8 + $0x88] ss:$16 sps:$4 sm:$0xff]  }
 0x117   : > { %1674 = vmatpush2.bf16.msra.mxu0 %v9426_v53  ;;  %1715 = vmatpush2.bf16.msra.mxu1 %v9429_v54  ;;  %v9477_v53 = vld [vmem:[#allocation8 + $0x288] ss:$16 sps:$4 sm:$0xff]   ;;  %v9482_v54 = vld [vmem:[#allocation8 + $0x6c] ss:$16 sps:$4 sm:$0xff]  }
 0x118   : > { %1675 = vmatprep.subr.bf16.mxu0 %v9434_v55  ;;  %1716 = vmatprep.subr.bf16.mxu1 %v9437_v56  ;;  %v9485_v55 = vld [vmem:[#allocation8 + $0x26c] ss:$16 sps:$4 sm:$0xff]   ;;  %v9480_v56 = vld [vmem:[#allocation8 + $0x68] ss:$16 sps:$4 sm:$0xff]  }
 0x11b   : > { %1676 = vmatpush2.bf16.msra.mxu0 %v9432_v57  ;;  %1717 = vmatpush2.bf16.msra.mxu1 %v9435_v58  ;;  %v9483_v57 = vld [vmem:[#allocation8 + $0x268] ss:$16 sps:$4 sm:$0xff]   ;;  %v9488_v58 = vld [vmem:[#allocation8 + $0x4c] ss:$16 sps:$4 sm:$0xff]  }
 0x11c   : > { %1677 = vmatprep.subr.bf16.mxu0 %v9440_v59  ;;  %1718 = vmatprep.subr.bf16.mxu1 %v9443_v60  ;;  %v9491_v59 = vld [vmem:[#allocation8 + $0x24c] ss:$16 sps:$4 sm:$0xff]   ;;  %v9486_v60 = vld [vmem:[#allocation8 + $0x48] ss:$16 sps:$4 sm:$0xff]  }
 0x11f   : > { %1678 = vmatpush2.bf16.msra.mxu0 %v9438_v61  ;;  %1719 = vmatpush2.bf16.msra.mxu1 %v9441_v62  ;;  %v9489_v61 = vld [vmem:[#allocation8 + $0x248] ss:$16 sps:$4 sm:$0xff]   ;;  %v9494_v62 = vld [vmem:[#allocation8 + $0x2c] ss:$16 sps:$4 sm:$0xff]  }
 0x120   : > { %1679 = vmatprep.subr.bf16.mxu0 %v9446_v63  ;;  %1720 = vmatprep.subr.bf16.mxu1 %v9449_v0  ;;  %v9497_v63 = vld [vmem:[#allocation8 + $0x22c] ss:$16 sps:$4 sm:$0xff]   ;;  %v9492_v0 = vld [vmem:[#allocation8 + $0x28] ss:$16 sps:$4 sm:$0xff]  }
 0x123   : > { %1680 = vmatpush2.bf16.msra.mxu0 %v9444_v1  ;;  %1721 = vmatpush2.bf16.msra.mxu1 %v9447_v2  ;;  %v9495_v1 = vld [vmem:[#allocation8 + $0x228] ss:$16 sps:$4 sm:$0xff]   ;;  %v9500_v2 = vld [vmem:[#allocation8 + $0xc] ss:$16 sps:$4 sm:$0xff]  }
 0x124   : > { %1681 = vmatprep.subr.bf16.mxu0 %v9452_v3  ;;  %1722 = vmatprep.subr.bf16.mxu1 %v9455_v4  ;;  %v9503_v3 = vld [vmem:[#allocation8 + $0x20c] ss:$16 sps:$4 sm:$0xff]   ;;  %v9498_v4 = vld [vmem:[#allocation8 + $0x8] ss:$16 sps:$4 sm:$0xff]  }
 0x127   : > { %1682 = vmatpush2.bf16.msra.mxu0 %v9450_v5  ;;  %1723 = vmatpush2.bf16.msra.mxu1 %v9453_v6  ;;  %v9501_v5 = vld [vmem:[#allocation8 + $0x208] ss:$16 sps:$4 sm:$0xff]   ;;  %v9506_v6 = vld [vmem:[#allocation8 + $0x1ec] ss:$16 sps:$4 sm:$0xff]  }
 0x128   : > { %1733 = vmatprep.subr.bf16.mxu0 %v9458_v7  ;;  %1774 = vmatprep.subr.bf16.mxu1 %v9461_v8  ;;  %v9509_v7 = vld [vmem:[#allocation8 + $0x3ec] ss:$16 sps:$4 sm:$0xff]   ;;  %v9504_v8 = vld [vmem:[#allocation8 + $0x1e8] ss:$16 sps:$4 sm:$0xff]  }
 0x1aa   : > { %v805_v20 = vpop.f32.mrf.mxu0  ;;  %v846_v21 = vpop.f32.mrf.mxu1 }
 0x1ab   : > { %v806_v22 = vadd.f32 %v805_v20, %v730_v16  ;;  %v847_v23 = vadd.f32 %v846_v21, %v738_v17  ;;  %v9512_v16 = vld [vmem:[#allocation8 + $0x1cc] ss:$16 sps:$4 sm:$0xff]  }
 0x1ac   : > { %v807_v24 = vpop.f32.mrf.mxu0  ;;  %v848_v25 = vpop.f32.mrf.mxu1  ;;  %v9515_v17 = vld [vmem:[#allocation8 + $0x3cc] ss:$16 sps:$4 sm:$0xff]  }
 0x1ad   : > { %v855_v26 = vmax.f32 %v847_v23, 0.0  ;;  %v808_v27 = vadd.f32 %v807_v24, %v734_v18  ;;  %v849_v28 = vadd.f32 %v848_v25, %v742_v19  ;;  %v853_v29 = vmax.f32 %v806_v22, 0.0  ;;  %v9510_v18 = vld [vmem:[#allocation8 + $0x1c8] ss:$16 sps:$4 sm:$0xff]   ;;  %v9518_v20 = vld [vmem:[#allocation8 + $0x1ac] ss:$16 sps:$4 sm:$0xff]  }
 0x1ae   : > { %v809_v30 = vpop.f32.mrf.mxu0  ;;  %v850_v31 = vpop.f32.mrf.mxu1  ;;  %v9513_v19 = vld [vmem:[#allocation8 + $0x3c8] ss:$16 sps:$4 sm:$0xff]   ;;  %v9521_v21 = vld [vmem:[#allocation8 + $0x3ac] ss:$16 sps:$4 sm:$0xff]  }
 0x1af   : > { %v854_v32 = vmax.f32 %v808_v27, 0.0  ;;  %v856_v33 = vmax.f32 %v849_v28, 0.0  ;;  %v11146_v36 = vpack.c.bf16 %v855_v26, %v855_v26  ;;  %v11148_v43 = vpack.c.bf16 %v853_v29, %v853_v29  ;;  %v9516_v22 = vld [vmem:[#allocation8 + $0x1a8] ss:$16 sps:$4 sm:$0xff]   ;;  %v9524_v24 = vld [vmem:[#allocation8 + $0x18c] ss:$16 sps:$4 sm:$0xff]  }
 0x1b0   : > { %v810_v37 = vpop.f32.mrf.mxu0  ;;  %v851_v38 = vpop.f32.mrf.mxu1  ;;  %v9519_v23 = vld [vmem:[#allocation8 + $0x3a8] ss:$16 sps:$4 sm:$0xff]   ;;  %v9527_v25 = vld [vmem:[#allocation8 + $0x38c] ss:$16 sps:$4 sm:$0xff]  }
 0x1b1   : > { %v858_v39 = vpack.c.bf16 %v854_v32, %v854_v32  ;;  %v860_v40 = vpack.c.bf16 %v856_v33, %v856_v33  ;;  %v9522_v26 = vld [vmem:[#allocation8 + $0x188] ss:$16 sps:$4 sm:$0xff]   ;;  %v9530_v28 = vld [vmem:[#allocation8 + $0x16c] ss:$16 sps:$4 sm:$0xff]  }
 0x1b2   : > { %v9525_v27 = vld [vmem:[#allocation8 + $0x388] ss:$16 sps:$4 sm:$0xff]   ;;  %v9533_v29 = vld [vmem:[#allocation8 + $0x36c] ss:$16 sps:$4 sm:$0xff]  }
 0x1b3   : > { %1683 = vmatprep.mubr.bf16.mxu0 %v858_v39  ;;  %1724 = vmatprep.mubr.bf16.mxu1 %v860_v40  ;;  %v9528_v30 = vld [vmem:[#allocation8 + $0x168] ss:$16 sps:$4 sm:$0xff]   ;;  %v9536_v32 = vld [vmem:[#allocation8 + $0x14c] ss:$16 sps:$4 sm:$0xff]  }
 0x1b4   : > { %1684 = vmatmul.mubr.bf16.vlgmr.msra.gmra.mxu0 %v11148_v43  ;;  %1725 = vmatmul.mubr.bf16.vlgmr.msra.gmra.mxu1 %v11146_v36  ;;  %v9531_v31 = vld [vmem:[#allocation8 + $0x368] ss:$16 sps:$4 sm:$0xff]   ;;  %v9539_v33 = vld [vmem:[#allocation8 + $0x34c] ss:$16 sps:$4 sm:$0xff]  }
 0x1b5   : > { %1734 = vmatpush1.bf16.msra.mxu0 %v9456_v34  ;;  %1775 = vmatpush1.bf16.msra.mxu1 %v9459_v35  ;;  %v9534_v34 = vld [vmem:[#allocation8 + $0x148] ss:$16 sps:$4 sm:$0xff]   ;;  %v9542_v37 = vld [vmem:[#allocation8 + $0x12c] ss:$16 sps:$4 sm:$0xff]  }
 0x1b6   : > { %1765 = vmatprep.mubr.bf16.mxu0 %v858_v39  ;;  %1806 = vmatprep.mubr.bf16.mxu1 %v860_v40  ;;  %v9537_v35 = vld [vmem:[#allocation8 + $0x348] ss:$16 sps:$4 sm:$0xff]   ;;  %v9545_v38 = vld [vmem:[#allocation8 + $0x32c] ss:$16 sps:$4 sm:$0xff]  }
 0x1b7   : > { %1735 = vmatprep.subr.bf16.mxu0 %v9464_v41  ;;  %1776 = vmatprep.subr.bf16.mxu1 %v9467_v42  ;;  %v9540_v39 = vld [vmem:[#allocation8 + $0x128] ss:$16 sps:$4 sm:$0xff]   ;;  %v9548_v41 = vld [vmem:[#allocation8 + $0x10c] ss:$16 sps:$4 sm:$0xff]  }
 0x1b8   : > { %v9543_v40 = vld [vmem:[#allocation8 + $0x328] ss:$16 sps:$4 sm:$0xff]   ;;  %v9551_v42 = vld [vmem:[#allocation8 + $0x30c] ss:$16 sps:$4 sm:$0xff]  }
 0x1b9   : > { %1736 = vmatpush1.bf16.msra.mxu0 %v9462_v44  ;;  %1777 = vmatpush1.bf16.msra.mxu1 %v9465_v45  ;;  %v9546_v44 = vld [vmem:[#allocation8 + $0x108] ss:$16 sps:$4 sm:$0xff]  }
 0x1ba   : > { %1737 = vmatprep.subr.bf16.mxu0 %v9470_v46  ;;  %1778 = vmatprep.subr.bf16.mxu1 %v9473_v47  ;;  %v9549_v45 = vld [vmem:[#allocation8 + $0x308] ss:$16 sps:$4 sm:$0xff]   ;;  %v9554_v46 = vld [vmem:[#allocation10 + $0xe4] ss:$16 sps:$4 sm:$0xff]   ;;  %v9552_v47 = vld [vmem:[#allocation10 + $0xe0] ss:$16 sps:$4 sm:$0xff]  }
 0x1bd   : > { %1738 = vmatpush1.bf16.msra.mxu0 %v9468_v48  ;;  %1779 = vmatpush1.bf16.msra.mxu1 %v9471_v49  ;;  %v9557_v48 = vld [vmem:[#allocation10 + $0xc4] ss:$16 sps:$4 sm:$0xff]   ;;  %v9555_v49 = vld [vmem:[#allocation10 + $0xc0] ss:$16 sps:$4 sm:$0xff]  }
 0x1be   : > { %1739 = vmatprep.subr.bf16.mxu0 %v9476_v50  ;;  %1780 = vmatprep.subr.bf16.mxu1 %v9479_v51  ;;  %v9560_v50 = vld [vmem:[#allocation10 + $0xa4] ss:$16 sps:$4 sm:$0xff]   ;;  %v9558_v51 = vld [vmem:[#allocation10 + $0xa0] ss:$16 sps:$4 sm:$0xff]  }
 0x1c1   : > { %1740 = vmatpush1.bf16.msra.mxu0 %v9474_v52  ;;  %1781 = vmatpush1.bf16.msra.mxu1 %v9477_v53  ;;  %v9563_v52 = vld [vmem:[#allocation10 + $0x84] ss:$16 sps:$4 sm:$0xff]   ;;  %v9561_v53 = vld [vmem:[#allocation10 + $0x80] ss:$16 sps:$4 sm:$0xff]  }
 0x1c2   : > { %1741 = vmatprep.subr.bf16.mxu0 %v9482_v54  ;;  %1782 = vmatprep.subr.bf16.mxu1 %v9485_v55  ;;  %v9600_v54 = vld [vmem:[#allocation10 + $0x2e0] ss:$16 sps:$4 sm:$0xff]   ;;  %v9602_v55 = vld [vmem:[#allocation10 + $0x2e4] ss:$16 sps:$4 sm:$0xff]  }
 0x1c5   : > { %1742 = vmatpush1.bf16.msra.mxu0 %v9480_v56  ;;  %1783 = vmatpush1.bf16.msra.mxu1 %v9483_v57  ;;  %v9566_v56 = vld [vmem:[#allocation10 + $0x64] ss:$16 sps:$4 sm:$0xff]   ;;  %v9564_v57 = vld [vmem:[#allocation10 + $0x60] ss:$16 sps:$4 sm:$0xff]  }
 0x1c6   : > { %1743 = vmatprep.subr.bf16.mxu0 %v9488_v58  ;;  %1784 = vmatprep.subr.bf16.mxu1 %v9491_v59  ;;  %v9608_v58 = vld [vmem:[#allocation10 + $0x2c4] ss:$16 sps:$4 sm:$0xff]   ;;  %v9567_v59 = vld [vmem:[#allocation10 + $0x40] ss:$16 sps:$4 sm:$0xff]  }
 0x1c9   : > { %1744 = vmatpush1.bf16.msra.mxu0 %v9486_v60  ;;  %1785 = vmatpush1.bf16.msra.mxu1 %v9489_v61  ;;  %v9612_v60 = vld [vmem:[#allocation10 + $0x2a0] ss:$16 sps:$4 sm:$0xff]   ;;  %v9614_v61 = vld [vmem:[#allocation10 + $0x2a4] ss:$16 sps:$4 sm:$0xff]  }
 0x1ca   : > { %1745 = vmatprep.subr.bf16.mxu0 %v9494_v62  ;;  %1786 = vmatprep.subr.bf16.mxu1 %v9497_v63  ;;  %v9572_v62 = vld [vmem:[#allocation10 + $0x24] ss:$16 sps:$4 sm:$0xff]   ;;  %v9570_v63 = vld [vmem:[#allocation10 + $0x20] ss:$16 sps:$4 sm:$0xff]  }
 0x1cd   : > { %1746 = vmatpush1.bf16.msra.mxu0 %v9492_v0  ;;  %1787 = vmatpush1.bf16.msra.mxu1 %v9495_v1  ;;  %v9618_v0 = vld [vmem:[#allocation10 + $0x280] ss:$16 sps:$4 sm:$0xff]   ;;  %v9620_v1 = vld [vmem:[#allocation10 + $0x284] ss:$16 sps:$4 sm:$0xff]  }
 0x1ce   : > { %1747 = vmatprep.subr.bf16.mxu0 %v9500_v2  ;;  %1788 = vmatprep.subr.bf16.mxu1 %v9503_v3  ;;  %v9575_v2 = vld [vmem:[#allocation10 + $0x4] ss:$16 sps:$4 sm:$0xff]   ;;  %v9573_v3 = vld [vmem:[#allocation10] ss:$16 sps:$4 sm:$0xff]  }
 0x1d1   : > { %1748 = vmatpush1.bf16.msra.mxu0 %v9498_v4  ;;  %1789 = vmatpush1.bf16.msra.mxu1 %v9501_v5  ;;  %v9624_v4 = vld [vmem:[#allocation10 + $0x260] ss:$16 sps:$4 sm:$0xff]   ;;  %v9626_v5 = vld [vmem:[#allocation10 + $0x264] ss:$16 sps:$4 sm:$0xff]  }
 0x1d2   : > { %1749 = vmatprep.subr.bf16.mxu0 %v9506_v6  ;;  %1790 = vmatprep.subr.bf16.mxu1 %v9509_v7  ;;  %v9578_v6 = vld [vmem:[#allocation10 + $0x1e4] ss:$16 sps:$4 sm:$0xff]   ;;  %v9576_v7 = vld [vmem:[#allocation10 + $0x1e0] ss:$16 sps:$4 sm:$0xff]  }
 0x1d5   : > { %1750 = vmatpush2.bf16.msra.mxu0 %v9504_v8  ;;  %1791 = vmatpush2.bf16.msra.mxu1 %v9507_v11  ;;  %v9630_v8 = vld [vmem:[#allocation10 + $0x240] ss:$16 sps:$4 sm:$0xff]   ;;  %v9632_v11 = vld [vmem:[#allocation10 + $0x244] ss:$16 sps:$4 sm:$0xff]  }
 0x1d6   : > { %1751 = vmatprep.subr.bf16.mxu0 %v9512_v16  ;;  %1792 = vmatprep.subr.bf16.mxu1 %v9515_v17  ;;  %v9581_v16 = vld [vmem:[#allocation10 + $0x1c4] ss:$16 sps:$4 sm:$0xff]   ;;  %v9579_v17 = vld [vmem:[#allocation10 + $0x1c0] ss:$16 sps:$4 sm:$0xff]  }
 0x1d9   : > { %1752 = vmatpush2.bf16.msra.mxu0 %v9510_v18  ;;  %1793 = vmatpush2.bf16.msra.mxu1 %v9513_v19  ;;  %v9636_v18 = vld [vmem:[#allocation10 + $0x220] ss:$16 sps:$4 sm:$0xff]   ;;  %v9638_v19 = vld [vmem:[#allocation10 + $0x224] ss:$16 sps:$4 sm:$0xff]  }
 0x1da   : > { %1753 = vmatprep.subr.bf16.mxu0 %v9518_v20  ;;  %1794 = vmatprep.subr.bf16.mxu1 %v9521_v21  ;;  %v9584_v20 = vld [vmem:[#allocation10 + $0x1a4] ss:$16 sps:$4 sm:$0xff]   ;;  %v9582_v21 = vld [vmem:[#allocation10 + $0x1a0] ss:$16 sps:$4 sm:$0xff]  }
 0x1dd   : > { %1754 = vmatpush2.bf16.msra.mxu0 %v9516_v22  ;;  %1795 = vmatpush2.bf16.msra.mxu1 %v9519_v23  ;;  %v9642_v22 = vld [vmem:[#allocation10 + $0x200] ss:$16 sps:$4 sm:$0xff]   ;;  %v9644_v23 = vld [vmem:[#allocation10 + $0x204] ss:$16 sps:$4 sm:$0xff]  }
 0x1de   : > { %1755 = vmatprep.subr.bf16.mxu0 %v9524_v24  ;;  %1796 = vmatprep.subr.bf16.mxu1 %v9527_v25  ;;  %v9587_v24 = vld [vmem:[#allocation10 + $0x184] ss:$16 sps:$4 sm:$0xff]   ;;  %v9585_v25 = vld [vmem:[#allocation10 + $0x180] ss:$16 sps:$4 sm:$0xff]  }
 0x1e1   : > { %1756 = vmatpush2.bf16.msra.mxu0 %v9522_v26  ;;  %1797 = vmatpush2.bf16.msra.mxu1 %v9525_v27  ;;  %v9648_v26 = vld [vmem:[#allocation10 + $0x3e0] ss:$16 sps:$4 sm:$0xff]   ;;  %v9650_v27 = vld [vmem:[#allocation10 + $0x3e4] ss:$16 sps:$4 sm:$0xff]  }
 0x1e2   : > { %1757 = vmatprep.subr.bf16.mxu0 %v9530_v28  ;;  %1798 = vmatprep.subr.bf16.mxu1 %v9533_v29  ;;  %v9590_v28 = vld [vmem:[#allocation10 + $0x164] ss:$16 sps:$4 sm:$0xff]   ;;  %v9588_v29 = vld [vmem:[#allocation10 + $0x160] ss:$16 sps:$4 sm:$0xff]  }
 0x1e5   : > { %1758 = vmatpush2.bf16.msra.mxu0 %v9528_v30  ;;  %1799 = vmatpush2.bf16.msra.mxu1 %v9531_v31  ;;  %v9654_v30 = vld [vmem:[#allocation10 + $0x3c0] ss:$16 sps:$4 sm:$0xff]   ;;  %v9656_v31 = vld [vmem:[#allocation10 + $0x3c4] ss:$16 sps:$4 sm:$0xff]  }
 0x1e6   : > { %1759 = vmatprep.subr.bf16.mxu0 %v9536_v32  ;;  %1800 = vmatprep.subr.bf16.mxu1 %v9539_v33  ;;  %v9593_v32 = vld [vmem:[#allocation10 + $0x144] ss:$16 sps:$4 sm:$0xff]   ;;  %v9591_v33 = vld [vmem:[#allocation10 + $0x140] ss:$16 sps:$4 sm:$0xff]  }
 0x1e9   : > { %1760 = vmatpush2.bf16.msra.mxu0 %v9534_v34  ;;  %1801 = vmatpush2.bf16.msra.mxu1 %v9537_v35  ;;  %v9660_v34 = vld [vmem:[#allocation10 + $0x3a0] ss:$16 sps:$4 sm:$0xff]   ;;  %v9662_v35 = vld [vmem:[#allocation10 + $0x3a4] ss:$16 sps:$4 sm:$0xff]  }
 0x1ea   : > { %1761 = vmatprep.subr.bf16.mxu0 %v9542_v37  ;;  %1802 = vmatprep.subr.bf16.mxu1 %v9545_v38  ;;  %v9596_v37 = vld [vmem:[#allocation10 + $0x124] ss:$16 sps:$4 sm:$0xff]   ;;  %v9594_v38 = vld [vmem:[#allocation10 + $0x120] ss:$16 sps:$4 sm:$0xff]  }
 0x1ed   : > { %1762 = vmatpush2.bf16.msra.mxu0 %v9540_v39  ;;  %1803 = vmatpush2.bf16.msra.mxu1 %v9543_v40  ;;  %v9666_v39 = vld [vmem:[#allocation10 + $0x380] ss:$16 sps:$4 sm:$0xff]   ;;  %v9668_v40 = vld [vmem:[#allocation10 + $0x384] ss:$16 sps:$4 sm:$0xff]  }
 0x1ee   : > { %1763 = vmatprep.subr.bf16.mxu0 %v9548_v41  ;;  %1804 = vmatprep.subr.bf16.mxu1 %v9551_v42  ;;  %v9599_v41 = vld [vmem:[#allocation10 + $0x104] ss:$16 sps:$4 sm:$0xff]   ;;  %v9597_v42 = vld [vmem:[#allocation10 + $0x100] ss:$16 sps:$4 sm:$0xff]  }
 0x1f1   : > { %1764 = vmatpush2.bf16.msra.mxu0 %v9546_v44  ;;  %1805 = vmatpush2.bf16.msra.mxu1 %v9549_v45  ;;  %v9672_v44 = vld [vmem:[#allocation10 + $0x360] ss:$16 sps:$4 sm:$0xff]   ;;  %v9674_v45 = vld [vmem:[#allocation10 + $0x364] ss:$16 sps:$4 sm:$0xff]  }
 0x1f2   : > { %2613 = vmatprep.subr.bf16.mxu0 %v9554_v46  ;;  %2654 = vmatprep.subr.bf16.mxu1 %v9602_v55  ;;  %v9605_v46 = vld [vmem:[#allocation10 + $0xec] ss:$16 sps:$4 sm:$0xff]  }
 0x1f4   : > { %1766 = vmatmul.mubr.bf16.vlgmr.msra.gmra.mxu0 %v11148_v43  ;;  %1807 = vmatmul.mubr.bf16.vlgmr.msra.gmra.mxu1 %v11146_v36  ;;  %v9606_v43 = vld [vmem:[#allocation10 + $0x2c0] ss:$16 sps:$4 sm:$0xff]   ;;  %v9569_v36 = vld [vmem:[#allocation10 + $0x44] ss:$16 sps:$4 sm:$0xff]  }
 0x1f5   : > { %2614 = vmatpush1.bf16.msra.mxu0 %v9552_v47  ;;  %2655 = vmatpush1.bf16.msra.mxu1 %v9600_v54  ;;  %v9678_v47 = vld [vmem:[#allocation10 + $0x340] ss:$16 sps:$4 sm:$0xff]   ;;  %v11157_v54 = vld [vmem:[%s11395_s4] sm:$0xf] }
 0x1f6   : > { %2615 = vmatprep.subr.bf16.mxu0 %v9557_v48  ;;  %2656 = vmatprep.subr.bf16.mxu1 %v9608_v58  ;;  %v9680_v48 = vld [vmem:[#allocation10 + $0x344] ss:$16 sps:$4 sm:$0xff]   ;;  %v994_v55 = vrot.slane %v11157_v54, %v11131_v12 }
 0x1f9   : > { %2616 = vmatpush1.bf16.msra.mxu0 %v9555_v49  ;;  %2657 = vmatpush1.bf16.msra.mxu1 %v9606_v43  ;;  %v9686_v49 = vld [vmem:[#allocation10 + $0x324] ss:$16 sps:$4 sm:$0xff]  }
 0x1fa   : > { %2617 = vmatprep.subr.bf16.mxu0 %v9560_v50  ;;  %2658 = vmatprep.subr.bf16.mxu1 %v9614_v61  ;;  %v9684_v50 = vld [vmem:[#allocation10 + $0x320] ss:$16 sps:$4 sm:$0xff]  }
 0x1fd   : > { %2618 = vmatpush1.bf16.msra.mxu0 %v9558_v51  ;;  %2659 = vmatpush1.bf16.msra.mxu1 %v9612_v60  ;;  %v9692_v51 = vld [vmem:[#allocation10 + $0x304] ss:$16 sps:$4 sm:$0xff]  }
 0x1fe   : > { %2619 = vmatprep.subr.bf16.mxu0 %v9563_v52  ;;  %2660 = vmatprep.subr.bf16.mxu1 %v9620_v1  ;;  %v9690_v52 = vld [vmem:[#allocation10 + $0x300] ss:$16 sps:$4 sm:$0xff]  }
 0x201   : > { %2620 = vmatpush1.bf16.msra.mxu0 %v9561_v53  ;;  %2661 = vmatpush1.bf16.msra.mxu1 %v9618_v0  ;;  %v9698_v53 = vld [vmem:[#allocation10 + $0x2ec] ss:$16 sps:$4 sm:$0xff]  }
 0x202   : > { %2621 = vmatprep.subr.bf16.mxu0 %v9566_v56  ;;  %2662 = vmatprep.subr.bf16.mxu1 %v9626_v5  ;;  %v998_v56 = vrot.slane %v11157_v54, %v11137_v14 }
 0x205   : > { %2622 = vmatpush1.bf16.msra.mxu0 %v9564_v57  ;;  %2663 = vmatpush1.bf16.msra.mxu1 %v9624_v4 }
 0x206   : > { %2623 = vmatprep.subr.bf16.mxu0 %v9569_v36  ;;  %2664 = vmatprep.subr.bf16.mxu1 %v9632_v11  ;;  %v9609_v11 = vld [vmem:[#allocation10 + $0xc8] ss:$16 sps:$4 sm:$0xff]  }
 0x209   : > { %2624 = vmatpush1.bf16.msra.mxu0 %v9567_v59  ;;  %2665 = vmatpush1.bf16.msra.mxu1 %v9630_v8  ;;  %v9611_v8 = vld [vmem:[#allocation10 + $0xcc] ss:$16 sps:$4 sm:$0xff]  }
 0x20a   : > { %2625 = vmatprep.subr.bf16.mxu0 %v9572_v62  ;;  %2666 = vmatprep.subr.bf16.mxu1 %v9638_v19  ;;  %v9621_v19 = vld [vmem:[#allocation10 + $0x88] ss:$16 sps:$4 sm:$0xff]  }
 0x20d   : > { %2626 = vmatpush1.bf16.msra.mxu0 %v9570_v63  ;;  %2667 = vmatpush1.bf16.msra.mxu1 %v9636_v18  ;;  %v9623_v18 = vld [vmem:[#allocation10 + $0x8c] ss:$16 sps:$4 sm:$0xff]  }
 0x20e   : > { %2627 = vmatprep.subr.bf16.mxu0 %v9575_v2  ;;  %2668 = vmatprep.subr.bf16.mxu1 %v9644_v23  ;;  %v9633_v23 = vld [vmem:[#allocation10 + $0x48] ss:$16 sps:$4 sm:$0xff]  }
 0x211   : > { %2628 = vmatpush1.bf16.msra.mxu0 %v9573_v3  ;;  %2669 = vmatpush1.bf16.msra.mxu1 %v9642_v22  ;;  %v9635_v22 = vld [vmem:[#allocation10 + $0x4c] ss:$16 sps:$4 sm:$0xff]  }
 0x212   : > { %2629 = vmatprep.subr.bf16.mxu0 %v9578_v6  ;;  %2670 = vmatprep.subr.bf16.mxu1 %v9650_v27  ;;  %v9603_v6 = vld [vmem:[#allocation10 + $0xe8] ss:$16 sps:$4 sm:$0xff]  }
 0x213   : > { %v9645_v27 = vld [vmem:[#allocation10 + $0x8] ss:$16 sps:$4 sm:$0xff]  }
 0x215   : > { %2630 = vmatpush2.bf16.msra.mxu0 %v9576_v7  ;;  %2671 = vmatpush2.bf16.msra.mxu1 %v9648_v26  ;;  %v9647_v26 = vld [vmem:[#allocation10 + $0xc] ss:$16 sps:$4 sm:$0xff]  }
 0x216   : > { %2631 = vmatprep.subr.bf16.mxu0 %v9581_v16  ;;  %2672 = vmatprep.subr.bf16.mxu1 %v9656_v31  ;;  %v9617_v16 = vld [vmem:[#allocation10 + $0xac] ss:$16 sps:$4 sm:$0xff]   ;;  %v9657_v31 = vld [vmem:[#allocation10 + $0x1c8] ss:$16 sps:$4 sm:$0xff]  }
 0x219   : > { %2632 = vmatpush2.bf16.msra.mxu0 %v9579_v17  ;;  %2673 = vmatpush2.bf16.msra.mxu1 %v9654_v30  ;;  %v9615_v17 = vld [vmem:[#allocation10 + $0xa8] ss:$16 sps:$4 sm:$0xff]   ;;  %v9659_v30 = vld [vmem:[#allocation10 + $0x1cc] ss:$16 sps:$4 sm:$0xff]  }
 0x21a   : > { %2633 = vmatprep.subr.bf16.mxu0 %v9584_v20  ;;  %2674 = vmatprep.subr.bf16.mxu1 %v9662_v35  ;;  %v9629_v20 = vld [vmem:[#allocation10 + $0x6c] ss:$16 sps:$4 sm:$0xff]   ;;  %v9669_v35 = vld [vmem:[#allocation10 + $0x188] ss:$16 sps:$4 sm:$0xff]  }
 0x21d   : > { %2634 = vmatpush2.bf16.msra.mxu0 %v9582_v21  ;;  %2675 = vmatpush2.bf16.msra.mxu1 %v9660_v34  ;;  %v9627_v21 = vld [vmem:[#allocation10 + $0x68] ss:$16 sps:$4 sm:$0xff]   ;;  %v9671_v34 = vld [vmem:[#allocation10 + $0x18c] ss:$16 sps:$4 sm:$0xff]  }
 0x21e   : > { %2635 = vmatprep.subr.bf16.mxu0 %v9587_v24  ;;  %2676 = vmatprep.subr.bf16.mxu1 %v9668_v40  ;;  %v9641_v24 = vld [vmem:[#allocation10 + $0x2c] ss:$16 sps:$4 sm:$0xff]   ;;  %v1002_v40 = vrot.slane %v11157_v54, %v11134_v13 }
 0x221   : > { %2636 = vmatpush2.bf16.msra.mxu0 %v9585_v25  ;;  %2677 = vmatpush2.bf16.msra.mxu1 %v9666_v39  ;;  %v9639_v25 = vld [vmem:[#allocation10 + $0x28] ss:$16 sps:$4 sm:$0xff]   ;;  %v9683_v39 = vld [vmem:[#allocation10 + $0x14c] ss:$16 sps:$4 sm:$0xff]  }
 0x222   : > { %2637 = vmatprep.subr.bf16.mxu0 %v9590_v28  ;;  %2678 = vmatprep.subr.bf16.mxu1 %v9674_v45  ;;  %v9653_v28 = vld [vmem:[#allocation10 + $0x1ec] ss:$16 sps:$4 sm:$0xff]  }
 0x225   : > { %2638 = vmatpush2.bf16.msra.mxu0 %v9588_v29  ;;  %2679 = vmatpush2.bf16.msra.mxu1 %v9672_v44  ;;  %v9651_v29 = vld [vmem:[#allocation10 + $0x1e8] ss:$16 sps:$4 sm:$0xff]   ;;  %v1006_v44 = vrot.slane %v11157_v54, %v11140_v15 }
 0x226   : > { %2639 = vmatprep.subr.bf16.mxu0 %v9593_v32  ;;  %2680 = vmatprep.subr.bf16.mxu1 %v9680_v48  ;;  %v9665_v32 = vld [vmem:[#allocation10 + $0x1ac] ss:$16 sps:$4 sm:$0xff]   ;;  %v9687_v48 = vld [vmem:[#allocation10 + $0x128] ss:$16 sps:$4 sm:$0xff]  }
 0x229   : > { %2640 = vmatpush2.bf16.msra.mxu0 %v9591_v33  ;;  %2681 = vmatpush2.bf16.msra.mxu1 %v9678_v47  ;;  %v9663_v33 = vld [vmem:[#allocation10 + $0x1a8] ss:$16 sps:$4 sm:$0xff]  }
 0x22a   : > { %2641 = vmatprep.subr.bf16.mxu0 %v9596_v37  ;;  %2682 = vmatprep.subr.bf16.mxu1 %v9686_v49  ;;  %v9677_v37 = vld [vmem:[#allocation10 + $0x16c] ss:$16 sps:$4 sm:$0xff]  }
 0x22d   : > { %2642 = vmatpush2.bf16.msra.mxu0 %v9594_v38  ;;  %2683 = vmatpush2.bf16.msra.mxu1 %v9684_v50  ;;  %v9675_v38 = vld [vmem:[#allocation10 + $0x168] ss:$16 sps:$4 sm:$0xff]  }
 0x22e   : > { %2643 = vmatprep.subr.bf16.mxu0 %v9599_v41  ;;  %2684 = vmatprep.subr.bf16.mxu1 %v9692_v51  ;;  %v9681_v41 = vld [vmem:[#allocation10 + $0x148] ss:$16 sps:$4 sm:$0xff]   ;;  %v9695_v51 = vld [vmem:[#allocation10 + $0x10c] ss:$16 sps:$4 sm:$0xff]  }
 0x231   : > { %2644 = vmatpush2.bf16.msra.mxu0 %v9597_v42  ;;  %2685 = vmatpush2.bf16.msra.mxu1 %v9690_v52  ;;  %v9689_v42 = vld [vmem:[#allocation10 + $0x12c] ss:$16 sps:$4 sm:$0xff]  }
 0x232   : > { %2695 = vmatprep.subr.bf16.mxu0 %v9605_v46  ;;  %2736 = vmatprep.subr.bf16.mxu1 %v9698_v53 }
 0x274   : > { %v1685_v57 = vpop.f32.mrf.mxu0  ;;  %v1726_v43 = vpop.f32.mrf.mxu1 }
 0x275   : > { %v1686_v58 = vadd.f32 %v1685_v57, %v994_v55 }
 0x276   : > { %v1687_v36 = vpop.f32.mrf.mxu0  ;;  %v1728_v59 = vpop.f32.mrf.mxu1 }
 0x277   : > { %v1727_v60 = vadd.f32 %v1726_v43, %v1686_v58  ;;  %v1688_v61 = vadd.f32 %v1687_v36, %v998_v56  ;;  %v9693_v43 = vld [vmem:[#allocation10 + $0x108] ss:$16 sps:$4 sm:$0xff]  }
 0x278   : > { %v1689_v62 = vpop.f32.mrf.mxu0  ;;  %v1730_v63 = vpop.f32.mrf.mxu1 }
 0x279   : > { %v1729_v0 = vadd.f32 %v1728_v59, %v1688_v61  ;;  %v1815_v1 = vmax.f32 %v1727_v60, 0.0  ;;  %v9696_v61 = vld [vmem:[#allocation10 + $0x2e8] ss:$16 sps:$4 sm:$0xff]   ;;  %v9701_v63 = vld [vmem:[#allocation10 + $0x2cc] ss:$16 sps:$4 sm:$0xff]  }
 0x27a   : > { %v1690_v2 = vpop.f32.mrf.mxu0  ;;  %v1731_v3 = vpop.f32.mrf.mxu1 }
 0x27b   : > { %v1816_v4 = vmax.f32 %v1729_v0, 0.0  ;;  %v11163_v7 = vpack.c.bf16 %v1815_v1, %v1815_v1  ;;  %v9699_v0 = vld [vmem:[#allocation10 + $0x2c8] ss:$16 sps:$4 sm:$0xff]   ;;  %v9704_v1 = vld [vmem:[#allocation10 + $0x2ac] ss:$16 sps:$4 sm:$0xff]  }
 0x27c   : > { %v9702_v2 = vld [vmem:[#allocation10 + $0x2a8] ss:$16 sps:$4 sm:$0xff]   ;;  %v9707_v3 = vld [vmem:[#allocation10 + $0x28c] ss:$16 sps:$4 sm:$0xff]  }
 0x27d   : > { %v1820_v5 = vpack.c.bf16 %v1816_v4, %v1816_v4  ;;  %v9744_v4 = vld [vmem:[#allocation11 + $0xe0] ss:$16 sps:$4 sm:$0xff]  }
 0x27f   : > { %2645 = vmatprep.mubr.bf16.mxu0 %v1820_v5 }
 0x280   : > { %2646 = vmatmul.mubr.bf16.vlgmr.msra.gmra.mxu0 %v11163_v7 }
 0x281   : > { %2696 = vmatpush1.bf16.msra.mxu0 %v9603_v6  ;;  %2727 = vmatprep.mubr.bf16.mxu0 %v1820_v5  ;;  %v9746_v5 = vld [vmem:[#allocation11 + $0xe4] ss:$16 sps:$4 sm:$0xff]  }
 0x282   : > { %2697 = vmatprep.subr.bf16.mxu0 %v9611_v8  ;;  %v9749_v6 = vld [vmem:[#allocation11 + $0xc4] ss:$16 sps:$4 sm:$0xff]   ;;  %v9705_v8 = vld [vmem:[#allocation10 + $0x288] ss:$16 sps:$4 sm:$0xff]  }
 0x285   : > { %2698 = vmatpush1.bf16.msra.mxu0 %v9609_v11  ;;  %v9747_v11 = vld [vmem:[#allocation11 + $0xc0] ss:$16 sps:$4 sm:$0xff]  }
 0x286   : > { %2699 = vmatprep.subr.bf16.mxu0 %v9617_v16  ;;  %v9710_v16 = vld [vmem:[#allocation10 + $0x26c] ss:$16 sps:$4 sm:$0xff]  }
 0x289   : > { %2700 = vmatpush1.bf16.msra.mxu0 %v9615_v17  ;;  %v9708_v17 = vld [vmem:[#allocation10 + $0x268] ss:$16 sps:$4 sm:$0xff]  }
 0x28a   : > { %2701 = vmatprep.subr.bf16.mxu0 %v9623_v18  ;;  %v9750_v18 = vld [vmem:[#allocation11 + $0xa0] ss:$16 sps:$4 sm:$0xff]  }
 0x28d   : > { %2702 = vmatpush1.bf16.msra.mxu0 %v9621_v19  ;;  %v9713_v19 = vld [vmem:[#allocation10 + $0x24c] ss:$16 sps:$4 sm:$0xff]  }
 0x28e   : > { %2703 = vmatprep.subr.bf16.mxu0 %v9629_v20  ;;  %v9755_v20 = vld [vmem:[#allocation11 + $0x84] ss:$16 sps:$4 sm:$0xff]  }
 0x291   : > { %2704 = vmatpush1.bf16.msra.mxu0 %v9627_v21  ;;  %v9711_v21 = vld [vmem:[#allocation10 + $0x248] ss:$16 sps:$4 sm:$0xff]  }
 0x292   : > { %2705 = vmatprep.subr.bf16.mxu0 %v9635_v22  ;;  %v9753_v22 = vld [vmem:[#allocation11 + $0x80] ss:$16 sps:$4 sm:$0xff]  }
 0x295   : > { %2706 = vmatpush1.bf16.msra.mxu0 %v9633_v23  ;;  %v9716_v23 = vld [vmem:[#allocation10 + $0x22c] ss:$16 sps:$4 sm:$0xff]  }
 0x296   : > { %2707 = vmatprep.subr.bf16.mxu0 %v9641_v24  ;;  %v9758_v24 = vld [vmem:[#allocation11 + $0x64] ss:$16 sps:$4 sm:$0xff]  }
 0x299   : > { %2708 = vmatpush1.bf16.msra.mxu0 %v9639_v25  ;;  %v9714_v25 = vld [vmem:[#allocation10 + $0x228] ss:$16 sps:$4 sm:$0xff]  }
 0x29a   : > { %2709 = vmatprep.subr.bf16.mxu0 %v9647_v26  ;;  %v9756_v26 = vld [vmem:[#allocation11 + $0x60] ss:$16 sps:$4 sm:$0xff]  }
 0x29d   : > { %2710 = vmatpush1.bf16.msra.mxu0 %v9645_v27  ;;  %v9719_v27 = vld [vmem:[#allocation10 + $0x20c] ss:$16 sps:$4 sm:$0xff]  }
 0x29e   : > { %2711 = vmatprep.subr.bf16.mxu0 %v9653_v28  ;;  %v9761_v28 = vld [vmem:[#allocation11 + $0x44] ss:$16 sps:$4 sm:$0xff]  }
 0x2a1   : > { %2712 = vmatpush2.bf16.msra.mxu0 %v9651_v29  ;;  %v9717_v29 = vld [vmem:[#allocation10 + $0x208] ss:$16 sps:$4 sm:$0xff]  }
 0x2a2   : > { %2713 = vmatprep.subr.bf16.mxu0 %v9659_v30  ;;  %v9759_v30 = vld [vmem:[#allocation11 + $0x40] ss:$16 sps:$4 sm:$0xff]  }
 0x2a5   : > { %2714 = vmatpush2.bf16.msra.mxu0 %v9657_v31  ;;  %v9722_v31 = vld [vmem:[#allocation10 + $0x3ec] ss:$16 sps:$4 sm:$0xff]  }
 0x2a6   : > { %2715 = vmatprep.subr.bf16.mxu0 %v9665_v32  ;;  %v9764_v32 = vld [vmem:[#allocation11 + $0x24] ss:$16 sps:$4 sm:$0xff]  }
 0x2a9   : > { %2716 = vmatpush2.bf16.msra.mxu0 %v9663_v33  ;;  %v9720_v33 = vld [vmem:[#allocation10 + $0x3e8] ss:$16 sps:$4 sm:$0xff]  }
 0x2aa   : > { %2717 = vmatprep.subr.bf16.mxu0 %v9671_v34  ;;  %v9762_v34 = vld [vmem:[#allocation11 + $0x20] ss:$16 sps:$4 sm:$0xff]  }
 0x2ad   : > { %2718 = vmatpush2.bf16.msra.mxu0 %v9669_v35  ;;  %v9725_v35 = vld [vmem:[#allocation10 + $0x3cc] ss:$16 sps:$4 sm:$0xff]  }
 0x2ae   : > { %2719 = vmatprep.subr.bf16.mxu0 %v9677_v37  ;;  %v9767_v37 = vld [vmem:[#allocation11 + $0x4] ss:$16 sps:$4 sm:$0xff]  }
 0x2b1   : > { %2720 = vmatpush2.bf16.msra.mxu0 %v9675_v38  ;;  %v9723_v38 = vld [vmem:[#allocation10 + $0x3c8] ss:$16 sps:$4 sm:$0xff]  }
 0x2b2   : > { %2721 = vmatprep.subr.bf16.mxu0 %v9683_v39  ;;  %v9765_v39 = vld [vmem:[#allocation11] ss:$16 sps:$4 sm:$0xff]  }
 0x2b4   : > { %v1767_v45 = vpop.f32.mrf.mxu0  ;;  %v1808_v46 = vpop.f32.mrf.mxu1 }
 0x2b5   : > { %v1768_v47 = vadd.f32 %v1767_v45, %v1002_v40  ;;  %2722 = vmatpush2.bf16.msra.mxu0 %v9681_v41  ;;  %v9728_v40 = vld [vmem:[#allocation10 + $0x3ac] ss:$16 sps:$4 sm:$0xff]   ;;  %v9770_v41 = vld [vmem:[#allocation11 + $0x1e4] ss:$16 sps:$4 sm:$0xff]  }
 0x2b6   : > { %v1769_v49 = vpop.f32.mrf.mxu0  ;;  %v1810_v50 = vpop.f32.mrf.mxu1  ;;  %2723 = vmatprep.subr.bf16.mxu0 %v9689_v42  ;;  %v9726_v42 = vld [vmem:[#allocation10 + $0x3a8] ss:$16 sps:$4 sm:$0xff]   ;;  %v9731_v45 = vld [vmem:[#allocation10 + $0x38c] ss:$16 sps:$4 sm:$0xff]  }
 0x2b7   : > { %v1809_v52 = vadd.f32 %v1808_v46, %v1768_v47  ;;  %v1770_v53 = vadd.f32 %v1769_v49, %v1006_v44  ;;  %v9768_v44 = vld [vmem:[#allocation11 + $0x1e0] ss:$16 sps:$4 sm:$0xff]   ;;  %v9773_v46 = vld [vmem:[#allocation11 + $0x1c4] ss:$16 sps:$4 sm:$0xff]   ;;  %v9729_v47 = vld [vmem:[#allocation10 + $0x388] ss:$16 sps:$4 sm:$0xff]  }
 0x2b8   : > { %v1771_v55 = vpop.f32.mrf.mxu0  ;;  %v1812_v56 = vpop.f32.mrf.mxu1  ;;  %v9734_v49 = vld [vmem:[#allocation10 + $0x36c] ss:$16 sps:$4 sm:$0xff]  }
 0x2b9   : > { %v1811_v57 = vadd.f32 %v1810_v50, %v1770_v53  ;;  %2724 = vmatpush2.bf16.msra.mxu0 %v9687_v48  ;;  %v1817_v58 = vmax.f32 %v1809_v52, 0.0  ;;  %v9771_v48 = vld [vmem:[#allocation11 + $0x1c0] ss:$16 sps:$4 sm:$0xff]   ;;  %v9776_v50 = vld [vmem:[#allocation11 + $0x1a4] ss:$16 sps:$4 sm:$0xff]  }
 0x2ba   : > { %v1772_v36 = vpop.f32.mrf.mxu0  ;;  %v1813_v59 = vpop.f32.mrf.mxu1  ;;  %2725 = vmatprep.subr.bf16.mxu0 %v9695_v51  ;;  %v9732_v51 = vld [vmem:[#allocation10 + $0x368] ss:$16 sps:$4 sm:$0xff]   ;;  %v9774_v52 = vld [vmem:[#allocation11 + $0x1a0] ss:$16 sps:$4 sm:$0xff]   ;;  %v9737_v53 = vld [vmem:[#allocation10 + $0x34c] ss:$16 sps:$4 sm:$0xff]  }
 0x2bb   : > { %v1818_v54 = vmax.f32 %v1811_v57, 0.0  ;;  %v11170_v62 = vpack.c.bf16 %v1817_v58, %v1817_v58  ;;  %v9779_v55 = vld [vmem:[#allocation11 + $0x184] ss:$16 sps:$4 sm:$0xff]   ;;  %v9735_v56 = vld [vmem:[#allocation10 + $0x348] ss:$16 sps:$4 sm:$0xff]  }
 0x2bc   : > { %v9777_v57 = vld [vmem:[#allocation11 + $0x180] ss:$16 sps:$4 sm:$0xff]   ;;  %v9782_v58 = vld [vmem:[#allocation11 + $0x164] ss:$16 sps:$4 sm:$0xff]   ;;  %v9738_v36 = vld [vmem:[#allocation10 + $0x328] ss:$16 sps:$4 sm:$0xff]  }
 0x2bd   : > { %v1822_v60 = vpack.c.bf16 %v1818_v54, %v1818_v54  ;;  %2726 = vmatpush2.bf16.msra.mxu0 %v9693_v43  ;;  %v9740_v43 = vld [vmem:[#allocation10 + $0x32c] ss:$16 sps:$4 sm:$0xff]   ;;  %v9780_v59 = vld [vmem:[#allocation11 + $0x160] ss:$16 sps:$4 sm:$0xff]  }
 0x2be   : > { %3575 = vmatprep.subr.bf16.mxu0 %v9746_v5  ;;  %v9743_v54 = vld [vmem:[#allocation10 + $0x30c] ss:$16 sps:$4 sm:$0xff]   ;;  %v9794_v5 = vld [vmem:[#allocation11 + $0x2e4] ss:$16 sps:$4 sm:$0xff]  }
 0x2bf   : > { %2686 = vmatprep.mubr.bf16.mxu1 %v1822_v60 }
 0x2c0   : > { %2687 = vmatmul.mubr.bf16.vlgmr.msra.gmra.mxu1 %v11170_v62  ;;  %2728 = vmatmul.mubr.bf16.vlgmr.msra.gmra.mxu0 %v11163_v7  ;;  %v9752_v7 = vld [vmem:[#allocation11 + $0xa4] ss:$16 sps:$4 sm:$0xff]  }
 0x2c1   : > { %2737 = vmatpush1.bf16.msra.mxu1 %v9696_v61  ;;  %2768 = vmatprep.mubr.bf16.mxu1 %v1822_v60  ;;  %v9785_v60 = vld [vmem:[#allocation11 + $0x144] ss:$16 sps:$4 sm:$0xff]   ;;  %v9741_v61 = vld [vmem:[#allocation10 + $0x308] ss:$16 sps:$4 sm:$0xff]  }
 0x2c2   : > { %2738 = vmatprep.subr.bf16.mxu1 %v9701_v63  ;;  %3576 = vmatpush1.bf16.msra.mxu0 %v9744_v4  ;;  %v9783_v63 = vld [vmem:[#allocation11 + $0x140] ss:$16 sps:$4 sm:$0xff]  }
 0x2c3   : > { %3577 = vmatprep.subr.bf16.mxu0 %v9749_v6  ;;  %v9792_v4 = vld [vmem:[#allocation11 + $0x2e0] ss:$16 sps:$4 sm:$0xff]   ;;  %v9797_v6 = vld [vmem:[#allocation11 + $0xec] ss:$16 sps:$4 sm:$0xff]  }
 0x2c5   : > { %2739 = vmatpush1.bf16.msra.mxu1 %v9699_v0  ;;  %v9788_v0 = vld [vmem:[#allocation11 + $0x124] ss:$16 sps:$4 sm:$0xff]  }
 0x2c6   : > { %2740 = vmatprep.subr.bf16.mxu1 %v9704_v1  ;;  %3578 = vmatpush1.bf16.msra.mxu0 %v9747_v11  ;;  %v9786_v1 = vld [vmem:[#allocation11 + $0x120] ss:$16 sps:$4 sm:$0xff]   ;;  %v9800_v11 = vld [vmem:[#allocation11 + $0x2c4] ss:$16 sps:$4 sm:$0xff]  }
 0x2c7   : > { %3579 = vmatprep.subr.bf16.mxu0 %v9752_v7  ;;  %v9810_v7 = vld [vmem:[#allocation11 + $0x280] ss:$16 sps:$4 sm:$0xff]  }
 0x2c9   : > { %2741 = vmatpush1.bf16.msra.mxu1 %v9702_v2  ;;  %v9791_v2 = vld [vmem:[#allocation11 + $0x104] ss:$16 sps:$4 sm:$0xff]  }
 0x2ca   : > { %2742 = vmatprep.subr.bf16.mxu1 %v9707_v3  ;;  %3580 = vmatpush1.bf16.msra.mxu0 %v9750_v18  ;;  %v9789_v3 = vld [vmem:[#allocation11 + $0x100] ss:$16 sps:$4 sm:$0xff]  }
 0x2cb   : > { %3581 = vmatprep.subr.bf16.mxu0 %v9755_v20  ;;  %v9816_v18 = vld [vmem:[#allocation11 + $0x260] ss:$16 sps:$4 sm:$0xff]  }
 0x2cc   : > { %v9822_v20 = vld [vmem:[#allocation11 + $0x240] ss:$16 sps:$4 sm:$0xff]  }
 0x2cd   : > { %2743 = vmatpush1.bf16.msra.mxu1 %v9705_v8  ;;  %v9798_v8 = vld [vmem:[#allocation11 + $0x2c0] ss:$16 sps:$4 sm:$0xff]  }
 0x2ce   : > { %2744 = vmatprep.subr.bf16.mxu1 %v9710_v16  ;;  %3582 = vmatpush1.bf16.msra.mxu0 %v9753_v22  ;;  %v9804_v16 = vld [vmem:[#allocation11 + $0x2a0] ss:$16 sps:$4 sm:$0xff]  }
 0x2cf   : > { %3583 = vmatprep.subr.bf16.mxu0 %v9758_v24  ;;  %v9828_v22 = vld [vmem:[#allocation11 + $0x220] ss:$16 sps:$4 sm:$0xff]  }
 0x2d0   : > { %v9834_v24 = vld [vmem:[#allocation11 + $0x200] ss:$16 sps:$4 sm:$0xff]  }
 0x2d1   : > { %2745 = vmatpush1.bf16.msra.mxu1 %v9708_v17  ;;  %v9812_v17 = vld [vmem:[#allocation11 + $0x284] ss:$16 sps:$4 sm:$0xff]  }
 0x2d2   : > { %2746 = vmatprep.subr.bf16.mxu1 %v9713_v19  ;;  %3584 = vmatpush1.bf16.msra.mxu0 %v9756_v26  ;;  %v9818_v19 = vld [vmem:[#allocation11 + $0x264] ss:$16 sps:$4 sm:$0xff]   ;;  %v9840_v26 = vld [vmem:[#allocation11 + $0x3e0] ss:$16 sps:$4 sm:$0xff]  }
 0x2d3   : > { %3585 = vmatprep.subr.bf16.mxu0 %v9761_v28  ;;  %v9846_v28 = vld [vmem:[#allocation11 + $0x3c0] ss:$16 sps:$4 sm:$0xff]  }
 0x2d5   : > { %2747 = vmatpush1.bf16.msra.mxu1 %v9711_v21  ;;  %v9824_v21 = vld [vmem:[#allocation11 + $0x244] ss:$16 sps:$4 sm:$0xff]  }
 0x2d6   : > { %2748 = vmatprep.subr.bf16.mxu1 %v9716_v23  ;;  %3586 = vmatpush1.bf16.msra.mxu0 %v9759_v30  ;;  %v9830_v23 = vld [vmem:[#allocation11 + $0x224] ss:$16 sps:$4 sm:$0xff]   ;;  %v9852_v30 = vld [vmem:[#allocation11 + $0x3a0] ss:$16 sps:$4 sm:$0xff]  }
 0x2d7   : > { %3587 = vmatprep.subr.bf16.mxu0 %v9764_v32  ;;  %v9858_v32 = vld [vmem:[#allocation11 + $0x380] ss:$16 sps:$4 sm:$0xff]  }
 0x2d9   : > { %2749 = vmatpush1.bf16.msra.mxu1 %v9714_v25  ;;  %v9836_v25 = vld [vmem:[#allocation11 + $0x204] ss:$16 sps:$4 sm:$0xff]  }
 0x2da   : > { %2750 = vmatprep.subr.bf16.mxu1 %v9719_v27  ;;  %3588 = vmatpush1.bf16.msra.mxu0 %v9762_v34  ;;  %v9842_v27 = vld [vmem:[#allocation11 + $0x3e4] ss:$16 sps:$4 sm:$0xff]   ;;  %v9864_v34 = vld [vmem:[#allocation11 + $0x360] ss:$16 sps:$4 sm:$0xff]  }
 0x2db   : > { %3589 = vmatprep.subr.bf16.mxu0 %v9767_v37  ;;  %v9870_v37 = vld [vmem:[#allocation11 + $0x340] ss:$16 sps:$4 sm:$0xff]  }
 0x2dd   : > { %2751 = vmatpush1.bf16.msra.mxu1 %v9717_v29  ;;  %v9848_v29 = vld [vmem:[#allocation11 + $0x3c4] ss:$16 sps:$4 sm:$0xff]  }
 0x2de   : > { %2752 = vmatprep.subr.bf16.mxu1 %v9722_v31  ;;  %3590 = vmatpush1.bf16.msra.mxu0 %v9765_v39  ;;  %v9854_v31 = vld [vmem:[#allocation11 + $0x3a4] ss:$16 sps:$4 sm:$0xff]  }
 0x2df   : > { %3591 = vmatprep.subr.bf16.mxu0 %v9770_v41  ;;  %v9878_v39 = vld [vmem:[#allocation11 + $0x324] ss:$16 sps:$4 sm:$0xff]   ;;  %v9876_v41 = vld [vmem:[#allocation11 + $0x320] ss:$16 sps:$4 sm:$0xff]  }
 0x2e1   : > { %2753 = vmatpush2.bf16.msra.mxu1 %v9720_v33  ;;  %v9860_v33 = vld [vmem:[#allocation11 + $0x384] ss:$16 sps:$4 sm:$0xff]  }
 0x2e2   : > { %2754 = vmatprep.subr.bf16.mxu1 %v9725_v35  ;;  %3592 = vmatpush2.bf16.msra.mxu0 %v9768_v44  ;;  %v9866_v35 = vld [vmem:[#allocation11 + $0x364] ss:$16 sps:$4 sm:$0xff]  }
 0x2e3   : > { %3593 = vmatprep.subr.bf16.mxu0 %v9773_v46  ;;  %v9884_v44 = vld [vmem:[#allocation11 + $0x304] ss:$16 sps:$4 sm:$0xff]   ;;  %v9882_v46 = vld [vmem:[#allocation11 + $0x300] ss:$16 sps:$4 sm:$0xff]  }
 0x2e5   : > { %2755 = vmatpush2.bf16.msra.mxu1 %v9723_v38  ;;  %v9872_v38 = vld [vmem:[#allocation11 + $0x344] ss:$16 sps:$4 sm:$0xff]  }
 0x2e6   : > { %2756 = vmatprep.subr.bf16.mxu1 %v9728_v40  ;;  %3594 = vmatpush2.bf16.msra.mxu0 %v9771_v48  ;;  %v9890_v48 = vld [vmem:[#allocation11 + $0x2ec] ss:$16 sps:$4 sm:$0xff]  }
 0x2e7   : > { %3595 = vmatprep.subr.bf16.mxu0 %v9776_v50 }
 0x2e9   : > { %2757 = vmatpush2.bf16.msra.mxu1 %v9726_v42 }
 0x2ea   : > { %2758 = vmatprep.subr.bf16.mxu1 %v9731_v45  ;;  %3596 = vmatpush2.bf16.msra.mxu0 %v9774_v52 }
 0x2eb   : > { %3597 = vmatprep.subr.bf16.mxu0 %v9779_v55 }
 0x2ed   : > { %2759 = vmatpush2.bf16.msra.mxu1 %v9729_v47 }
 0x2ee   : > { %2760 = vmatprep.subr.bf16.mxu1 %v9734_v49  ;;  %3598 = vmatpush2.bf16.msra.mxu0 %v9777_v57  ;;  %v11178_v49 = vld [vmem:[%s11397_s6] sm:$0xf] }
 0x2ef   : > { %3599 = vmatprep.subr.bf16.mxu0 %v9782_v58  ;;  %v1956_v50 = vrot.slane %v11178_v49, %v11131_v12 }
 0x2f1   : > { %2761 = vmatpush2.bf16.msra.mxu1 %v9732_v51  ;;  %v1960_v51 = vrot.slane %v11178_v49, %v11137_v14 }
 0x2f2   : > { %2762 = vmatprep.subr.bf16.mxu1 %v9737_v53  ;;  %3600 = vmatpush2.bf16.msra.mxu0 %v9780_v59 }
 0x2f3   : > { %3601 = vmatprep.subr.bf16.mxu0 %v9785_v60 }
 0x2f5   : > { %2763 = vmatpush2.bf16.msra.mxu1 %v9735_v56 }
 0x2f6   : > { %2764 = vmatprep.subr.bf16.mxu1 %v9740_v43  ;;  %3602 = vmatpush2.bf16.msra.mxu0 %v9783_v63 }
 0x2f7   : > { %3603 = vmatprep.subr.bf16.mxu0 %v9788_v0 }
 0x2f9   : > { %2765 = vmatpush2.bf16.msra.mxu1 %v9738_v36 }
 0x2fa   : > { %2766 = vmatprep.subr.bf16.mxu1 %v9743_v54  ;;  %3604 = vmatpush2.bf16.msra.mxu0 %v9786_v1 }
 0x2fb   : > { %3605 = vmatprep.subr.bf16.mxu0 %v9791_v2  ;;  %v9795_v2 = vld [vmem:[#allocation11 + $0xe8] ss:$16 sps:$4 sm:$0xff]  }
 0x2fd   : > { %2767 = vmatpush2.bf16.msra.mxu1 %v9741_v61 }
 0x2fe   : > { %3606 = vmatpush2.bf16.msra.mxu0 %v9789_v3  ;;  %3616 = vmatprep.subr.bf16.mxu1 %v9794_v5  ;;  %v9801_v5 = vld [vmem:[#allocation11 + $0xc8] ss:$16 sps:$4 sm:$0xff]  }
 0x2ff   : > { %3657 = vmatprep.subr.bf16.mxu0 %v9797_v6  ;;  %v9809_v6 = vld [vmem:[#allocation11 + $0xac] ss:$16 sps:$4 sm:$0xff]  }
 0x300   : > { %2769 = vmatmul.mubr.bf16.vlgmr.msra.gmra.mxu1 %v11170_v62  ;;  %v9806_v62 = vld [vmem:[#allocation11 + $0x2a4] ss:$16 sps:$4 sm:$0xff]  }
 0x301   : > { %3617 = vmatpush1.bf16.msra.mxu1 %v9792_v4  ;;  %v9803_v4 = vld [vmem:[#allocation11 + $0xcc] ss:$16 sps:$4 sm:$0xff]  }
 0x302   : > { %3618 = vmatprep.subr.bf16.mxu1 %v9800_v11  ;;  %v9815_v11 = vld [vmem:[#allocation11 + $0x8c] ss:$16 sps:$4 sm:$0xff]  }
 0x305   : > { %3619 = vmatpush1.bf16.msra.mxu1 %v9798_v8  ;;  %v9807_v8 = vld [vmem:[#allocation11 + $0xa8] ss:$16 sps:$4 sm:$0xff]  }
 0x306   : > { %3620 = vmatprep.subr.bf16.mxu1 %v9806_v62  ;;  %v9821_v62 = vld [vmem:[#allocation11 + $0x6c] ss:$16 sps:$4 sm:$0xff]  }
 0x309   : > { %3621 = vmatpush1.bf16.msra.mxu1 %v9804_v16  ;;  %v9813_v16 = vld [vmem:[#allocation11 + $0x88] ss:$16 sps:$4 sm:$0xff]  }
 0x30a   : > { %3622 = vmatprep.subr.bf16.mxu1 %v9812_v17  ;;  %v9827_v17 = vld [vmem:[#allocation11 + $0x4c] ss:$16 sps:$4 sm:$0xff]  }
 0x30d   : > { %3623 = vmatpush1.bf16.msra.mxu1 %v9810_v7  ;;  %v9819_v7 = vld [vmem:[#allocation11 + $0x68] ss:$16 sps:$4 sm:$0xff]  }
 0x30e   : > { %3624 = vmatprep.subr.bf16.mxu1 %v9818_v19  ;;  %v9833_v19 = vld [vmem:[#allocation11 + $0x2c] ss:$16 sps:$4 sm:$0xff]  }
 0x311   : > { %3625 = vmatpush1.bf16.msra.mxu1 %v9816_v18  ;;  %v9825_v18 = vld [vmem:[#allocation11 + $0x48] ss:$16 sps:$4 sm:$0xff]  }
 0x312   : > { %3626 = vmatprep.subr.bf16.mxu1 %v9824_v21  ;;  %v9839_v21 = vld [vmem:[#allocation11 + $0xc] ss:$16 sps:$4 sm:$0xff]  }
 0x315   : > { %3627 = vmatpush1.bf16.msra.mxu1 %v9822_v20  ;;  %v9831_v20 = vld [vmem:[#allocation11 + $0x28] ss:$16 sps:$4 sm:$0xff]  }
 0x316   : > { %3628 = vmatprep.subr.bf16.mxu1 %v9830_v23  ;;  %v9845_v23 = vld [vmem:[#allocation11 + $0x1ec] ss:$16 sps:$4 sm:$0xff]  }
 0x319   : > { %3629 = vmatpush1.bf16.msra.mxu1 %v9828_v22  ;;  %v9837_v22 = vld [vmem:[#allocation11 + $0x8] ss:$16 sps:$4 sm:$0xff]  }
 0x31a   : > { %3630 = vmatprep.subr.bf16.mxu1 %v9836_v25  ;;  %v9851_v25 = vld [vmem:[#allocation11 + $0x1cc] ss:$16 sps:$4 sm:$0xff]  }
 0x31d   : > { %3631 = vmatpush1.bf16.msra.mxu1 %v9834_v24  ;;  %v9843_v24 = vld [vmem:[#allocation11 + $0x1e8] ss:$16 sps:$4 sm:$0xff]  }
 0x31e   : > { %3632 = vmatprep.subr.bf16.mxu1 %v9842_v27  ;;  %v9857_v27 = vld [vmem:[#allocation11 + $0x1ac] ss:$16 sps:$4 sm:$0xff]  }
 0x321   : > { %3633 = vmatpush2.bf16.msra.mxu1 %v9840_v26  ;;  %v9849_v26 = vld [vmem:[#allocation11 + $0x1c8] ss:$16 sps:$4 sm:$0xff]  }
 0x322   : > { %3634 = vmatprep.subr.bf16.mxu1 %v9848_v29  ;;  %v9863_v29 = vld [vmem:[#allocation11 + $0x18c] ss:$16 sps:$4 sm:$0xff]  }
 0x325   : > { %3635 = vmatpush2.bf16.msra.mxu1 %v9846_v28  ;;  %v9855_v28 = vld [vmem:[#allocation11 + $0x1a8] ss:$16 sps:$4 sm:$0xff]  }
 0x326   : > { %3636 = vmatprep.subr.bf16.mxu1 %v9854_v31  ;;  %v9869_v31 = vld [vmem:[#allocation11 + $0x16c] ss:$16 sps:$4 sm:$0xff]  }
 0x329   : > { %3637 = vmatpush2.bf16.msra.mxu1 %v9852_v30  ;;  %v9861_v30 = vld [vmem:[#allocation11 + $0x188] ss:$16 sps:$4 sm:$0xff]  }
 0x32a   : > { %3638 = vmatprep.subr.bf16.mxu1 %v9860_v33  ;;  %v9875_v33 = vld [vmem:[#allocation11 + $0x14c] ss:$16 sps:$4 sm:$0xff]  }
 0x32d   : > { %3639 = vmatpush2.bf16.msra.mxu1 %v9858_v32  ;;  %v9867_v32 = vld [vmem:[#allocation11 + $0x168] ss:$16 sps:$4 sm:$0xff]  }
 0x32e   : > { %3640 = vmatprep.subr.bf16.mxu1 %v9866_v35  ;;  %v9873_v35 = vld [vmem:[#allocation11 + $0x148] ss:$16 sps:$4 sm:$0xff]  }
 0x331   : > { %3641 = vmatpush2.bf16.msra.mxu1 %v9864_v34  ;;  %v1964_v34 = vrot.slane %v11178_v49, %v11134_v13 }
 0x332   : > { %3642 = vmatprep.subr.bf16.mxu1 %v9872_v38  ;;  %v1968_v38 = vrot.slane %v11178_v49, %v11140_v15 }
 0x335   : > { %3643 = vmatpush2.bf16.msra.mxu1 %v9870_v37  ;;  %v9881_v37 = vld [vmem:[#allocation11 + $0x12c] ss:$16 sps:$4 sm:$0xff]  }
 0x336   : > { %3644 = vmatprep.subr.bf16.mxu1 %v9878_v39 }
 0x339   : > { %3645 = vmatpush2.bf16.msra.mxu1 %v9876_v41 }
 0x33a   : > { %3646 = vmatprep.subr.bf16.mxu1 %v9884_v44 }
 0x33d   : > { %3647 = vmatpush2.bf16.msra.mxu1 %v9882_v46 }
 0x33e   : > { %3698 = vmatprep.subr.bf16.mxu1 %v9890_v48  ;;  %v9885_v48 = vld [vmem:[#allocation11 + $0x108] ss:$16 sps:$4 sm:$0xff]  }
 0x340   : > { %v2647_v40 = vpop.f32.mrf.mxu0 }
 0x341   : > { %v2648_v52 = vadd.f32 %v2647_v40, %v1956_v50  ;;  %v9879_v40 = vld [vmem:[#allocation11 + $0x128] ss:$16 sps:$4 sm:$0xff]  }
 0x342   : > { %v2649_v42 = vpop.f32.mrf.mxu0 }
 0x343   : > { %v2650_v56 = vadd.f32 %v2649_v42, %v1960_v51  ;;  %v9887_v42 = vld [vmem:[#allocation11 + $0x10c] ss:$16 sps:$4 sm:$0xff]  }
 0x344   : > { %v2651_v45 = vpop.f32.mrf.mxu0 }
 0x346   : > { %v2652_v47 = vpop.f32.mrf.mxu0 }
 0x380   : > { %v2688_v53 = vpop.f32.mrf.mxu1  ;;  %v11184_v55 = vpop.f32.mrf.mxu0 }
 0x381   : > { %v2689_v57 = vadd.f32 %v2688_v53, %v2648_v52  ;;  %v2730_v39 = vadd.f32 %v11184_v55, %v1964_v34  ;;  %v9888_v55 = vld [vmem:[#allocation11 + $0x2e8] ss:$16 sps:$4 sm:$0xff]   ;;  %v9923_v34 = vld [vmem:[#allocation11 + $0x38c] ss:$16 sps:$4 sm:$0xff]  }
 0x382   : > { %v2690_v43 = vpop.f32.mrf.mxu1  ;;  %v11186_v58 = vpop.f32.mrf.mxu0 }
 0x383   : > { %v2691_v36 = vadd.f32 %v2690_v43, %v2650_v56  ;;  %v2777_v59 = vmax.f32 %v2689_v57, 0.0  ;;  %v2732_v44 = vadd.f32 %v11186_v58, %v1968_v38  ;;  %v9893_v57 = vld [vmem:[#allocation11 + $0x2cc] ss:$16 sps:$4 sm:$0xff]   ;;  %v9891_v43 = vld [vmem:[#allocation11 + $0x2c8] ss:$16 sps:$4 sm:$0xff]  }
 0x384   : > { %v2692_v54 = vpop.f32.mrf.mxu1  ;;  %v2733_v60 = vpop.f32.mrf.mxu0  ;;  %v9896_v58 = vld [vmem:[#allocation11 + $0x2ac] ss:$16 sps:$4 sm:$0xff]   ;;  %v9963_v38 = vld [vmem:[#allocation14 + $0x1c0] ss:$16 sps:$4 sm:$0xff]  }
 0x385   : > { %v2778_v61 = vmax.f32 %v2691_v36, 0.0  ;;  %v11188_v3 = vpack.c.bf16 %v2777_v59, %v2777_v59  ;;  %v9894_v36 = vld [vmem:[#allocation11 + $0x2a8] ss:$16 sps:$4 sm:$0xff]   ;;  %v9899_v59 = vld [vmem:[#allocation11 + $0x28c] ss:$16 sps:$4 sm:$0xff]  }
 0x386   : > { %v2693_v63 = vpop.f32.mrf.mxu1  ;;  %v2734_v0 = vpop.f32.mrf.mxu0  ;;  %v9936_v54 = vld [vmem:[#allocation14 + $0xe0] ss:$16 sps:$4 sm:$0xff]   ;;  %v9938_v60 = vld [vmem:[#allocation14 + $0xe4] ss:$16 sps:$4 sm:$0xff]  }
 0x387   : > { %v2782_v1 = vpack.c.bf16 %v2778_v61, %v2778_v61  ;;  %v9941_v61 = vld [vmem:[#allocation14 + $0xc4] ss:$16 sps:$4 sm:$0xff]   ;;  %v9939_v0 = vld [vmem:[#allocation14 + $0xc0] ss:$16 sps:$4 sm:$0xff]  }
 0x388   : > { %v9897_v63 = vld [vmem:[#allocation11 + $0x288] ss:$16 sps:$4 sm:$0xff]  }
 0x389   : > { %3607 = vmatprep.mubr.bf16.mxu0 %v2782_v1 }
 0x38a   : > { %3608 = vmatmul.mubr.bf16.vlgmr.msra.gmra.mxu0 %v11188_v3 }
 0x38b   : > { %3658 = vmatpush1.bf16.msra.mxu0 %v9795_v2  ;;  %3689 = vmatprep.mubr.bf16.mxu0 %v2782_v1  ;;  %v9902_v1 = vld [vmem:[#allocation11 + $0x26c] ss:$16 sps:$4 sm:$0xff]   ;;  %v9944_v2 = vld [vmem:[#allocation14 + $0xa4] ss:$16 sps:$4 sm:$0xff]  }
 0x38c   : > { %3659 = vmatprep.subr.bf16.mxu0 %v9803_v4  ;;  %v9942_v4 = vld [vmem:[#allocation14 + $0xa0] ss:$16 sps:$4 sm:$0xff]  }
 0x38f   : > { %3660 = vmatpush1.bf16.msra.mxu0 %v9801_v5  ;;  %v9905_v5 = vld [vmem:[#allocation11 + $0x24c] ss:$16 sps:$4 sm:$0xff]  }
 0x390   : > { %3661 = vmatprep.subr.bf16.mxu0 %v9809_v6  ;;  %v9947_v6 = vld [vmem:[#allocation14 + $0x84] ss:$16 sps:$4 sm:$0xff]  }
 0x393   : > { %3662 = vmatpush1.bf16.msra.mxu0 %v9807_v8  ;;  %v9903_v8 = vld [vmem:[#allocation11 + $0x248] ss:$16 sps:$4 sm:$0xff]  }
 0x394   : > { %3663 = vmatprep.subr.bf16.mxu0 %v9815_v11  ;;  %v9945_v11 = vld [vmem:[#allocation14 + $0x80] ss:$16 sps:$4 sm:$0xff]  }
 0x397   : > { %3664 = vmatpush1.bf16.msra.mxu0 %v9813_v16  ;;  %v9908_v16 = vld [vmem:[#allocation11 + $0x22c] ss:$16 sps:$4 sm:$0xff]  }
 0x398   : > { %3665 = vmatprep.subr.bf16.mxu0 %v9821_v62  ;;  %v9950_v62 = vld [vmem:[#allocation14 + $0x64] ss:$16 sps:$4 sm:$0xff]  }
 0x39b   : > { %3666 = vmatpush1.bf16.msra.mxu0 %v9819_v7  ;;  %v9906_v7 = vld [vmem:[#allocation11 + $0x228] ss:$16 sps:$4 sm:$0xff]  }
 0x39c   : > { %3667 = vmatprep.subr.bf16.mxu0 %v9827_v17  ;;  %v9948_v17 = vld [vmem:[#allocation14 + $0x60] ss:$16 sps:$4 sm:$0xff]  }
 0x39f   : > { %3668 = vmatpush1.bf16.msra.mxu0 %v9825_v18  ;;  %v9911_v18 = vld [vmem:[#allocation11 + $0x20c] ss:$16 sps:$4 sm:$0xff]  }
 0x3a0   : > { %3669 = vmatprep.subr.bf16.mxu0 %v9833_v19  ;;  %v9953_v19 = vld [vmem:[#allocation14 + $0x44] ss:$16 sps:$4 sm:$0xff]  }
 0x3a3   : > { %3670 = vmatpush1.bf16.msra.mxu0 %v9831_v20  ;;  %v9909_v20 = vld [vmem:[#allocation11 + $0x208] ss:$16 sps:$4 sm:$0xff]  }
 0x3a4   : > { %3671 = vmatprep.subr.bf16.mxu0 %v9839_v21  ;;  %v9951_v21 = vld [vmem:[#allocation14 + $0x40] ss:$16 sps:$4 sm:$0xff]  }
 0x3a7   : > { %3672 = vmatpush1.bf16.msra.mxu0 %v9837_v22  ;;  %v9914_v22 = vld [vmem:[#allocation11 + $0x3ec] ss:$16 sps:$4 sm:$0xff]  }
 0x3a8   : > { %3673 = vmatprep.subr.bf16.mxu0 %v9845_v23  ;;  %v9956_v23 = vld [vmem:[#allocation14 + $0x24] ss:$16 sps:$4 sm:$0xff]  }
 0x3ab   : > { %3674 = vmatpush2.bf16.msra.mxu0 %v9843_v24  ;;  %v9912_v24 = vld [vmem:[#allocation11 + $0x3e8] ss:$16 sps:$4 sm:$0xff]  }
 0x3ac   : > { %3675 = vmatprep.subr.bf16.mxu0 %v9851_v25  ;;  %v9954_v25 = vld [vmem:[#allocation14 + $0x20] ss:$16 sps:$4 sm:$0xff]  }
 0x3af   : > { %3676 = vmatpush2.bf16.msra.mxu0 %v9849_v26  ;;  %v9917_v26 = vld [vmem:[#allocation11 + $0x3cc] ss:$16 sps:$4 sm:$0xff]  }
 0x3b0   : > { %3677 = vmatprep.subr.bf16.mxu0 %v9857_v27  ;;  %v9959_v27 = vld [vmem:[#allocation14 + $0x4] ss:$16 sps:$4 sm:$0xff]  }
 0x3b3   : > { %3678 = vmatpush2.bf16.msra.mxu0 %v9855_v28  ;;  %v9915_v28 = vld [vmem:[#allocation11 + $0x3c8] ss:$16 sps:$4 sm:$0xff]  }
 0x3b4   : > { %3679 = vmatprep.subr.bf16.mxu0 %v9863_v29  ;;  %v9957_v29 = vld [vmem:[#allocation14] ss:$16 sps:$4 sm:$0xff]  }
 0x3b7   : > { %3680 = vmatpush2.bf16.msra.mxu0 %v9861_v30  ;;  %v9920_v30 = vld [vmem:[#allocation11 + $0x3ac] ss:$16 sps:$4 sm:$0xff]  }
 0x3b8   : > { %3681 = vmatprep.subr.bf16.mxu0 %v9869_v31  ;;  %v9962_v31 = vld [vmem:[#allocation14 + $0x1e4] ss:$16 sps:$4 sm:$0xff]  }
 0x3bb   : > { %3682 = vmatpush2.bf16.msra.mxu0 %v9867_v32  ;;  %v9918_v32 = vld [vmem:[#allocation11 + $0x3a8] ss:$16 sps:$4 sm:$0xff]  }
 0x3bc   : > { %3683 = vmatprep.subr.bf16.mxu0 %v9875_v33  ;;  %v9960_v33 = vld [vmem:[#allocation14 + $0x1e0] ss:$16 sps:$4 sm:$0xff]  }
 0x3bf   : > { %3684 = vmatpush2.bf16.msra.mxu0 %v9873_v35  ;;  %v9965_v35 = vld [vmem:[#allocation14 + $0x1c4] ss:$16 sps:$4 sm:$0xff]  }
 0x3c0   : > { %v2770_v41 = vpop.f32.mrf.mxu1  ;;  %3685 = vmatprep.subr.bf16.mxu0 %v9881_v37  ;;  %v9921_v37 = vld [vmem:[#allocation11 + $0x388] ss:$16 sps:$4 sm:$0xff]  }
 0x3c1   : > { %v2771_v45 = vadd.f32 %v2770_v41, %v2730_v39  ;;  %v9926_v39 = vld [vmem:[#allocation11 + $0x36c] ss:$16 sps:$4 sm:$0xff]   ;;  %v9924_v41 = vld [vmem:[#allocation11 + $0x368] ss:$16 sps:$4 sm:$0xff]  }
 0x3c2   : > { %v2772_v46 = vpop.f32.mrf.mxu1 }
 0x3c3   : > { %v2773_v47 = vadd.f32 %v2772_v46, %v2732_v44  ;;  %3686 = vmatpush2.bf16.msra.mxu0 %v9879_v40  ;;  %v2779_v50 = vmax.f32 %v2771_v45, 0.0  ;;  %v9968_v40 = vld [vmem:[#allocation14 + $0x1a4] ss:$16 sps:$4 sm:$0xff]   ;;  %v9929_v44 = vld [vmem:[#allocation11 + $0x34c] ss:$16 sps:$4 sm:$0xff]  }
 0x3c4   : > { %v2774_v51 = vpop.f32.mrf.mxu1  ;;  %3687 = vmatprep.subr.bf16.mxu0 %v9887_v42  ;;  %v9966_v42 = vld [vmem:[#allocation14 + $0x1a0] ss:$16 sps:$4 sm:$0xff]   ;;  %v9971_v45 = vld [vmem:[#allocation14 + $0x184] ss:$16 sps:$4 sm:$0xff]  }
 0x3c5   : > { %v2780_v52 = vmax.f32 %v2773_v47, 0.0  ;;  %v11197_v56 = vpack.c.bf16 %v2779_v50, %v2779_v50  ;;  %v9927_v46 = vld [vmem:[#allocation11 + $0x348] ss:$16 sps:$4 sm:$0xff]   ;;  %v9969_v47 = vld [vmem:[#allocation14 + $0x180] ss:$16 sps:$4 sm:$0xff]  }
 0x3c6   : > { %v2775_v53 = vpop.f32.mrf.mxu1  ;;  %v9974_v50 = vld [vmem:[#allocation14 + $0x164] ss:$16 sps:$4 sm:$0xff]  }
 0x3c7   : > { %v2784_v49 = vpack.c.bf16 %v2780_v52, %v2780_v52  ;;  %3688 = vmatpush2.bf16.msra.mxu0 %v9885_v48  ;;  %v9932_v48 = vld [vmem:[#allocation11 + $0x32c] ss:$16 sps:$4 sm:$0xff]   ;;  %v9930_v51 = vld [vmem:[#allocation11 + $0x328] ss:$16 sps:$4 sm:$0xff]   ;;  %v9972_v52 = vld [vmem:[#allocation14 + $0x160] ss:$16 sps:$4 sm:$0xff]  }
 0x3c8   : > { %4537 = vmatprep.subr.bf16.mxu0 %v9938_v60  ;;  %v9935_v53 = vld [vmem:[#allocation11 + $0x30c] ss:$16 sps:$4 sm:$0xff]   ;;  %v9986_v60 = vld [vmem:[#allocation14 + $0x2e4] ss:$16 sps:$4 sm:$0xff]  }
 0x3c9   : > { %3648 = vmatprep.mubr.bf16.mxu1 %v2784_v49 }
 0x3ca   : > { %3649 = vmatmul.mubr.bf16.vlgmr.msra.gmra.mxu1 %v11197_v56  ;;  %3690 = vmatmul.mubr.bf16.vlgmr.msra.gmra.mxu0 %v11188_v3  ;;  %v9900_v3 = vld [vmem:[#allocation11 + $0x268] ss:$16 sps:$4 sm:$0xff]  }
 0x3cb   : > { %3699 = vmatpush1.bf16.msra.mxu1 %v9888_v55  ;;  %3730 = vmatprep.mubr.bf16.mxu1 %v2784_v49  ;;  %v9977_v49 = vld [vmem:[#allocation14 + $0x144] ss:$16 sps:$4 sm:$0xff]  }
 0x3cc   : > { %3700 = vmatprep.subr.bf16.mxu1 %v9893_v57  ;;  %4538 = vmatpush1.bf16.msra.mxu0 %v9936_v54  ;;  %v9933_v55 = vld [vmem:[#allocation11 + $0x308] ss:$16 sps:$4 sm:$0xff]   ;;  %v9975_v57 = vld [vmem:[#allocation14 + $0x140] ss:$16 sps:$4 sm:$0xff]  }
 0x3cd   : > { %4539 = vmatprep.subr.bf16.mxu0 %v9941_v61  ;;  %v9984_v54 = vld [vmem:[#allocation14 + $0x2e0] ss:$16 sps:$4 sm:$0xff]   ;;  %v9989_v61 = vld [vmem:[#allocation14 + $0xec] ss:$16 sps:$4 sm:$0xff]  }
 0x3cf   : > { %3701 = vmatpush1.bf16.msra.mxu1 %v9891_v43  ;;  %v9980_v43 = vld [vmem:[#allocation14 + $0x124] ss:$16 sps:$4 sm:$0xff]  }
 0x3d0   : > { %3702 = vmatprep.subr.bf16.mxu1 %v9896_v58  ;;  %4540 = vmatpush1.bf16.msra.mxu0 %v9939_v0  ;;  %v9978_v58 = vld [vmem:[#allocation14 + $0x120] ss:$16 sps:$4 sm:$0xff]   ;;  %v9992_v0 = vld [vmem:[#allocation14 + $0x2c4] ss:$16 sps:$4 sm:$0xff]  }
 0x3d1   : > { %4541 = vmatprep.subr.bf16.mxu0 %v9944_v2  ;;  %v10002_v2 = vld [vmem:[#allocation14 + $0x280] ss:$16 sps:$4 sm:$0xff]  }
 0x3d3   : > { %3703 = vmatpush1.bf16.msra.mxu1 %v9894_v36  ;;  %v9983_v36 = vld [vmem:[#allocation14 + $0x104] ss:$16 sps:$4 sm:$0xff]  }
 0x3d4   : > { %3704 = vmatprep.subr.bf16.mxu1 %v9899_v59  ;;  %4542 = vmatpush1.bf16.msra.mxu0 %v9942_v4  ;;  %v9981_v59 = vld [vmem:[#allocation14 + $0x100] ss:$16 sps:$4 sm:$0xff]  }
 0x3d5   : > { %4543 = vmatprep.subr.bf16.mxu0 %v9947_v6  ;;  %v10008_v4 = vld [vmem:[#allocation14 + $0x260] ss:$16 sps:$4 sm:$0xff]  }
 0x3d6   : > { %v10014_v6 = vld [vmem:[#allocation14 + $0x240] ss:$16 sps:$4 sm:$0xff]  }
 0x3d7   : > { %3705 = vmatpush1.bf16.msra.mxu1 %v9897_v63  ;;  %v9990_v63 = vld [vmem:[#allocation14 + $0x2c0] ss:$16 sps:$4 sm:$0xff]  }
 0x3d8   : > { %3706 = vmatprep.subr.bf16.mxu1 %v9902_v1  ;;  %4544 = vmatpush1.bf16.msra.mxu0 %v9945_v11  ;;  %v9996_v1 = vld [vmem:[#allocation14 + $0x2a0] ss:$16 sps:$4 sm:$0xff]  }
 0x3d9   : > { %4545 = vmatprep.subr.bf16.mxu0 %v9950_v62  ;;  %v10020_v11 = vld [vmem:[#allocation14 + $0x220] ss:$16 sps:$4 sm:$0xff]  }
 0x3da   : > { %v10026_v62 = vld [vmem:[#allocation14 + $0x200] ss:$16 sps:$4 sm:$0xff]  }
 0x3db   : > { %3707 = vmatpush1.bf16.msra.mxu1 %v9900_v3  ;;  %v10004_v3 = vld [vmem:[#allocation14 + $0x284] ss:$16 sps:$4 sm:$0xff]  }
 0x3dc   : > { %3708 = vmatprep.subr.bf16.mxu1 %v9905_v5  ;;  %4546 = vmatpush1.bf16.msra.mxu0 %v9948_v17  ;;  %v10010_v5 = vld [vmem:[#allocation14 + $0x264] ss:$16 sps:$4 sm:$0xff]   ;;  %v10032_v17 = vld [vmem:[#allocation14 + $0x3e0] ss:$16 sps:$4 sm:$0xff]  }
 0x3dd   : > { %4547 = vmatprep.subr.bf16.mxu0 %v9953_v19  ;;  %v10038_v19 = vld [vmem:[#allocation14 + $0x3c0] ss:$16 sps:$4 sm:$0xff]  }
 0x3df   : > { %3709 = vmatpush1.bf16.msra.mxu1 %v9903_v8  ;;  %v10016_v8 = vld [vmem:[#allocation14 + $0x244] ss:$16 sps:$4 sm:$0xff]  }
 0x3e0   : > { %3710 = vmatprep.subr.bf16.mxu1 %v9908_v16  ;;  %4548 = vmatpush1.bf16.msra.mxu0 %v9951_v21  ;;  %v10022_v16 = vld [vmem:[#allocation14 + $0x224] ss:$16 sps:$4 sm:$0xff]   ;;  %v10044_v21 = vld [vmem:[#allocation14 + $0x3a0] ss:$16 sps:$4 sm:$0xff]  }
 0x3e1   : > { %4549 = vmatprep.subr.bf16.mxu0 %v9956_v23  ;;  %v10050_v23 = vld [vmem:[#allocation14 + $0x380] ss:$16 sps:$4 sm:$0xff]  }
 0x3e3   : > { %3711 = vmatpush1.bf16.msra.mxu1 %v9906_v7  ;;  %v10028_v7 = vld [vmem:[#allocation14 + $0x204] ss:$16 sps:$4 sm:$0xff]  }
 0x3e4   : > { %3712 = vmatprep.subr.bf16.mxu1 %v9911_v18  ;;  %4550 = vmatpush1.bf16.msra.mxu0 %v9954_v25  ;;  %v10034_v18 = vld [vmem:[#allocation14 + $0x3e4] ss:$16 sps:$4 sm:$0xff]   ;;  %v10056_v25 = vld [vmem:[#allocation14 + $0x360] ss:$16 sps:$4 sm:$0xff]  }
 0x3e5   : > { %4551 = vmatprep.subr.bf16.mxu0 %v9959_v27  ;;  %v10062_v27 = vld [vmem:[#allocation14 + $0x340] ss:$16 sps:$4 sm:$0xff]  }
 0x3e7   : > { %3713 = vmatpush1.bf16.msra.mxu1 %v9909_v20  ;;  %v10040_v20 = vld [vmem:[#allocation14 + $0x3c4] ss:$16 sps:$4 sm:$0xff]  }
 0x3e8   : > { %3714 = vmatprep.subr.bf16.mxu1 %v9914_v22  ;;  %4552 = vmatpush1.bf16.msra.mxu0 %v9957_v29  ;;  %v10046_v22 = vld [vmem:[#allocation14 + $0x3a4] ss:$16 sps:$4 sm:$0xff]  }
 0x3e9   : > { %4553 = vmatprep.subr.bf16.mxu0 %v9962_v31  ;;  %v10070_v29 = vld [vmem:[#allocation14 + $0x324] ss:$16 sps:$4 sm:$0xff]   ;;  %v10068_v31 = vld [vmem:[#allocation14 + $0x320] ss:$16 sps:$4 sm:$0xff]  }
 0x3eb   : > { %3715 = vmatpush2.bf16.msra.mxu1 %v9912_v24  ;;  %v10052_v24 = vld [vmem:[#allocation14 + $0x384] ss:$16 sps:$4 sm:$0xff]  }
 0x3ec   : > { %3716 = vmatprep.subr.bf16.mxu1 %v9917_v26  ;;  %4554 = vmatpush2.bf16.msra.mxu0 %v9960_v33  ;;  %v10058_v26 = vld [vmem:[#allocation14 + $0x364] ss:$16 sps:$4 sm:$0xff]  }
 0x3ed   : > { %4555 = vmatprep.subr.bf16.mxu0 %v9965_v35  ;;  %v10076_v33 = vld [vmem:[#allocation14 + $0x304] ss:$16 sps:$4 sm:$0xff]   ;;  %v10074_v35 = vld [vmem:[#allocation14 + $0x300] ss:$16 sps:$4 sm:$0xff]  }
 0x3ef   : > { %3717 = vmatpush2.bf16.msra.mxu1 %v9915_v28  ;;  %v10064_v28 = vld [vmem:[#allocation14 + $0x344] ss:$16 sps:$4 sm:$0xff]  }
 0x3f0   : > { %3718 = vmatprep.subr.bf16.mxu1 %v9920_v30  ;;  %4556 = vmatpush2.bf16.msra.mxu0 %v9963_v38  ;;  %v10082_v38 = vld [vmem:[#allocation14 + $0x2ec] ss:$16 sps:$4 sm:$0xff]  }
 0x3f1   : > { %4557 = vmatprep.subr.bf16.mxu0 %v9968_v40 }
 0x3f3   : > { %3719 = vmatpush2.bf16.msra.mxu1 %v9918_v32 }
 0x3f4   : > { %3720 = vmatprep.subr.bf16.mxu1 %v9923_v34  ;;  %4558 = vmatpush2.bf16.msra.mxu0 %v9966_v42 }
 0x3f5   : > { %4559 = vmatprep.subr.bf16.mxu0 %v9971_v45 }
 0x3f7   : > { %3721 = vmatpush2.bf16.msra.mxu1 %v9921_v37 }
 0x3f8   : > { %3722 = vmatprep.subr.bf16.mxu1 %v9926_v39  ;;  %4560 = vmatpush2.bf16.msra.mxu0 %v9969_v47  ;;  %v11202_v39 = vld [vmem:[#allocation13] sm:$0xf] }
 0x3f9   : > { %4561 = vmatprep.subr.bf16.mxu0 %v9974_v50  ;;  %v2918_v40 = vrot.slane %v11202_v39, %v11131_v12 }
 0x3fb   : > { %3723 = vmatpush2.bf16.msra.mxu1 %v9924_v41  ;;  %v2922_v41 = vrot.slane %v11202_v39, %v11137_v14 }
 0x3fc   : > { %3724 = vmatprep.subr.bf16.mxu1 %v9929_v44  ;;  %4562 = vmatpush2.bf16.msra.mxu0 %v9972_v52 }
 0x3fd   : > { %4563 = vmatprep.subr.bf16.mxu0 %v9977_v49 }
 0x3ff   : > { %3725 = vmatpush2.bf16.msra.mxu1 %v9927_v46 }
 0x400   : > { %3726 = vmatprep.subr.bf16.mxu1 %v9932_v48  ;;  %4564 = vmatpush2.bf16.msra.mxu0 %v9975_v57 }
 0x401   : > { %4565 = vmatprep.subr.bf16.mxu0 %v9980_v43 }
 0x403   : > { %3727 = vmatpush2.bf16.msra.mxu1 %v9930_v51 }
 0x404   : > { %3728 = vmatprep.subr.bf16.mxu1 %v9935_v53  ;;  %4566 = vmatpush2.bf16.msra.mxu0 %v9978_v58 }
 0x405   : > { %4567 = vmatprep.subr.bf16.mxu0 %v9983_v36  ;;  %v9987_v36 = vld [vmem:[#allocation14 + $0xe8] ss:$16 sps:$4 sm:$0xff]  }
 0x407   : > { %3729 = vmatpush2.bf16.msra.mxu1 %v9933_v55 }
 0x408   : > { %4568 = vmatpush2.bf16.msra.mxu0 %v9981_v59  ;;  %4578 = vmatprep.subr.bf16.mxu1 %v9986_v60  ;;  %v9993_v60 = vld [vmem:[#allocation14 + $0xc8] ss:$16 sps:$4 sm:$0xff]  }
 0x409   : > { %4619 = vmatprep.subr.bf16.mxu0 %v9989_v61  ;;  %v10001_v61 = vld [vmem:[#allocation14 + $0xac] ss:$16 sps:$4 sm:$0xff]  }
 0x40a   : > { %3731 = vmatmul.mubr.bf16.vlgmr.msra.gmra.mxu1 %v11197_v56  ;;  %v9998_v56 = vld [vmem:[#allocation14 + $0x2a4] ss:$16 sps:$4 sm:$0xff]  }
 0x40b   : > { %4579 = vmatpush1.bf16.msra.mxu1 %v9984_v54  ;;  %v9995_v54 = vld [vmem:[#allocation14 + $0xcc] ss:$16 sps:$4 sm:$0xff]  }
 0x40c   : > { %4580 = vmatprep.subr.bf16.mxu1 %v9992_v0  ;;  %v10007_v0 = vld [vmem:[#allocation14 + $0x8c] ss:$16 sps:$4 sm:$0xff]  }
 0x40f   : > { %4581 = vmatpush1.bf16.msra.mxu1 %v9990_v63  ;;  %v9999_v63 = vld [vmem:[#allocation14 + $0xa8] ss:$16 sps:$4 sm:$0xff]  }
 0x410   : > { %4582 = vmatprep.subr.bf16.mxu1 %v9998_v56  ;;  %v10013_v56 = vld [vmem:[#allocation14 + $0x6c] ss:$16 sps:$4 sm:$0xff]  }
 0x413   : > { %4583 = vmatpush1.bf16.msra.mxu1 %v9996_v1  ;;  %v10005_v1 = vld [vmem:[#allocation14 + $0x88] ss:$16 sps:$4 sm:$0xff]  }
 0x414   : > { %4584 = vmatprep.subr.bf16.mxu1 %v10004_v3  ;;  %v10019_v3 = vld [vmem:[#allocation14 + $0x4c] ss:$16 sps:$4 sm:$0xff]  }
 0x417   : > { %4585 = vmatpush1.bf16.msra.mxu1 %v10002_v2  ;;  %v10011_v2 = vld [vmem:[#allocation14 + $0x68] ss:$16 sps:$4 sm:$0xff]  }
 0x418   : > { %4586 = vmatprep.subr.bf16.mxu1 %v10010_v5  ;;  %v10025_v5 = vld [vmem:[#allocation14 + $0x2c] ss:$16 sps:$4 sm:$0xff]  }
 0x41b   : > { %4587 = vmatpush1.bf16.msra.mxu1 %v10008_v4  ;;  %v10017_v4 = vld [vmem:[#allocation14 + $0x48] ss:$16 sps:$4 sm:$0xff]  }
 0x41c   : > { %4588 = vmatprep.subr.bf16.mxu1 %v10016_v8  ;;  %v10031_v8 = vld [vmem:[#allocation14 + $0xc] ss:$16 sps:$4 sm:$0xff]  }
 0x41f   : > { %4589 = vmatpush1.bf16.msra.mxu1 %v10014_v6  ;;  %v10023_v6 = vld [vmem:[#allocation14 + $0x28] ss:$16 sps:$4 sm:$0xff]  }
 0x420   : > { %4590 = vmatprep.subr.bf16.mxu1 %v10022_v16  ;;  %v10037_v16 = vld [vmem:[#allocation14 + $0x1ec] ss:$16 sps:$4 sm:$0xff]  }
 0x423   : > { %4591 = vmatpush1.bf16.msra.mxu1 %v10020_v11  ;;  %v10029_v11 = vld [vmem:[#allocation14 + $0x8] ss:$16 sps:$4 sm:$0xff]  }
 0x424   : > { %4592 = vmatprep.subr.bf16.mxu1 %v10028_v7  ;;  %v10043_v7 = vld [vmem:[#allocation14 + $0x1cc] ss:$16 sps:$4 sm:$0xff]  }
 0x427   : > { %4593 = vmatpush1.bf16.msra.mxu1 %v10026_v62  ;;  %v10035_v62 = vld [vmem:[#allocation14 + $0x1e8] ss:$16 sps:$4 sm:$0xff]  }
 0x428   : > { %4594 = vmatprep.subr.bf16.mxu1 %v10034_v18  ;;  %v10049_v18 = vld [vmem:[#allocation14 + $0x1ac] ss:$16 sps:$4 sm:$0xff]  }
 0x42b   : > { %4595 = vmatpush2.bf16.msra.mxu1 %v10032_v17  ;;  %v10041_v17 = vld [vmem:[#allocation14 + $0x1c8] ss:$16 sps:$4 sm:$0xff]  }
 0x42c   : > { %4596 = vmatprep.subr.bf16.mxu1 %v10040_v20  ;;  %v10055_v20 = vld [vmem:[#allocation14 + $0x18c] ss:$16 sps:$4 sm:$0xff]  }
 0x42f   : > { %4597 = vmatpush2.bf16.msra.mxu1 %v10038_v19  ;;  %v10047_v19 = vld [vmem:[#allocation14 + $0x1a8] ss:$16 sps:$4 sm:$0xff]  }
 0x430   : > { %4598 = vmatprep.subr.bf16.mxu1 %v10046_v22  ;;  %v10061_v22 = vld [vmem:[#allocation14 + $0x16c] ss:$16 sps:$4 sm:$0xff]  }
 0x433   : > { %4599 = vmatpush2.bf16.msra.mxu1 %v10044_v21  ;;  %v10053_v21 = vld [vmem:[#allocation14 + $0x188] ss:$16 sps:$4 sm:$0xff]  }
 0x434   : > { %4600 = vmatprep.subr.bf16.mxu1 %v10052_v24  ;;  %v10067_v24 = vld [vmem:[#allocation14 + $0x14c] ss:$16 sps:$4 sm:$0xff]  }
 0x437   : > { %4601 = vmatpush2.bf16.msra.mxu1 %v10050_v23  ;;  %v10059_v23 = vld [vmem:[#allocation14 + $0x168] ss:$16 sps:$4 sm:$0xff]  }
 0x438   : > { %4602 = vmatprep.subr.bf16.mxu1 %v10058_v26  ;;  %v10065_v26 = vld [vmem:[#allocation14 + $0x148] ss:$16 sps:$4 sm:$0xff]  }
 0x43b   : > { %4603 = vmatpush2.bf16.msra.mxu1 %v10056_v25  ;;  %v2926_v25 = vrot.slane %v11202_v39, %v11134_v13 }
 0x43c   : > { %4604 = vmatprep.subr.bf16.mxu1 %v10064_v28  ;;  %v2930_v28 = vrot.slane %v11202_v39, %v11140_v15 }
 0x43f   : > { %4605 = vmatpush2.bf16.msra.mxu1 %v10062_v27  ;;  %v10073_v27 = vld [vmem:[#allocation14 + $0x12c] ss:$16 sps:$4 sm:$0xff]  }
 0x440   : > { %4606 = vmatprep.subr.bf16.mxu1 %v10070_v29 }
 0x443   : > { %4607 = vmatpush2.bf16.msra.mxu1 %v10068_v31 }
 0x444   : > { %4608 = vmatprep.subr.bf16.mxu1 %v10076_v33 }
 0x447   : > { %4609 = vmatpush2.bf16.msra.mxu1 %v10074_v35 }
 0x448   : > { %4660 = vmatprep.subr.bf16.mxu1 %v10082_v38  ;;  %v10077_v38 = vld [vmem:[#allocation14 + $0x108] ss:$16 sps:$4 sm:$0xff]  }
 0x44a   : > { %v3609_v30 = vpop.f32.mrf.mxu0 }
 0x44b   : > { %v3610_v42 = vadd.f32 %v3609_v30, %v2918_v40  ;;  %v10071_v30 = vld [vmem:[#allocation14 + $0x128] ss:$16 sps:$4 sm:$0xff]  }
 0x44c   : > { %v3611_v32 = vpop.f32.mrf.mxu0 }
 0x44d   : > { %v3612_v46 = vadd.f32 %v3611_v32, %v2922_v41  ;;  %v10079_v32 = vld [vmem:[#allocation14 + $0x10c] ss:$16 sps:$4 sm:$0xff]  }
 0x44e   : > { %v3613_v34 = vpop.f32.mrf.mxu0 }
 0x450   : > { %v3614_v37 = vpop.f32.mrf.mxu0 }
 0x48a   : > { %v3650_v44 = vpop.f32.mrf.mxu1  ;;  %v11208_v45 = vpop.f32.mrf.mxu0 }
 0x48b   : > { %v3651_v47 = vadd.f32 %v3650_v44, %v3610_v42  ;;  %v3692_v29 = vadd.f32 %v11208_v45, %v2926_v25  ;;  %v10080_v45 = vld [vmem:[#allocation14 + $0x2e8] ss:$16 sps:$4 sm:$0xff]  }
 0x48c   : > { %v3652_v48 = vpop.f32.mrf.mxu1  ;;  %v11210_v50 = vpop.f32.mrf.mxu0  ;;  %v10101_v25 = vld [vmem:[#allocation14 + $0x208] ss:$16 sps:$4 sm:$0xff]  }
 0x48d   : > { %v3653_v51 = vadd.f32 %v3652_v48, %v3612_v46  ;;  %v3739_v52 = vmax.f32 %v3651_v47, 0.0  ;;  %v3694_v33 = vadd.f32 %v11210_v50, %v2930_v28  ;;  %v10085_v47 = vld [vmem:[#allocation14 + $0x2cc] ss:$16 sps:$4 sm:$0xff]   ;;  %v10083_v48 = vld [vmem:[#allocation14 + $0x2c8] ss:$16 sps:$4 sm:$0xff]  }
 0x48e   : > { %v3654_v53 = vpop.f32.mrf.mxu1  ;;  %v3695_v49 = vpop.f32.mrf.mxu0  ;;  %v10088_v50 = vld [vmem:[#allocation14 + $0x2ac] ss:$16 sps:$4 sm:$0xff]  }
 0x48f   : > { %v3740_v55 = vmax.f32 %v3653_v51, 0.0  ;;  %v11212_v59 = vpack.c.bf16 %v3739_v52, %v3739_v52  ;;  %v10086_v51 = vld [vmem:[#allocation14 + $0x2a8] ss:$16 sps:$4 sm:$0xff]   ;;  %v10091_v52 = vld [vmem:[#allocation14 + $0x28c] ss:$16 sps:$4 sm:$0xff]  }
 0x490   : > { %v3655_v57 = vpop.f32.mrf.mxu1  ;;  %v3696_v43 = vpop.f32.mrf.mxu0  ;;  %v4765_v53 = vld [vmem:[#allocation17 + $0x1c0] sm:$0xff] }
 0x491   : > { %v3744_v58 = vpack.c.bf16 %v3740_v55, %v3740_v55  ;;  %v4769_v49 = vld [vmem:[#allocation17 + $0x1e0] sm:$0xff] }
 0x492   : > { %v4757_v55 = vld [vmem:[#allocation17 + $0x180] sm:$0xff]  ;;  %v8779_v57 = vcombine.low %v4765_v53, %v4769_v49  ;;  %v8780_v43 = vcombine.high %v4765_v53, %v4769_v49  ;;  %v10118_v49 = vld [vmem:[#allocation14 + $0x36c] ss:$16 sps:$4 sm:$0xff]  }
 0x493   : > { %4569 = vmatprep.mubr.bf16.mxu0 %v3744_v58  ;;  %v10113_v53 = vld [vmem:[#allocation14 + $0x388] ss:$16 sps:$4 sm:$0xff]  }
 0x494   : > { %4570 = vmatmul.mubr.bf16.vlgmr.msra.gmra.mxu0 %v11212_v59 }
 0x495   : > { %4620 = vmatpush1.bf16.msra.mxu0 %v9987_v36  ;;  %4651 = vmatprep.mubr.bf16.mxu0 %v3744_v58  ;;  %v4761_v58 = vld [vmem:[#allocation17 + $0x1a0] sm:$0xff] }
 0x496   : > { %4621 = vmatprep.subr.bf16.mxu0 %v9995_v54  ;;  %v8772_v36 = vcombine.high %v4757_v55, %v4761_v58  ;;  %v4749_v54 = vld [vmem:[#allocation17 + $0x140] sm:$0xff] }
 0x499   : > { %4622 = vmatpush1.bf16.msra.mxu0 %v9993_v60  ;;  %v4753_v60 = vld [vmem:[#allocation17 + $0x160] sm:$0xff] }
 0x49a   : > { %4623 = vmatprep.subr.bf16.mxu0 %v10001_v61  ;;  %v10094_v61 = vld [vmem:[#allocation14 + $0x26c] ss:$16 sps:$4 sm:$0xff]  }
 0x49d   : > { %4624 = vmatpush1.bf16.msra.mxu0 %v9999_v63  ;;  %v8771_v63 = vcombine.low %v4757_v55, %v4761_v58  ;;  %v4809_v58 = vld [vmem:[#allocation17 + $0x320] sm:$0xff] }
 0x49e   : > { %4625 = vmatprep.subr.bf16.mxu0 %v10007_v0  ;;  %v8764_v0 = vcombine.high %v4749_v54, %v4753_v60 }
 0x4a1   : > { %4626 = vmatpush1.bf16.msra.mxu0 %v10005_v1  ;;  %v4741_v1 = vld [vmem:[#allocation17 + $0x100] sm:$0xff] }
 0x4a2   : > { %4627 = vmatprep.subr.bf16.mxu0 %v10013_v56  ;;  %v4745_v56 = vld [vmem:[#allocation17 + $0x120] sm:$0xff] }
 0x4a5   : > { %4628 = vmatpush1.bf16.msra.mxu0 %v10011_v2  ;;  %v10092_v2 = vld [vmem:[#allocation14 + $0x268] ss:$16 sps:$4 sm:$0xff]  }
 0x4a6   : > { %4629 = vmatprep.subr.bf16.mxu0 %v10019_v3  ;;  %v10097_v3 = vld [vmem:[#allocation14 + $0x24c] ss:$16 sps:$4 sm:$0xff]  }
 0x4a9   : > { %4630 = vmatpush1.bf16.msra.mxu0 %v10017_v4  ;;  %v8763_v4 = vcombine.low %v4749_v54, %v4753_v60  ;;  %v10121_v54 = vld [vmem:[#allocation14 + $0x34c] ss:$16 sps:$4 sm:$0xff]  }
 0x4aa   : > { %4631 = vmatprep.subr.bf16.mxu0 %v10025_v5  ;;  %v8756_v5 = vcombine.high %v4741_v1, %v4745_v56 }
 0x4ad   : > { %4632 = vmatpush1.bf16.msra.mxu0 %v10023_v6  ;;  %v4733_v6 = vld [vmem:[#allocation17 + $0xc0] sm:$0xff] }
 0x4ae   : > { %4633 = vmatprep.subr.bf16.mxu0 %v10031_v8  ;;  %v4737_v8 = vld [vmem:[#allocation17 + $0xe0] sm:$0xff] }
 0x4b1   : > { %4634 = vmatpush1.bf16.msra.mxu0 %v10029_v11  ;;  %v10095_v11 = vld [vmem:[#allocation14 + $0x248] ss:$16 sps:$4 sm:$0xff]  }
 0x4b2   : > { %4635 = vmatprep.subr.bf16.mxu0 %v10037_v16  ;;  %v10100_v16 = vld [vmem:[#allocation14 + $0x22c] ss:$16 sps:$4 sm:$0xff]  }
 0x4b5   : > { %4636 = vmatpush2.bf16.msra.mxu0 %v10035_v62  ;;  %v8755_v62 = vcombine.low %v4741_v1, %v4745_v56  ;;  %v10124_v1 = vld [vmem:[#allocation14 + $0x32c] ss:$16 sps:$4 sm:$0xff]  }
 0x4b6   : > { %4637 = vmatprep.subr.bf16.mxu0 %v10043_v7  ;;  %v8748_v7 = vcombine.high %v4733_v6, %v4737_v8 }
 0x4b9   : > { %4638 = vmatpush2.bf16.msra.mxu0 %v10041_v17  ;;  %v4725_v17 = vld [vmem:[#allocation17 + $0x80] sm:$0xff] }
 0x4ba   : > { %4639 = vmatprep.subr.bf16.mxu0 %v10049_v18  ;;  %v4729_v18 = vld [vmem:[#allocation17 + $0xa0] sm:$0xff] }
 0x4bd   : > { %4640 = vmatpush2.bf16.msra.mxu0 %v10047_v19  ;;  %v10098_v19 = vld [vmem:[#allocation14 + $0x228] ss:$16 sps:$4 sm:$0xff]  }
 0x4be   : > { %4641 = vmatprep.subr.bf16.mxu0 %v10055_v20  ;;  %v10103_v20 = vld [vmem:[#allocation14 + $0x20c] ss:$16 sps:$4 sm:$0xff]  }
 0x4c1   : > { %4642 = vmatpush2.bf16.msra.mxu0 %v10053_v21  ;;  %v8747_v21 = vcombine.low %v4733_v6, %v4737_v8  ;;  %v10127_v6 = vld [vmem:[#allocation14 + $0x30c] ss:$16 sps:$4 sm:$0xff]  }
 0x4c2   : > { %4643 = vmatprep.subr.bf16.mxu0 %v10061_v22  ;;  %v8740_v22 = vcombine.high %v4725_v17, %v4729_v18 }
 0x4c5   : > { %4644 = vmatpush2.bf16.msra.mxu0 %v10059_v23  ;;  %v4717_v23 = vld [vmem:[#allocation17 + $0x40] sm:$0xff] }
 0x4c6   : > { %4645 = vmatprep.subr.bf16.mxu0 %v10067_v24  ;;  %v4721_v24 = vld [vmem:[#allocation17 + $0x60] sm:$0xff] }
 0x4c7   : > { %v8732_v28 = vcombine.high %v4717_v23, %v4721_v24 }
 0x4c9   : > { %4646 = vmatpush2.bf16.msra.mxu0 %v10065_v26  ;;  %v10106_v26 = vld [vmem:[#allocation14 + $0x3ec] ss:$16 sps:$4 sm:$0xff]  }
 0x4ca   : > { %v3732_v31 = vpop.f32.mrf.mxu1  ;;  %4647 = vmatprep.subr.bf16.mxu0 %v10073_v27  ;;  %v8739_v27 = vcombine.low %v4725_v17, %v4729_v18  ;;  %v4785_v17 = vld [vmem:[#allocation17 + $0x260] sm:$0xff] }
 0x4cb   : > { %v3733_v34 = vadd.f32 %v3732_v31, %v3692_v29  ;;  %v4709_v29 = vld [vmem:[#allocation17] sm:$0xff] }
 0x4cc   : > { %v3734_v35 = vpop.f32.mrf.mxu1  ;;  %v10104_v31 = vld [vmem:[#allocation14 + $0x3e8] ss:$16 sps:$4 sm:$0xff]  }
 0x4cd   : > { %v3735_v37 = vadd.f32 %v3734_v35, %v3694_v33  ;;  %4648 = vmatpush2.bf16.msra.mxu0 %v10071_v30  ;;  %v3741_v40 = vmax.f32 %v3733_v34, 0.0  ;;  %v4713_v30 = vld [vmem:[#allocation17 + $0x20] sm:$0xff]  ;;  %v8731_v33 = vcombine.low %v4717_v23, %v4721_v24 }
 0x4ce   : > { %v3736_v41 = vpop.f32.mrf.mxu1  ;;  %4649 = vmatprep.subr.bf16.mxu0 %v10079_v32  ;;  %v10109_v32 = vld [vmem:[#allocation14 + $0x3cc] ss:$16 sps:$4 sm:$0xff]   ;;  %v8724_v34 = vcombine.high %v4709_v29, %v4713_v30  ;;  %v4829_v35 = vld [vmem:[#allocation17 + $0x3c0] sm:$0xff] }
 0x4cf   : > { %v3742_v42 = vmax.f32 %v3735_v37, 0.0  ;;  %v11221_v46 = vpack.c.bf16 %v3741_v40, %v3741_v40  ;;  %v4833_v37 = vld [vmem:[#allocation17 + $0x3e0] sm:$0xff]  ;;  %v10112_v40 = vld [vmem:[#allocation14 + $0x3ac] ss:$16 sps:$4 sm:$0xff]   ;;  %v8723_v41 = vcombine.low %v4709_v29, %v4713_v30 }
 0x4d0   : > { %v3737_v44 = vpop.f32.mrf.mxu1  ;;  %v4893_v24 = vld [vmem:[#allocation17 + $0x5c0] sm:$0xff]  ;;  %v11228_v29 = vld [vmem:[#allocation17 + $0x1e8] sm:$0xff] }
 0x4d1   : > { %v3746_v39 = vpack.c.bf16 %v3742_v42, %v3742_v42  ;;  %4650 = vmatpush2.bf16.msra.mxu0 %v10077_v38  ;;  %v10107_v38 = vld [vmem:[#allocation14 + $0x3c8] ss:$16 sps:$4 sm:$0xff]   ;;  %v8844_v42 = vcombine.high %v4829_v35, %v4833_v37 }
 0x4d2   : > { %6287 = vmatprep.subr.bf16.mxu0 %v8780_v43  ;;  %v4821_v44 = vld [vmem:[#allocation17 + $0x380] sm:$0xff] }
 0x4d3   : > { %4610 = vmatprep.mubr.bf16.mxu1 %v3746_v39  ;;  %v4805_v43 = vld [vmem:[#allocation17 + $0x300] sm:$0xff] }
 0x4d4   : > { %4611 = vmatmul.mubr.bf16.vlgmr.msra.gmra.mxu1 %v11221_v46  ;;  %4652 = vmatmul.mubr.bf16.vlgmr.msra.gmra.mxu0 %v11212_v59  ;;  %v10089_v59 = vld [vmem:[#allocation14 + $0x288] ss:$16 sps:$4 sm:$0xff]   ;;  %v8819_v56 = vcombine.low %v4805_v43, %v4809_v58 }
 0x4d5   : > { %4661 = vmatpush1.bf16.msra.mxu1 %v10080_v45  ;;  %4692 = vmatprep.mubr.bf16.mxu1 %v3746_v39  ;;  %v4825_v39 = vld [vmem:[#allocation17 + $0x3a0] sm:$0xff] }
 0x4d6   : > { %4662 = vmatprep.subr.bf16.mxu1 %v10085_v47  ;;  %6288 = vmatpush1.bf16.msra.mxu0 %v8779_v57  ;;  %v10110_v45 = vld [vmem:[#allocation14 + $0x3a8] ss:$16 sps:$4 sm:$0xff]   ;;  %v10115_v47 = vld [vmem:[#allocation14 + $0x38c] ss:$16 sps:$4 sm:$0xff]   ;;  %v8835_v55 = vcombine.low %v4821_v44, %v4825_v39 }
 0x4d7   : > { %6289 = vmatprep.subr.bf16.mxu0 %v8772_v36  ;;  %v10116_v36 = vld [vmem:[#allocation14 + $0x368] ss:$16 sps:$4 sm:$0xff]  }
 0x4d9   : > { %4663 = vmatpush1.bf16.msra.mxu1 %v10083_v48  ;;  %v8843_v48 = vcombine.low %v4829_v35, %v4833_v37  ;;  %v4877_v35 = vld [vmem:[#allocation17 + $0x540] sm:$0xff] }
 0x4da   : > { %4664 = vmatprep.subr.bf16.mxu1 %v10088_v50  ;;  %6290 = vmatpush1.bf16.msra.mxu0 %v8771_v63  ;;  %v8836_v50 = vcombine.high %v4821_v44, %v4825_v39  ;;  %v4801_v63 = vld [vmem:[#allocation17 + $0x2e0] sm:$0xff] }
 0x4db   : > { %6291 = vmatprep.subr.bf16.mxu0 %v8764_v0  ;;  %v10119_v0 = vld [vmem:[#allocation14 + $0x348] ss:$16 sps:$4 sm:$0xff]  }
 0x4dc   : > { %v4881_v37 = vld [vmem:[#allocation17 + $0x560] sm:$0xff] }
 0x4dd   : > { %4665 = vmatpush1.bf16.msra.mxu1 %v10086_v51  ;;  %v4813_v51 = vld [vmem:[#allocation17 + $0x340] sm:$0xff] }
 0x4de   : > { %4666 = vmatprep.subr.bf16.mxu1 %v10091_v52  ;;  %6292 = vmatpush1.bf16.msra.mxu0 %v8763_v4  ;;  %v4817_v52 = vld [vmem:[#allocation17 + $0x360] sm:$0xff] }
 0x4df   : > { %6293 = vmatprep.subr.bf16.mxu0 %v8756_v5  ;;  %v8828_v57 = vcombine.high %v4813_v51, %v4817_v52  ;;  %v8827_v60 = vcombine.low %v4813_v51, %v4817_v52  ;;  %v4793_v4 = vld [vmem:[#allocation17 + $0x2a0] sm:$0xff] }
 0x4e0   : > { %v10122_v5 = vld [vmem:[#allocation14 + $0x328] ss:$16 sps:$4 sm:$0xff]  }
 0x4e1   : > { %4667 = vmatpush1.bf16.msra.mxu1 %v10089_v59  ;;  %v8820_v59 = vcombine.high %v4805_v43, %v4809_v58  ;;  %v4853_v51 = vld [vmem:[#allocation17 + $0x480] sm:$0xff] }
 0x4e2   : > { %4668 = vmatprep.subr.bf16.mxu1 %v10094_v61  ;;  %6294 = vmatpush1.bf16.msra.mxu0 %v8755_v62  ;;  %v4797_v61 = vld [vmem:[#allocation17 + $0x2c0] sm:$0xff] }
 0x4e3   : > { %6295 = vmatprep.subr.bf16.mxu0 %v8748_v7  ;;  %v8811_v8 = vcombine.low %v4797_v61, %v4801_v63  ;;  %v4781_v7 = vld [vmem:[#allocation17 + $0x240] sm:$0xff] }
 0x4e4   : > { %v8796_v18 = vcombine.high %v4781_v7, %v4785_v17  ;;  %v4857_v52 = vld [vmem:[#allocation17 + $0x4a0] sm:$0xff] }
 0x4e5   : > { %4669 = vmatpush1.bf16.msra.mxu1 %v10092_v2  ;;  %v8812_v2 = vcombine.high %v4797_v61, %v4801_v63  ;;  %v4957_v61 = vld [vmem:[#allocation17 + $0x7c0] sm:$0xff] }
 0x4e6   : > { %4670 = vmatprep.subr.bf16.mxu1 %v10097_v3  ;;  %6296 = vmatpush1.bf16.msra.mxu0 %v8747_v21  ;;  %v4789_v3 = vld [vmem:[#allocation17 + $0x280] sm:$0xff] }
 0x4e7   : > { %6297 = vmatprep.subr.bf16.mxu0 %v8740_v22  ;;  %v8803_v62 = vcombine.low %v4789_v3, %v4793_v4  ;;  %v4777_v21 = vld [vmem:[#allocation17 + $0x220] sm:$0xff] }
 0x4e8   : > { %v4961_v63 = vld [vmem:[#allocation17 + $0x7e0] sm:$0xff] }
 0x4e9   : > { %4671 = vmatpush1.bf16.msra.mxu1 %v10095_v11  ;;  %v8804_v11 = vcombine.high %v4789_v3, %v4793_v4 }
 0x4ea   : > { %4672 = vmatprep.subr.bf16.mxu1 %v10100_v16  ;;  %6298 = vmatpush1.bf16.msra.mxu0 %v8739_v27  ;;  %v10125_v16 = vld [vmem:[#allocation14 + $0x308] ss:$16 sps:$4 sm:$0xff]  }
 0x4eb   : > { %6299 = vmatprep.subr.bf16.mxu0 %v8732_v28  ;;  %v11226_v28 = vld [vmem:[#allocation17 + $0x1c8] sm:$0xff] }
 0x4ec   : > { %v8781_v30 = vcombine.low %v11226_v28, %v11228_v29 }
 0x4ed   : > { %4673 = vmatpush1.bf16.msra.mxu1 %v10098_v19  ;;  %v8795_v19 = vcombine.low %v4781_v7, %v4785_v17 }
 0x4ee   : > { %4674 = vmatprep.subr.bf16.mxu1 %v10103_v20  ;;  %6300 = vmatpush1.bf16.msra.mxu0 %v8731_v33  ;;  %v4773_v20 = vld [vmem:[#allocation17 + $0x200] sm:$0xff] }
 0x4ef   : > { %6301 = vmatprep.subr.bf16.mxu0 %v8724_v34  ;;  %v8788_v22 = vcombine.high %v4773_v20, %v4777_v21  ;;  %v8787_v23 = vcombine.low %v4773_v20, %v4777_v21 }
 0x4f1   : > { %4675 = vmatpush1.bf16.msra.mxu1 %v10101_v25  ;;  %v4897_v25 = vld [vmem:[#allocation17 + $0x5e0] sm:$0xff] }
 0x4f2   : > { %4676 = vmatprep.subr.bf16.mxu1 %v10106_v26  ;;  %6302 = vmatpush1.bf16.msra.mxu0 %v8723_v41  ;;  %v8907_v26 = vcombine.low %v4893_v24, %v4897_v25  ;;  %v8908_v27 = vcombine.high %v4893_v24, %v4897_v25  ;;  %v4869_v41 = vld [vmem:[#allocation17 + $0x500] sm:$0xff] }
 0x4f3   : > { %6303 = vmatprep.subr.bf16.mxu0 %v8844_v42  ;;  %v4873_v42 = vld [vmem:[#allocation17 + $0x520] sm:$0xff] }
 0x4f4   : > { %v8883_v44 = vcombine.low %v4869_v41, %v4873_v42  ;;  %v8884_v39 = vcombine.high %v4869_v41, %v4873_v42  ;;  %v11234_v42 = vld [vmem:[#allocation17 + $0x5c8] sm:$0xff] }
 0x4f5   : > { %4677 = vmatpush2.bf16.msra.mxu1 %v10104_v31  ;;  %v4885_v31 = vld [vmem:[#allocation17 + $0x580] sm:$0xff] }
 0x4f6   : > { %4678 = vmatprep.subr.bf16.mxu1 %v10109_v32  ;;  %6304 = vmatpush2.bf16.msra.mxu0 %v8843_v48  ;;  %v4889_v32 = vld [vmem:[#allocation17 + $0x5a0] sm:$0xff] }
 0x4f7   : > { %6305 = vmatprep.subr.bf16.mxu0 %v8836_v50  ;;  %v8899_v33 = vcombine.low %v4885_v31, %v4889_v32  ;;  %v8900_v34 = vcombine.high %v4885_v31, %v4889_v32 }
 0x4f9   : > { %4679 = vmatpush2.bf16.msra.mxu1 %v10107_v38  ;;  %v8891_v38 = vcombine.low %v4877_v35, %v4881_v37 }
 0x4fa   : > { %4680 = vmatprep.subr.bf16.mxu1 %v10112_v40  ;;  %6306 = vmatpush2.bf16.msra.mxu0 %v8835_v55  ;;  %v8892_v40 = vcombine.high %v4877_v35, %v4881_v37  ;;  %v4845_v55 = vld [vmem:[#allocation17 + $0x440] sm:$0xff] }
 0x4fb   : > { %6307 = vmatprep.subr.bf16.mxu0 %v8828_v57  ;;  %v4849_v57 = vld [vmem:[#allocation17 + $0x460] sm:$0xff] }
 0x4fc   : > { %v8859_v43 = vcombine.low %v4845_v55, %v4849_v57  ;;  %v8860_v58 = vcombine.high %v4845_v55, %v4849_v57  ;;  %v4905_v35 = vld [vmem:[#allocation17 + $0x620] sm:$0xff] }
 0x4fd   : > { %4681 = vmatpush2.bf16.msra.mxu1 %v10110_v45  ;;  %v4861_v45 = vld [vmem:[#allocation17 + $0x4c0] sm:$0xff] }
 0x4fe   : > { %4682 = vmatprep.subr.bf16.mxu1 %v10115_v47  ;;  %6308 = vmatpush2.bf16.msra.mxu0 %v8827_v60  ;;  %v4865_v47 = vld [vmem:[#allocation17 + $0x4e0] sm:$0xff] }
 0x4ff   : > { %6309 = vmatprep.subr.bf16.mxu0 %v8820_v59  ;;  %v8875_v48 = vcombine.low %v4861_v45, %v4865_v47  ;;  %v8876_v50 = vcombine.high %v4861_v45, %v4865_v47  ;;  %v11242_v47 = vld [vmem:[#allocation16] sm:$0xf] }
 0x501   : > { %4683 = vmatpush2.bf16.msra.mxu1 %v10113_v53  ;;  %v8867_v53 = vcombine.low %v4853_v51, %v4857_v52 }
 0x502   : > { %4684 = vmatprep.subr.bf16.mxu1 %v10118_v49  ;;  %6310 = vmatpush2.bf16.msra.mxu0 %v8819_v56  ;;  %v8868_v49 = vcombine.high %v4853_v51, %v4857_v52  ;;  %v4949_v56 = vld [vmem:[#allocation17 + $0x780] sm:$0xff] }
 0x503   : > { %6311 = vmatprep.subr.bf16.mxu0 %v8812_v2  ;;  %v4953_v2 = vld [vmem:[#allocation17 + $0x7a0] sm:$0xff] }
 0x504   : > { %v8963_v3 = vcombine.low %v4949_v56, %v4953_v2  ;;  %v8964_v4 = vcombine.high %v4949_v56, %v4953_v2 }
 0x505   : > { %4685 = vmatpush2.bf16.msra.mxu1 %v10116_v36  ;;  %v4837_v36 = vld [vmem:[#allocation17 + $0x400] sm:$0xff] }
 0x506   : > { %4686 = vmatprep.subr.bf16.mxu1 %v10121_v54  ;;  %6312 = vmatpush2.bf16.msra.mxu0 %v8811_v8  ;;  %v4841_v54 = vld [vmem:[#allocation17 + $0x420] sm:$0xff] }
 0x507   : > { %6313 = vmatprep.subr.bf16.mxu0 %v8804_v11  ;;  %v8851_v60 = vcombine.low %v4837_v36, %v4841_v54  ;;  %v8852_v59 = vcombine.high %v4837_v36, %v4841_v54 }
 0x509   : > { %4687 = vmatpush2.bf16.msra.mxu1 %v10119_v0  ;;  %v8971_v0 = vcombine.low %v4957_v61, %v4961_v63 }
 0x50a   : > { %4688 = vmatprep.subr.bf16.mxu1 %v10124_v1  ;;  %6314 = vmatpush2.bf16.msra.mxu0 %v8803_v62  ;;  %v8972_v1 = vcombine.high %v4957_v61, %v4961_v63  ;;  %v4937_v62 = vld [vmem:[#allocation17 + $0x720] sm:$0xff]  ;;  %v4758_v61 = vld [vmem:[#allocation17 + $0x188] sm:$0xff] }
 0x50b   : > { %6315 = vmatprep.subr.bf16.mxu0 %v8796_v18  ;;  %v4925_v18 = vld [vmem:[#allocation17 + $0x6c0] sm:$0xff]  ;;  %v4762_v63 = vld [vmem:[#allocation17 + $0x1a8] sm:$0xff] }
 0x50d   : > { %4689 = vmatpush2.bf16.msra.mxu1 %v10122_v5  ;;  %v4941_v5 = vld [vmem:[#allocation17 + $0x740] sm:$0xff] }
 0x50e   : > { %4690 = vmatprep.subr.bf16.mxu1 %v10127_v6  ;;  %6316 = vmatpush2.bf16.msra.mxu0 %v8795_v19  ;;  %v4945_v6 = vld [vmem:[#allocation17 + $0x760] sm:$0xff] }
 0x50f   : > { %6317 = vmatprep.subr.bf16.mxu0 %v8788_v22  ;;  %v8955_v8 = vcombine.low %v4941_v5, %v4945_v6  ;;  %v8956_v11 = vcombine.high %v4941_v5, %v4945_v6  ;;  %v4929_v19 = vld [vmem:[#allocation17 + $0x6e0] sm:$0xff]  ;;  %v4754_v5 = vld [vmem:[#allocation17 + $0x168] sm:$0xff]  ;;  %v8773_v6 = vcombine.low %v4758_v61, %v4762_v63 }
 0x510   : > { %v8939_v20 = vcombine.low %v4925_v18, %v4929_v19  ;;  %v8940_v21 = vcombine.high %v4925_v18, %v4929_v19  ;;  %v4917_v22 = vld [vmem:[#allocation17 + $0x680] sm:$0xff]  ;;  %v4738_v18 = vld [vmem:[#allocation17 + $0xe8] sm:$0xff] }
 0x511   : > { %4691 = vmatpush2.bf16.msra.mxu1 %v10125_v16  ;;  %v4933_v16 = vld [vmem:[#allocation17 + $0x700] sm:$0xff] }
 0x512   : > { %6318 = vmatpush2.bf16.msra.mxu0 %v8787_v23  ;;  %6328 = vmatprep.subr.bf16.mxu1 %v8908_v27  ;;  %v8947_v7 = vcombine.low %v4933_v16, %v4937_v62  ;;  %v8948_v17 = vcombine.high %v4933_v16, %v4937_v62  ;;  %v4921_v23 = vld [vmem:[#allocation17 + $0x6a0] sm:$0xff]  ;;  %v4746_v16 = vld [vmem:[#allocation17 + $0x128] sm:$0xff] }
 0x513   : > { %v8931_v24 = vcombine.low %v4917_v22, %v4921_v23  ;;  %v8932_v25 = vcombine.high %v4917_v22, %v4921_v23  ;;  %v4913_v27 = vld [vmem:[#allocation17 + $0x660] sm:$0xff]  ;;  %v4718_v22 = vld [vmem:[#allocation17 + $0x48] sm:$0xff] }
 0x514   : > { %4693 = vmatmul.mubr.bf16.vlgmr.msra.gmra.mxu1 %v11221_v46  ;;  %v8782_v46 = vcombine.high %v11226_v28, %v11228_v29  ;;  %v4730_v28 = vld [vmem:[#allocation17 + $0xa8] sm:$0xff] }
 0x515   : > { %6329 = vmatpush1.bf16.msra.mxu1 %v8907_v26  ;;  %v4909_v26 = vld [vmem:[#allocation17 + $0x640] sm:$0xff]  ;;  %v4722_v23 = vld [vmem:[#allocation17 + $0x68] sm:$0xff] }
 0x516   : > { %6369 = vmatprep.subr.bf16.mxu0 %v8782_v46  ;;  %6330 = vmatprep.subr.bf16.mxu1 %v8900_v34  ;;  %v8924_v46 = vcombine.high %v4909_v26, %v4913_v27  ;;  %v8923_v32 = vcombine.low %v4909_v26, %v4913_v27  ;;  %v4901_v34 = vld [vmem:[#allocation17 + $0x600] sm:$0xff]  ;;  %v4710_v26 = vld [vmem:[#allocation17 + $0x8] sm:$0xff] }
 0x517   : > { %v8916_v37 = vcombine.high %v4901_v34, %v4905_v35  ;;  %v4714_v27 = vld [vmem:[#allocation17 + $0x28] sm:$0xff] }
 0x519   : > { %6331 = vmatpush1.bf16.msra.mxu1 %v8899_v33 }
 0x51a   : > { %6332 = vmatprep.subr.bf16.mxu1 %v8892_v40  ;;  %v8915_v40 = vcombine.low %v4901_v34, %v4905_v35  ;;  %v8725_v34 = vcombine.low %v4710_v26, %v4714_v27 }
 0x51d   : > { %6333 = vmatpush1.bf16.msra.mxu1 %v8891_v38 }
 0x51e   : > { %6334 = vmatprep.subr.bf16.mxu1 %v8884_v39 }
 0x521   : > { %6335 = vmatpush1.bf16.msra.mxu1 %v8883_v44  ;;  %v11236_v44 = vld [vmem:[#allocation17 + $0x5e8] sm:$0xff] }
 0x522   : > { %6336 = vmatprep.subr.bf16.mxu1 %v8876_v50  ;;  %v8910_v39 = vcombine.high %v11234_v42, %v11236_v44  ;;  %v8909_v45 = vcombine.low %v11234_v42, %v11236_v44  ;;  %v3884_v50 = vrot.slane %v11242_v47, %v11137_v14 }
 0x525   : > { %6337 = vmatpush1.bf16.msra.mxu1 %v8875_v48  ;;  %v3880_v48 = vrot.slane %v11242_v47, %v11131_v12 }
 0x526   : > { %6338 = vmatprep.subr.bf16.mxu1 %v8868_v49 }
 0x529   : > { %6339 = vmatpush1.bf16.msra.mxu1 %v8867_v53 }
 0x52a   : > { %6340 = vmatprep.subr.bf16.mxu1 %v8860_v58 }
 0x52d   : > { %6341 = vmatpush1.bf16.msra.mxu1 %v8859_v43 }
 0x52e   : > { %6342 = vmatprep.subr.bf16.mxu1 %v8852_v59 }
 0x531   : > { %6343 = vmatpush1.bf16.msra.mxu1 %v8851_v60 }
 0x532   : > { %6344 = vmatprep.subr.bf16.mxu1 %v8972_v1 }
 0x535   : > { %6345 = vmatpush2.bf16.msra.mxu1 %v8971_v0 }
 0x536   : > { %6346 = vmatprep.subr.bf16.mxu1 %v8964_v4  ;;  %v4750_v4 = vld [vmem:[#allocation17 + $0x148] sm:$0xff] }
 0x537   : > { %v8765_v62 = vcombine.low %v4750_v4, %v4754_v5 }
 0x539   : > { %6347 = vmatpush2.bf16.msra.mxu1 %v8963_v3  ;;  %v8774_v3 = vcombine.high %v4758_v61, %v4762_v63  ;;  %v4794_v61 = vld [vmem:[#allocation17 + $0x2a8] sm:$0xff] }
 0x53a   : > { %6348 = vmatprep.subr.bf16.mxu1 %v8956_v11  ;;  %v4742_v11 = vld [vmem:[#allocation17 + $0x108] sm:$0xff] }
 0x53b   : > { %v8757_v19 = vcombine.low %v4742_v11, %v4746_v16 }
 0x53d   : > { %6349 = vmatpush2.bf16.msra.mxu1 %v8955_v8  ;;  %v8766_v8 = vcombine.high %v4750_v4, %v4754_v5  ;;  %v3888_v4 = vrot.slane %v11242_v47, %v11134_v13 }
 0x53e   : > { %6350 = vmatprep.subr.bf16.mxu1 %v8948_v17  ;;  %v4734_v17 = vld [vmem:[#allocation17 + $0xc8] sm:$0xff] }
 0x53f   : > { %v8749_v29 = vcombine.low %v4734_v17, %v4738_v18 }
 0x541   : > { %6351 = vmatpush2.bf16.msra.mxu1 %v8947_v7  ;;  %v8758_v7 = vcombine.high %v4742_v11, %v4746_v16  ;;  %v4774_v11 = vld [vmem:[#allocation17 + $0x208] sm:$0xff] }
 0x542   : > { %6352 = vmatprep.subr.bf16.mxu1 %v8940_v21  ;;  %v4726_v21 = vld [vmem:[#allocation17 + $0x88] sm:$0xff] }
 0x543   : > { %v4778_v16 = vld [vmem:[#allocation17 + $0x228] sm:$0xff] }
 0x545   : > { %6353 = vmatpush2.bf16.msra.mxu1 %v8939_v20  ;;  %v8750_v20 = vcombine.high %v4734_v17, %v4738_v18  ;;  %v8790_v18 = vcombine.high %v4774_v11, %v4778_v16 }
 0x546   : > { %6354 = vmatprep.subr.bf16.mxu1 %v8932_v25  ;;  %v8734_v25 = vcombine.high %v4718_v22, %v4722_v23 }
 0x549   : > { %6355 = vmatpush2.bf16.msra.mxu1 %v8931_v24  ;;  %v8741_v24 = vcombine.low %v4726_v21, %v4730_v28 }
 0x54a   : > { %6356 = vmatprep.subr.bf16.mxu1 %v8924_v46  ;;  %v8733_v46 = vcombine.low %v4718_v22, %v4722_v23  ;;  %v8789_v22 = vcombine.low %v4774_v11, %v4778_v16 }
 0x54d   : > { %6357 = vmatpush2.bf16.msra.mxu1 %v8923_v32  ;;  %v4830_v32 = vld [vmem:[#allocation17 + $0x3c8] sm:$0xff] }
 0x54e   : > { %6358 = vmatprep.subr.bf16.mxu1 %v8916_v37  ;;  %v4822_v37 = vld [vmem:[#allocation17 + $0x388] sm:$0xff] }
 0x551   : > { %6359 = vmatpush2.bf16.msra.mxu1 %v8915_v40 }
 0x552   : > { %6410 = vmatprep.subr.bf16.mxu1 %v8910_v39  ;;  %v4814_v39 = vld [vmem:[#allocation17 + $0x348] sm:$0xff] }
 0x554   : > { %v4571_v31 = vpop.f32.mrf.mxu0 }
 0x555   : > { %v4572_v51 = vadd.f32 %v4571_v31, %v3880_v48  ;;  %v8726_v31 = vcombine.high %v4710_v26, %v4714_v27  ;;  %v4818_v48 = vld [vmem:[#allocation17 + $0x368] sm:$0xff] }
 0x556   : > { %v4573_v33 = vpop.f32.mrf.mxu0  ;;  %v4890_v27 = vld [vmem:[#allocation17 + $0x5a8] sm:$0xff] }
 0x557   : > { %v4574_v49 = vadd.f32 %v4573_v33, %v3884_v50  ;;  %v4834_v33 = vld [vmem:[#allocation17 + $0x3e8] sm:$0xff] }
 0x558   : > { %v4575_v38 = vpop.f32.mrf.mxu0  ;;  %v8846_v35 = vcombine.high %v4830_v32, %v4834_v33  ;;  %v8845_v40 = vcombine.low %v4830_v32, %v4834_v33 }
 0x559   : > { %v4826_v38 = vld [vmem:[#allocation17 + $0x3a8] sm:$0xff] }
 0x55a   : > { %v4576_v41 = vpop.f32.mrf.mxu0  ;;  %v8837_v50 = vcombine.low %v4822_v37, %v4826_v38 }
 0x55b   : > { %v8838_v41 = vcombine.high %v4822_v37, %v4826_v38  ;;  %v4878_v37 = vld [vmem:[#allocation17 + $0x548] sm:$0xff] }
 0x55c   : > { %v4882_v38 = vld [vmem:[#allocation17 + $0x568] sm:$0xff] }
 0x594   : > { %v4612_v52 = vpop.f32.mrf.mxu1  ;;  %v11248_v53 = vpop.f32.mrf.mxu0 }
 0x595   : > { %v4613_v55 = vadd.f32 %v4612_v52, %v4572_v51  ;;  %v8830_v51 = vcombine.high %v4814_v39, %v4818_v48  ;;  %v4806_v52 = vld [vmem:[#allocation17 + $0x308] sm:$0xff] }
 0x596   : > { %v4614_v57 = vpop.f32.mrf.mxu1  ;;  %v11250_v43 = vpop.f32.mrf.mxu0 }
 0x597   : > { %v4615_v58 = vadd.f32 %v4614_v57, %v4574_v49  ;;  %v4701_v36 = vmax.f32 %v4613_v55, 0.0  ;;  %v4810_v49 = vld [vmem:[#allocation17 + $0x328] sm:$0xff]  ;;  %v8829_v55 = vcombine.low %v4814_v39, %v4818_v48 }
 0x598   : > { %v4616_v54 = vpop.f32.mrf.mxu1  ;;  %v4657_v60 = vpop.f32.mrf.mxu0  ;;  %v8822_v57 = vcombine.high %v4806_v52, %v4810_v49 }
 0x599   : > { %v4702_v59 = vmax.f32 %v4615_v58, 0.0  ;;  %v11254_v2 = vpack.c.bf16 %v4701_v36, %v4701_v36  ;;  %v4798_v58 = vld [vmem:[#allocation17 + $0x2c8] sm:$0xff]  ;;  %v8821_v54 = vcombine.low %v4806_v52, %v4810_v49 }
 0x59a   : > { %v4617_v0 = vpop.f32.mrf.mxu1  ;;  %v4658_v1 = vpop.f32.mrf.mxu0  ;;  %v4802_v36 = vld [vmem:[#allocation17 + $0x2e8] sm:$0xff] }
 0x59b   : > { %v11252_v56 = vpack.c.bf16 %v4702_v59, %v4702_v59  ;;  %v8814_v60 = vcombine.high %v4798_v58, %v4802_v36  ;;  %v4790_v59 = vld [vmem:[#allocation17 + $0x288] sm:$0xff]  ;;  %v8813_v63 = vcombine.low %v4798_v58, %v4802_v36  ;;  %v8893_v58 = vcombine.low %v4878_v37, %v4882_v38 }
 0x59c   : > { %v8806_v0 = vcombine.high %v4790_v59, %v4794_v61  ;;  %v4782_v1 = vld [vmem:[#allocation17 + $0x248] sm:$0xff]  ;;  %v8805_v5 = vcombine.low %v4790_v59, %v4794_v61  ;;  %v4739_v59 = vld [vmem:[#allocation17 + $0xf0] sm:$0xff] }
 0x59d   : > { %6319 = vmatprep.mubr.bf16.mxu0 %v11252_v56  ;;  %v4870_v52 = vld [vmem:[#allocation17 + $0x508] sm:$0xff] }
 0x59e   : > { %6320 = vmatmul.mubr.bf16.vlgmr.msra.gmra.mxu0 %v11254_v2  ;;  %v4874_v49 = vld [vmem:[#allocation17 + $0x528] sm:$0xff] }
 0x59f   : > { %6370 = vmatpush1.bf16.msra.mxu0 %v8781_v30  ;;  %6401 = vmatprep.mubr.bf16.mxu0 %v11252_v56  ;;  %v8742_v30 = vcombine.high %v4726_v21, %v4730_v28  ;;  %v4767_v21 = vld [vmem:[#allocation17 + $0x1d0] sm:$0xff]  ;;  %v8886_v44 = vcombine.high %v4870_v52, %v4874_v49  ;;  %v4862_v36 = vld [vmem:[#allocation17 + $0x4c8] sm:$0xff]  ;;  %v8885_v61 = vcombine.low %v4870_v52, %v4874_v49 }
 0x5a0   : > { %6371 = vmatprep.subr.bf16.mxu0 %v8774_v3  ;;  %v4786_v3 = vld [vmem:[#allocation17 + $0x268] sm:$0xff]  ;;  %v4771_v28 = vld [vmem:[#allocation17 + $0x1f0] sm:$0xff] }
 0x5a1   : > { %v8783_v33 = vcombine.low %v4767_v21, %v4771_v28 }
 0x5a3   : > { %6372 = vmatpush1.bf16.msra.mxu0 %v8773_v6  ;;  %v8798_v6 = vcombine.high %v4782_v1, %v4786_v3 }
 0x5a4   : > { %6373 = vmatprep.subr.bf16.mxu0 %v8766_v8  ;;  %v3892_v8 = vrot.slane %v11242_v47, %v11140_v15 }
 0x5a7   : > { %6374 = vmatpush1.bf16.msra.mxu0 %v8765_v62  ;;  %v4654_v62 = vadd.f32 %v11248_v53, %v3888_v4  ;;  %v4886_v53 = vld [vmem:[#allocation17 + $0x588] sm:$0xff] }
 0x5a8   : > { %6375 = vmatprep.subr.bf16.mxu0 %v8758_v7  ;;  %v8797_v7 = vcombine.low %v4782_v1, %v4786_v3  ;;  %v8901_v39 = vcombine.low %v4886_v53, %v4890_v27  ;;  %v4854_v3 = vld [vmem:[#allocation17 + $0x488] sm:$0xff] }
 0x5a9   : > { %v4858_v4 = vld [vmem:[#allocation17 + $0x4a8] sm:$0xff] }
 0x5aa   : > { %v8870_v16 = vcombine.high %v4854_v3, %v4858_v4 }
 0x5ab   : > { %6376 = vmatpush1.bf16.msra.mxu0 %v8757_v19  ;;  %v4656_v19 = vadd.f32 %v11250_v43, %v3892_v8 }
 0x5ac   : > { %6377 = vmatprep.subr.bf16.mxu0 %v8750_v20 }
 0x5af   : > { %6378 = vmatpush1.bf16.msra.mxu0 %v8749_v29 }
 0x5b0   : > { %6379 = vmatprep.subr.bf16.mxu0 %v8742_v30 }
 0x5b3   : > { %6380 = vmatpush1.bf16.msra.mxu0 %v8741_v24  ;;  %v8784_v24 = vcombine.high %v4767_v21, %v4771_v28 }
 0x5b4   : > { %6381 = vmatprep.subr.bf16.mxu0 %v8734_v25 }
 0x5b7   : > { %6382 = vmatpush1.bf16.msra.mxu0 %v8733_v46  ;;  %v4759_v46 = vld [vmem:[#allocation17 + $0x190] sm:$0xff] }
 0x5b8   : > { %6383 = vmatprep.subr.bf16.mxu0 %v8726_v31  ;;  %v4763_v31 = vld [vmem:[#allocation17 + $0x1b0] sm:$0xff] }
 0x5b9   : > { %v8775_v48 = vcombine.low %v4759_v46, %v4763_v31 }
 0x5bb   : > { %6384 = vmatpush1.bf16.msra.mxu0 %v8725_v34  ;;  %v8902_v34 = vcombine.high %v4886_v53, %v4890_v27  ;;  %v4958_v27 = vld [vmem:[#allocation17 + $0x7c8] sm:$0xff] }
 0x5bc   : > { %6385 = vmatprep.subr.bf16.mxu0 %v8846_v35  ;;  %v8776_v35 = vcombine.high %v4759_v46, %v4763_v31  ;;  %v4962_v46 = vld [vmem:[#allocation17 + $0x7e8] sm:$0xff]  ;;  %v4831_v31 = vld [vmem:[#allocation17 + $0x3d0] sm:$0xff] }
 0x5bf   : > { %6386 = vmatpush2.bf16.msra.mxu0 %v8845_v40  ;;  %v4751_v40 = vld [vmem:[#allocation17 + $0x150] sm:$0xff] }
 0x5c0   : > { %6387 = vmatprep.subr.bf16.mxu0 %v8838_v41  ;;  %v4755_v41 = vld [vmem:[#allocation17 + $0x170] sm:$0xff] }
 0x5c1   : > { %v8767_v42 = vcombine.low %v4751_v40, %v4755_v41 }
 0x5c3   : > { %6388 = vmatpush2.bf16.msra.mxu0 %v8837_v50  ;;  %v8894_v50 = vcombine.high %v4878_v37, %v4882_v38  ;;  %v8974_v37 = vcombine.high %v4958_v27, %v4962_v46 }
 0x5c4   : > { %6389 = vmatprep.subr.bf16.mxu0 %v8830_v51  ;;  %v8768_v51 = vcombine.high %v4751_v40, %v4755_v41  ;;  %v4950_v40 = vld [vmem:[#allocation17 + $0x788] sm:$0xff] }
 0x5c5   : > { %v4954_v41 = vld [vmem:[#allocation17 + $0x7a8] sm:$0xff] }
 0x5c6   : > { %v8966_v52 = vcombine.high %v4950_v40, %v4954_v41 }
 0x5c7   : > { %6390 = vmatpush2.bf16.msra.mxu0 %v8829_v55  ;;  %v4743_v55 = vld [vmem:[#allocation17 + $0x110] sm:$0xff] }
 0x5c8   : > { %6391 = vmatprep.subr.bf16.mxu0 %v8822_v57  ;;  %v4747_v57 = vld [vmem:[#allocation17 + $0x130] sm:$0xff] }
 0x5cb   : > { %6392 = vmatpush2.bf16.msra.mxu0 %v8821_v54  ;;  %v4866_v54 = vld [vmem:[#allocation17 + $0x4e8] sm:$0xff] }
 0x5cc   : > { %6393 = vmatprep.subr.bf16.mxu0 %v8814_v60  ;;  %v4735_v60 = vld [vmem:[#allocation17 + $0xd0] sm:$0xff]  ;;  %v8877_v8 = vcombine.low %v4862_v36, %v4866_v54 }
 0x5cd   : > { %v8752_v1 = vcombine.high %v4735_v60, %v4739_v59  ;;  %v8751_v11 = vcombine.low %v4735_v60, %v4739_v59  ;;  %v4934_v60 = vld [vmem:[#allocation17 + $0x708] sm:$0xff] }
 0x5ce   : > { %v4938_v59 = vld [vmem:[#allocation17 + $0x728] sm:$0xff] }
 0x5cf   : > { %6394 = vmatpush2.bf16.msra.mxu0 %v8813_v63  ;;  %v8759_v63 = vcombine.low %v4743_v55, %v4747_v57 }
 0x5d0   : > { %6395 = vmatprep.subr.bf16.mxu0 %v8806_v0  ;;  %v8878_v0 = vcombine.high %v4862_v36, %v4866_v54 }
 0x5d3   : > { %6396 = vmatpush2.bf16.msra.mxu0 %v8805_v5  ;;  %v4727_v5 = vld [vmem:[#allocation17 + $0x90] sm:$0xff] }
 0x5d4   : > { %v4694_v17 = vpop.f32.mrf.mxu1  ;;  %6397 = vmatprep.subr.bf16.mxu0 %v8798_v6  ;;  %v4731_v6 = vld [vmem:[#allocation17 + $0xb0] sm:$0xff] }
 0x5d5   : > { %v4695_v20 = vadd.f32 %v4694_v17, %v4654_v62  ;;  %v8744_v62 = vcombine.high %v4727_v5, %v4731_v6  ;;  %v4850_v17 = vld [vmem:[#allocation17 + $0x468] sm:$0xff]  ;;  %v8743_v21 = vcombine.low %v4727_v5, %v4731_v6 }
 0x5d6   : > { %v4696_v29 = vpop.f32.mrf.mxu1  ;;  %v4926_v5 = vld [vmem:[#allocation17 + $0x6c8] sm:$0xff] }
 0x5d7   : > { %v4697_v30 = vadd.f32 %v4696_v29, %v4656_v19  ;;  %6398 = vmatpush2.bf16.msra.mxu0 %v8797_v7  ;;  %v4703_v23 = vmax.f32 %v4695_v20, 0.0  ;;  %v4846_v7 = vld [vmem:[#allocation17 + $0x448] sm:$0xff]  ;;  %v4723_v19 = vld [vmem:[#allocation17 + $0x70] sm:$0xff]  ;;  %v8869_v20 = vcombine.low %v4854_v3, %v4858_v4  ;;  %v8950_v3 = vcombine.high %v4934_v60, %v4938_v59 }
 0x5d8   : > { %v4698_v47 = vpop.f32.mrf.mxu1  ;;  %6399 = vmatprep.subr.bf16.mxu0 %v8790_v18  ;;  %v4719_v18 = vld [vmem:[#allocation17 + $0x50] sm:$0xff]  ;;  %v8862_v28 = vcombine.high %v4846_v7, %v4850_v17  ;;  %v4930_v6 = vld [vmem:[#allocation17 + $0x6e8] sm:$0xff] }
 0x5d9   : > { %v4704_v25 = vmax.f32 %v4697_v30, 0.0  ;;  %v11270_v43 = vpack.c.bf16 %v4703_v23, %v4703_v23  ;;  %v8736_v29 = vcombine.high %v4719_v18, %v4723_v19  ;;  %v4838_v30 = vld [vmem:[#allocation17 + $0x408] sm:$0xff]  ;;  %v4711_v23 = vld [vmem:[#allocation17 + $0x10] sm:$0xff] }
 0x5da   : > { %v4699_v26 = vpop.f32.mrf.mxu1  ;;  %v4715_v47 = vld [vmem:[#allocation17 + $0x30] sm:$0xff] }
 0x5db   : > { %v11268_v32 = vpack.c.bf16 %v4704_v25, %v4704_v25  ;;  %6400 = vmatpush2.bf16.msra.mxu0 %v8789_v22  ;;  %v4842_v22 = vld [vmem:[#allocation17 + $0x428] sm:$0xff]  ;;  %v8735_v25 = vcombine.low %v4719_v18, %v4723_v19  ;;  %v8728_v26 = vcombine.high %v4711_v23, %v4715_v47 }
 0x5dc   : > { %6451 = vmatprep.subr.bf16.mxu0 %v8784_v24  ;;  %v8861_v24 = vcombine.low %v4846_v7, %v4850_v17  ;;  %v8854_v53 = vcombine.high %v4838_v30, %v4842_v22  ;;  %v8942_v7 = vcombine.high %v4926_v5, %v4930_v6  ;;  %v4918_v18 = vld [vmem:[#allocation17 + $0x688] sm:$0xff] }
 0x5dd   : > { %6360 = vmatprep.mubr.bf16.mxu1 %v11268_v32  ;;  %v4922_v19 = vld [vmem:[#allocation17 + $0x6a8] sm:$0xff] }
 0x5de   : > { %6361 = vmatmul.mubr.bf16.vlgmr.msra.gmra.mxu1 %v11270_v43  ;;  %6402 = vmatmul.mubr.bf16.vlgmr.msra.gmra.mxu0 %v11254_v2 }
 0x5df   : > { %6411 = vmatpush1.bf16.msra.mxu1 %v8909_v45  ;;  %6442 = vmatprep.mubr.bf16.mxu1 %v11268_v32  ;;  %v8760_v45 = vcombine.high %v4743_v55, %v4747_v57  ;;  %v4942_v55 = vld [vmem:[#allocation17 + $0x748] sm:$0xff] }
 0x5e0   : > { %6452 = vmatpush1.bf16.msra.mxu0 %v8783_v33  ;;  %6483 = vmatprep.mubr.bf16.mxu0 %v11252_v56  ;;  %v4835_v33 = vld [vmem:[#allocation17 + $0x3f0] sm:$0xff]  ;;  %v4946_v57 = vld [vmem:[#allocation17 + $0x768] sm:$0xff] }
 0x5e1   : > { %6412 = vmatprep.subr.bf16.mxu1 %v8902_v34  ;;  %6453 = vmatprep.subr.bf16.mxu0 %v8776_v35  ;;  %v8853_v34 = vcombine.low %v4838_v30, %v4842_v22  ;;  %v8727_v35 = vcombine.low %v4711_v23, %v4715_v47  ;;  %v8848_v38 = vcombine.high %v4831_v31, %v4835_v33  ;;  %v4910_v23 = vld [vmem:[#allocation17 + $0x648] sm:$0xff] }
 0x5e2   : > { %v8958_v36 = vcombine.high %v4942_v55, %v4946_v57  ;;  %v8934_v30 = vcombine.high %v4918_v18, %v4922_v19  ;;  %v4914_v47 = vld [vmem:[#allocation17 + $0x668] sm:$0xff] }
 0x5e3   : > { %6413 = vmatpush1.bf16.msra.mxu1 %v8901_v39  ;;  %v4823_v39 = vld [vmem:[#allocation17 + $0x390] sm:$0xff] }
 0x5e4   : > { %6454 = vmatpush1.bf16.msra.mxu0 %v8775_v48  ;;  %6414 = vmatprep.subr.bf16.mxu1 %v8894_v50  ;;  %v4827_v48 = vld [vmem:[#allocation17 + $0x3b0] sm:$0xff]  ;;  %v8973_v50 = vcombine.low %v4958_v27, %v4962_v46  ;;  %v8926_v27 = vcombine.high %v4910_v23, %v4914_v47 }
 0x5e5   : > { %6455 = vmatprep.subr.bf16.mxu0 %v8768_v51  ;;  %v8847_v51 = vcombine.low %v4831_v31, %v4835_v33  ;;  %v8840_v49 = vcombine.high %v4823_v39, %v4827_v48  ;;  %v4902_v31 = vld [vmem:[#allocation17 + $0x608] sm:$0xff] }
 0x5e6   : > { %v4906_v33 = vld [vmem:[#allocation17 + $0x628] sm:$0xff] }
 0x5e7   : > { %6415 = vmatpush1.bf16.msra.mxu1 %v8893_v58  ;;  %v4815_v58 = vld [vmem:[#allocation17 + $0x350] sm:$0xff] }
 0x5e8   : > { %6456 = vmatpush1.bf16.msra.mxu0 %v8767_v42  ;;  %6416 = vmatprep.subr.bf16.mxu1 %v8886_v44  ;;  %v4819_v42 = vld [vmem:[#allocation17 + $0x370] sm:$0xff]  ;;  %v8965_v44 = vcombine.low %v4950_v40, %v4954_v41  ;;  %v8918_v40 = vcombine.high %v4902_v31, %v4906_v33 }
 0x5e9   : > { %6457 = vmatprep.subr.bf16.mxu0 %v8760_v45  ;;  %v8839_v45 = vcombine.low %v4823_v39, %v4827_v48  ;;  %v8832_v54 = vcombine.high %v4815_v58, %v4819_v42  ;;  %v4895_v39 = vld [vmem:[#allocation17 + $0x5d0] sm:$0xff] }
 0x5ea   : > { %v4899_v48 = vld [vmem:[#allocation17 + $0x5f0] sm:$0xff] }
 0x5eb   : > { %6417 = vmatpush1.bf16.msra.mxu1 %v8885_v61  ;;  %v4807_v61 = vld [vmem:[#allocation17 + $0x310] sm:$0xff] }
 0x5ec   : > { %6458 = vmatpush1.bf16.msra.mxu0 %v8759_v63  ;;  %6418 = vmatprep.subr.bf16.mxu1 %v8878_v0  ;;  %v4811_v63 = vld [vmem:[#allocation17 + $0x330] sm:$0xff]  ;;  %v8957_v0 = vcombine.low %v4942_v55, %v4946_v57  ;;  %v8912_v55 = vcombine.high %v4895_v39, %v4899_v48 }
 0x5ed   : > { %6459 = vmatprep.subr.bf16.mxu0 %v8752_v1  ;;  %v8831_v1 = vcombine.low %v4815_v58, %v4819_v42  ;;  %v8824_v4 = vcombine.high %v4807_v61, %v4811_v63  ;;  %v4887_v58 = vld [vmem:[#allocation17 + $0x590] sm:$0xff] }
 0x5ee   : > { %v4891_v42 = vld [vmem:[#allocation17 + $0x5b0] sm:$0xff] }
 0x5ef   : > { %6419 = vmatpush1.bf16.msra.mxu1 %v8877_v8  ;;  %v4799_v8 = vld [vmem:[#allocation17 + $0x2d0] sm:$0xff] }
 0x5f0   : > { %6460 = vmatpush1.bf16.msra.mxu0 %v8751_v11  ;;  %6420 = vmatprep.subr.bf16.mxu1 %v8870_v16  ;;  %v4803_v11 = vld [vmem:[#allocation17 + $0x2f0] sm:$0xff]  ;;  %v8949_v16 = vcombine.low %v4934_v60, %v4938_v59  ;;  %v8904_v60 = vcombine.high %v4887_v58, %v4891_v42 }
 0x5f1   : > { %6461 = vmatprep.subr.bf16.mxu0 %v8744_v62  ;;  %v8823_v62 = vcombine.low %v4807_v61, %v4811_v63  ;;  %v8816_v17 = vcombine.high %v4799_v8, %v4803_v11  ;;  %v4879_v59 = vld [vmem:[#allocation17 + $0x550] sm:$0xff] }
 0x5f2   : > { %v4883_v61 = vld [vmem:[#allocation17 + $0x570] sm:$0xff] }
 0x5f3   : > { %6421 = vmatpush1.bf16.msra.mxu1 %v8869_v20  ;;  %v4791_v20 = vld [vmem:[#allocation17 + $0x290] sm:$0xff] }
 0x5f4   : > { %6462 = vmatpush1.bf16.msra.mxu0 %v8743_v21  ;;  %6422 = vmatprep.subr.bf16.mxu1 %v8862_v28  ;;  %v4795_v21 = vld [vmem:[#allocation17 + $0x2b0] sm:$0xff]  ;;  %v8941_v28 = vcombine.low %v4926_v5, %v4930_v6  ;;  %v8896_v5 = vcombine.high %v4879_v59, %v4883_v61 }
 0x5f5   : > { %6463 = vmatprep.subr.bf16.mxu0 %v8736_v29  ;;  %v8815_v29 = vcombine.low %v4799_v8, %v4803_v11  ;;  %v8808_v22 = vcombine.high %v4791_v20, %v4795_v21  ;;  %v4871_v8 = vld [vmem:[#allocation17 + $0x510] sm:$0xff] }
 0x5f6   : > { %v4875_v11 = vld [vmem:[#allocation17 + $0x530] sm:$0xff] }
 0x5f7   : > { %6423 = vmatpush1.bf16.msra.mxu1 %v8861_v24  ;;  %v4783_v24 = vld [vmem:[#allocation17 + $0x250] sm:$0xff] }
 0x5f8   : > { %6464 = vmatpush1.bf16.msra.mxu0 %v8735_v25  ;;  %6424 = vmatprep.subr.bf16.mxu1 %v8854_v53  ;;  %v4787_v25 = vld [vmem:[#allocation17 + $0x270] sm:$0xff]  ;;  %v8933_v53 = vcombine.low %v4918_v18, %v4922_v19  ;;  %v8888_v18 = vcombine.high %v4871_v8, %v4875_v11 }
 0x5f9   : > { %6465 = vmatprep.subr.bf16.mxu0 %v8728_v26  ;;  %v8807_v26 = vcombine.low %v4791_v20, %v4795_v21  ;;  %v8800_v46 = vcombine.high %v4783_v24, %v4787_v25  ;;  %v4863_v20 = vld [vmem:[#allocation17 + $0x4d0] sm:$0xff] }
 0x5fa   : > { %v4867_v21 = vld [vmem:[#allocation17 + $0x4f0] sm:$0xff] }
 0x5fb   : > { %6425 = vmatpush1.bf16.msra.mxu1 %v8853_v34  ;;  %v4775_v34 = vld [vmem:[#allocation17 + $0x210] sm:$0xff] }
 0x5fc   : > { %6466 = vmatpush1.bf16.msra.mxu0 %v8727_v35  ;;  %6426 = vmatprep.subr.bf16.mxu1 %v8974_v37  ;;  %v4779_v35 = vld [vmem:[#allocation17 + $0x230] sm:$0xff]  ;;  %v8925_v37 = vcombine.low %v4910_v23, %v4914_v47 }
 0x5fd   : > { %6467 = vmatprep.subr.bf16.mxu0 %v8848_v38  ;;  %v8799_v38 = vcombine.low %v4783_v24, %v4787_v25  ;;  %v8792_v41 = vcombine.high %v4775_v34, %v4779_v35  ;;  %v4855_v47 = vld [vmem:[#allocation17 + $0x490] sm:$0xff]  ;;  %v4728_v25 = vld [vmem:[#allocation17 + $0x98] sm:$0xff] }
 0x5fe   : > { %v4859_v24 = vld [vmem:[#allocation17 + $0x4b0] sm:$0xff] }
 0x5ff   : > { %6427 = vmatpush2.bf16.msra.mxu1 %v8973_v50  ;;  %v4768_v50 = vld [vmem:[#allocation17 + $0x1d8] sm:$0xff] }
 0x600   : > { %6468 = vmatpush2.bf16.msra.mxu0 %v8847_v51  ;;  %6428 = vmatprep.subr.bf16.mxu1 %v8966_v52  ;;  %v4772_v51 = vld [vmem:[#allocation17 + $0x1f8] sm:$0xff]  ;;  %v8917_v52 = vcombine.low %v4902_v31, %v4906_v33  ;;  %v4847_v33 = vld [vmem:[#allocation17 + $0x450] sm:$0xff] }
 0x601   : > { %6469 = vmatprep.subr.bf16.mxu0 %v8840_v49  ;;  %v8791_v49 = vcombine.low %v4775_v34, %v4779_v35  ;;  %v8786_v57 = vcombine.high %v4768_v50, %v4772_v51  ;;  %v4851_v34 = vld [vmem:[#allocation17 + $0x470] sm:$0xff]  ;;  %v4720_v35 = vld [vmem:[#allocation17 + $0x58] sm:$0xff] }
 0x603   : > { %6429 = vmatpush2.bf16.msra.mxu1 %v8965_v44  ;;  %v8911_v44 = vcombine.low %v4895_v39, %v4899_v48  ;;  %v4839_v48 = vld [vmem:[#allocation17 + $0x410] sm:$0xff] }
 0x604   : > { %6470 = vmatpush2.bf16.msra.mxu0 %v8839_v45  ;;  %6430 = vmatprep.subr.bf16.mxu1 %v8958_v36  ;;  %v4760_v45 = vld [vmem:[#allocation17 + $0x198] sm:$0xff] }
 0x605   : > { %6471 = vmatprep.subr.bf16.mxu0 %v8832_v54  ;;  %v4764_v36 = vld [vmem:[#allocation17 + $0x1b8] sm:$0xff]  ;;  %v8785_v54 = vcombine.low %v4768_v50, %v4772_v51  ;;  %v4843_v50 = vld [vmem:[#allocation17 + $0x430] sm:$0xff] }
 0x606   : > { %v8778_v63 = vcombine.high %v4760_v45, %v4764_v36  ;;  %v4712_v51 = vld [vmem:[#allocation17 + $0x18] sm:$0xff] }
 0x607   : > { %6431 = vmatpush2.bf16.msra.mxu1 %v8957_v0  ;;  %v4752_v0 = vld [vmem:[#allocation17 + $0x158] sm:$0xff] }
 0x608   : > { %6472 = vmatpush2.bf16.msra.mxu0 %v8831_v1  ;;  %6432 = vmatprep.subr.bf16.mxu1 %v8950_v3  ;;  %v4756_v1 = vld [vmem:[#allocation17 + $0x178] sm:$0xff]  ;;  %v8903_v3 = vcombine.low %v4887_v58, %v4891_v42  ;;  %v4959_v42 = vld [vmem:[#allocation17 + $0x7d0] sm:$0xff] }
 0x609   : > { %6473 = vmatprep.subr.bf16.mxu0 %v8824_v4  ;;  %v8777_v4 = vcombine.low %v4760_v45, %v4764_v36  ;;  %v8770_v6 = vcombine.high %v4752_v0, %v4756_v1  ;;  %v4832_v45 = vld [vmem:[#allocation17 + $0x3d8] sm:$0xff] }
 0x60a   : > { %v4836_v36 = vld [vmem:[#allocation17 + $0x3f8] sm:$0xff] }
 0x60b   : > { %6433 = vmatpush2.bf16.msra.mxu1 %v8949_v16  ;;  %v4744_v16 = vld [vmem:[#allocation17 + $0x118] sm:$0xff] }
 0x60c   : > { %6474 = vmatpush2.bf16.msra.mxu0 %v8823_v62  ;;  %6434 = vmatprep.subr.bf16.mxu1 %v8942_v7  ;;  %v4748_v62 = vld [vmem:[#allocation17 + $0x138] sm:$0xff]  ;;  %v8895_v7 = vcombine.low %v4879_v59, %v4883_v61  ;;  %v8850_v61 = vcombine.high %v4832_v45, %v4836_v36 }
 0x60d   : > { %6475 = vmatprep.subr.bf16.mxu0 %v8816_v17  ;;  %v8769_v17 = vcombine.low %v4752_v0, %v4756_v1  ;;  %v8762_v19 = vcombine.high %v4744_v16, %v4748_v62  ;;  %v4955_v0 = vld [vmem:[#allocation17 + $0x7b0] sm:$0xff]  ;;  %v4824_v1 = vld [vmem:[#allocation17 + $0x398] sm:$0xff] }
 0x60f   : > { %6435 = vmatpush2.bf16.msra.mxu1 %v8941_v28  ;;  %v4736_v28 = vld [vmem:[#allocation17 + $0xd8] sm:$0xff] }
 0x610   : > { %6476 = vmatpush2.bf16.msra.mxu0 %v8815_v29  ;;  %6436 = vmatprep.subr.bf16.mxu1 %v8934_v30  ;;  %v4740_v29 = vld [vmem:[#allocation17 + $0xf8] sm:$0xff]  ;;  %v8761_v30 = vcombine.low %v4744_v16, %v4748_v62  ;;  %v4947_v16 = vld [vmem:[#allocation17 + $0x770] sm:$0xff] }
 0x611   : > { %6477 = vmatprep.subr.bf16.mxu0 %v8808_v22  ;;  %v8880_v22 = vcombine.high %v4863_v20, %v4867_v21  ;;  %v8754_v23 = vcombine.high %v4736_v28, %v4740_v29  ;;  %v4816_v62 = vld [vmem:[#allocation17 + $0x358] sm:$0xff] }
 0x613   : > { %6437 = vmatpush2.bf16.msra.mxu1 %v8933_v53  ;;  %v4732_v53 = vld [vmem:[#allocation17 + $0xb8] sm:$0xff] }
 0x614   : > { %6478 = vmatpush2.bf16.msra.mxu0 %v8807_v26  ;;  %6438 = vmatprep.subr.bf16.mxu1 %v8926_v27  ;;  %v8879_v26 = vcombine.low %v4863_v20, %v4867_v21  ;;  %v8753_v27 = vcombine.low %v4736_v28, %v4740_v29  ;;  %v8746_v31 = vcombine.high %v4728_v25, %v4732_v53  ;;  %v4935_v21 = vld [vmem:[#allocation17 + $0x710] sm:$0xff]  ;;  %v4808_v29 = vld [vmem:[#allocation17 + $0x318] sm:$0xff] }
 0x615   : > { %6479 = vmatprep.subr.bf16.mxu0 %v8800_v46  ;;  %v8872_v46 = vcombine.high %v4855_v47, %v4859_v24  ;;  %v4939_v28 = vld [vmem:[#allocation17 + $0x730] sm:$0xff] }
 0x617   : > { %6439 = vmatpush2.bf16.msra.mxu1 %v8925_v37  ;;  %v4724_v37 = vld [vmem:[#allocation17 + $0x78] sm:$0xff] }
 0x618   : > { %6480 = vmatpush2.bf16.msra.mxu0 %v8799_v38  ;;  %6440 = vmatprep.subr.bf16.mxu1 %v8918_v40  ;;  %v8871_v38 = vcombine.low %v4855_v47, %v4859_v24  ;;  %v8745_v40 = vcombine.low %v4728_v25, %v4732_v53  ;;  %v8738_v39 = vcombine.high %v4720_v35, %v4724_v37  ;;  %v4927_v24 = vld [vmem:[#allocation17 + $0x6d0] sm:$0xff]  ;;  %v4800_v53 = vld [vmem:[#allocation17 + $0x2d8] sm:$0xff] }
 0x619   : > { %6481 = vmatprep.subr.bf16.mxu0 %v8792_v41  ;;  %v8864_v41 = vcombine.high %v4847_v33, %v4851_v34  ;;  %v4931_v25 = vld [vmem:[#allocation17 + $0x6f0] sm:$0xff] }
 0x61b   : > { %6441 = vmatpush2.bf16.msra.mxu1 %v8917_v52  ;;  %v4716_v52 = vld [vmem:[#allocation17 + $0x38] sm:$0xff] }
 0x61c   : > { %6482 = vmatpush2.bf16.msra.mxu0 %v8791_v49  ;;  %6492 = vmatprep.subr.bf16.mxu1 %v8912_v55  ;;  %v8863_v49 = vcombine.low %v4847_v33, %v4851_v34  ;;  %v8737_v55 = vcombine.low %v4720_v35, %v4724_v37  ;;  %v8730_v58 = vcombine.high %v4712_v51, %v4716_v52  ;;  %v4919_v34 = vld [vmem:[#allocation17 + $0x690] sm:$0xff]  ;;  %v4792_v37 = vld [vmem:[#allocation17 + $0x298] sm:$0xff] }
 0x61d   : > { %6533 = vmatprep.subr.bf16.mxu0 %v8786_v57  ;;  %v8856_v57 = vcombine.high %v4839_v48, %v4843_v50  ;;  %v4923_v35 = vld [vmem:[#allocation17 + $0x6b0] sm:$0xff] }
 0x61e   : > { %6443 = vmatmul.mubr.bf16.vlgmr.msra.gmra.mxu1 %v11270_v43 }
 0x61f   : > { %6484 = vmatmul.mubr.bf16.vlgmr.msra.gmra.mxu0 %v11254_v2  ;;  %6493 = vmatpush1.bf16.msra.mxu1 %v8911_v44  ;;  %v4963_v44 = vld [vmem:[#allocation17 + $0x7f0] sm:$0xff] }
 0x620   : > { %6524 = vmatprep.mubr.bf16.mxu1 %v11268_v32  ;;  %6534 = vmatpush1.bf16.msra.mxu0 %v8785_v54  ;;  %v8855_v54 = vcombine.low %v4839_v48, %v4843_v50  ;;  %v8976_v59 = vcombine.high %v4959_v42, %v4963_v44  ;;  %v4911_v50 = vld [vmem:[#allocation17 + $0x650] sm:$0xff] }
 0x621   : > { %6565 = vmatprep.mubr.bf16.mxu0 %v11252_v56  ;;  %6494 = vmatprep.subr.bf16.mxu1 %v8904_v60  ;;  %v8887_v56 = vcombine.low %v4871_v8, %v4875_v11  ;;  %v8729_v60 = vcombine.low %v4712_v51, %v4716_v52  ;;  %v4943_v11 = vld [vmem:[#allocation17 + $0x750] sm:$0xff]  ;;  %v4784_v52 = vld [vmem:[#allocation17 + $0x258] sm:$0xff] }
 0x622   : > { %6535 = vmatprep.subr.bf16.mxu0 %v8778_v63  ;;  %v4951_v63 = vld [vmem:[#allocation17 + $0x790] sm:$0xff] }
 0x623   : > { %6495 = vmatpush1.bf16.msra.mxu1 %v8903_v3  ;;  %v4828_v3 = vld [vmem:[#allocation17 + $0x3b8] sm:$0xff]  ;;  %v4915_v51 = vld [vmem:[#allocation17 + $0x670] sm:$0xff] }
 0x624   : > { %6536 = vmatpush1.bf16.msra.mxu0 %v8777_v4  ;;  %6496 = vmatprep.subr.bf16.mxu1 %v8896_v5  ;;  %v8975_v4 = vcombine.low %v4959_v42, %v4963_v44  ;;  %v8849_v5 = vcombine.low %v4832_v45, %v4836_v36  ;;  %v8842_v8 = vcombine.high %v4824_v1, %v4828_v3  ;;  %v4903_v44 = vld [vmem:[#allocation17 + $0x610] sm:$0xff]  ;;  %v4776_v36 = vld [vmem:[#allocation17 + $0x218] sm:$0xff] }
 0x625   : > { %6537 = vmatprep.subr.bf16.mxu0 %v8770_v6  ;;  %v8968_v6 = vcombine.high %v4951_v63, %v4955_v0  ;;  %v4907_v45 = vld [vmem:[#allocation17 + $0x630] sm:$0xff] }
 0x627   : > { %6497 = vmatpush1.bf16.msra.mxu1 %v8895_v7  ;;  %v4820_v7 = vld [vmem:[#allocation17 + $0x378] sm:$0xff] }
 0x628   : > { %6538 = vmatpush1.bf16.msra.mxu0 %v8769_v17  ;;  %6498 = vmatprep.subr.bf16.mxu1 %v8888_v18  ;;  %v8967_v17 = vcombine.low %v4951_v63, %v4955_v0  ;;  %v8841_v18 = vcombine.low %v4824_v1, %v4828_v3  ;;  %v8834_v20 = vcombine.high %v4816_v62, %v4820_v7  ;;  %v4896_v0 = vld [vmem:[#allocation17 + $0x5d8] sm:$0xff] }
 0x629   : > { %6539 = vmatprep.subr.bf16.mxu0 %v8762_v19  ;;  %v8960_v19 = vcombine.high %v4943_v11, %v4947_v16  ;;  %v4900_v1 = vld [vmem:[#allocation17 + $0x5f8] sm:$0xff]  ;;  %v8919_v3 = vcombine.low %v4903_v44, %v4907_v45 }
 0x62b   : > { %6499 = vmatpush1.bf16.msra.mxu1 %v8887_v56  ;;  %v4812_v56 = vld [vmem:[#allocation17 + $0x338] sm:$0xff] }
 0x62c   : > { %6540 = vmatpush1.bf16.msra.mxu0 %v8761_v30  ;;  %6500 = vmatprep.subr.bf16.mxu1 %v8880_v22  ;;  %v8959_v30 = vcombine.low %v4943_v11, %v4947_v16  ;;  %v8833_v22 = vcombine.low %v4816_v62, %v4820_v7  ;;  %v8826_v47 = vcombine.high %v4808_v29, %v4812_v56  ;;  %v10128_v11 = vld [vmem:[#allocation19 + $0x78] sm:$0xff]  }
 0x62d   : > { %6541 = vmatprep.subr.bf16.mxu0 %v8754_v23  ;;  %v8952_v23 = vcombine.high %v4935_v21, %v4939_v28  ;;  %v8913_v16 = vcombine.low %v4896_v0, %v4900_v1  ;;  %v4880_v7 = vld [vmem:[#allocation17 + $0x558] sm:$0xff] }
 0x62f   : > { %6501 = vmatpush1.bf16.msra.mxu1 %v8879_v26  ;;  %v4804_v26 = vld [vmem:[#allocation17 + $0x2f8] sm:$0xff] }
 0x630   : > { %6542 = vmatpush1.bf16.msra.mxu0 %v8753_v27  ;;  %6502 = vmatprep.subr.bf16.mxu1 %v8872_v46  ;;  %v8951_v27 = vcombine.low %v4935_v21, %v4939_v28  ;;  %v8825_v46 = vcombine.low %v4808_v29, %v4812_v56  ;;  %v8818_v33 = vcombine.high %v4800_v53, %v4804_v26  ;;  %v4872_v56 = vld [vmem:[#allocation17 + $0x518] sm:$0xff] }
 0x631   : > { %6543 = vmatprep.subr.bf16.mxu0 %v8746_v31  ;;  %v8944_v31 = vcombine.high %v4927_v24, %v4931_v25 }
 0x633   : > { %6503 = vmatpush1.bf16.msra.mxu1 %v8871_v38  ;;  %v4796_v38 = vld [vmem:[#allocation17 + $0x2b8] sm:$0xff] }
 0x634   : > { %6544 = vmatpush1.bf16.msra.mxu0 %v8745_v40  ;;  %6504 = vmatprep.subr.bf16.mxu1 %v8864_v41  ;;  %v8943_v40 = vcombine.low %v4927_v24, %v4931_v25  ;;  %v8817_v41 = vcombine.low %v4800_v53, %v4804_v26  ;;  %v8810_v48 = vcombine.high %v4792_v37, %v4796_v38  ;;  %v4864_v53 = vld [vmem:[#allocation17 + $0x4d8] sm:$0xff] }
 0x635   : > { %6545 = vmatprep.subr.bf16.mxu0 %v8738_v39  ;;  %v8936_v39 = vcombine.high %v4919_v34, %v4923_v35  ;;  %v4868_v26 = vld [vmem:[#allocation17 + $0x4f8] sm:$0xff] }
 0x637   : > { %6505 = vmatpush1.bf16.msra.mxu1 %v8863_v49  ;;  %v4788_v49 = vld [vmem:[#allocation17 + $0x278] sm:$0xff] }
 0x638   : > { %6546 = vmatpush1.bf16.msra.mxu0 %v8737_v55  ;;  %6506 = vmatprep.subr.bf16.mxu1 %v8856_v57  ;;  %v8935_v55 = vcombine.low %v4919_v34, %v4923_v35  ;;  %v8809_v57 = vcombine.low %v4792_v37, %v4796_v38  ;;  %v8802_v42 = vcombine.high %v4784_v52, %v4788_v49  ;;  %v4860_v34 = vld [vmem:[#allocation17 + $0x4b8] sm:$0xff]  ;;  %v10135_v35 = vld [vmem:[#allocation19 + $0x20] sm:$0xff]  }
 0x639   : > { %6547 = vmatprep.subr.bf16.mxu0 %v8730_v58  ;;  %v8928_v58 = vcombine.high %v4911_v50, %v4915_v51  ;;  %v10136_v37 = vld [vmem:[#allocation19 + $0x58] sm:$0xff]   ;;  %v8881_v38 = vcombine.low %v4864_v53, %v4868_v26 }
 0x63b   : > { %6507 = vmatpush1.bf16.msra.mxu1 %v8855_v54  ;;  %v4780_v54 = vld [vmem:[#allocation17 + $0x238] sm:$0xff] }
 0x63c   : > { %6548 = vmatpush1.bf16.msra.mxu0 %v8729_v60  ;;  %6508 = vmatprep.subr.bf16.mxu1 %v8976_v59  ;;  %v8927_v60 = vcombine.low %v4911_v50, %v4915_v51  ;;  %v8801_v59 = vcombine.low %v4784_v52, %v4788_v49  ;;  %v8794_v63 = vcombine.high %v4776_v36, %v4780_v54  ;;  %v10138_v50 = vld [vmem:[#allocation19 + $0x50] sm:$0xff]   ;;  %v4840_v49 = vld [vmem:[#allocation17 + $0x418] sm:$0xff] }
 0x63d   : > { %6549 = vmatprep.subr.bf16.mxu0 %v8850_v61  ;;  %v8920_v61 = vcombine.high %v4903_v44, %v4907_v45  ;;  %v4960_v45 = vld [vmem:[#allocation17 + $0x7d8] sm:$0xff] }
 0x63f   : > { %6509 = vmatpush2.bf16.msra.mxu1 %v8975_v4  ;;  %v8793_v4 = vcombine.low %v4776_v36, %v4780_v54  ;;  %v4964_v36 = vld [vmem:[#allocation17 + $0x7f8] sm:$0xff]  ;;  %v10141_v54 = vld [vmem:[#allocation19 + $0x8] sm:$0xff]  }
 0x640   : > { %6550 = vmatpush2.bf16.msra.mxu0 %v8849_v5  ;;  %6510 = vmatprep.subr.bf16.mxu1 %v8968_v6  ;;  %v8914_v5 = vcombine.high %v4896_v0, %v4900_v1  ;;  %v4888_v6 = vld [vmem:[#allocation17 + $0x598] sm:$0xff]  ;;  %v10143_v1 = vld [vmem:[#allocation19] sm:$0xff]  }
 0x641   : > { %6551 = vmatprep.subr.bf16.mxu0 %v8842_v8  ;;  %v4892_v8 = vld [vmem:[#allocation17 + $0x5b8] sm:$0xff] }
 0x642   : > { %v8906_v62 = vcombine.high %v4888_v6, %v4892_v8  ;;  %v8905_v21 = vcombine.low %v4888_v6, %v4892_v8  ;;  %v4956_v0 = vld [vmem:[#allocation17 + $0x7b8] sm:$0xff] }
 0x643   : > { %6511 = vmatpush2.bf16.msra.mxu1 %v8967_v17  ;;  %v4884_v17 = vld [vmem:[#allocation17 + $0x578] sm:$0xff] }
 0x644   : > { %6552 = vmatpush2.bf16.msra.mxu0 %v8841_v18  ;;  %6512 = vmatprep.subr.bf16.mxu1 %v8960_v19  ;;  %v10129_v18 = vld [vmem:[#allocation19 + $0x38] sm:$0xff]   ;;  %v8898_v29 = vcombine.high %v4880_v7, %v4884_v17  ;;  %v8897_v24 = vcombine.low %v4880_v7, %v4884_v17 }
 0x645   : > { %6553 = vmatprep.subr.bf16.mxu0 %v8834_v20  ;;  %v10130_v20 = vld [vmem:[#allocation19 + $0x70] sm:$0xff]   ;;  %v4944_v6 = vld [vmem:[#allocation17 + $0x758] sm:$0xff] }
 0x646   : > { %v4948_v8 = vld [vmem:[#allocation17 + $0x778] sm:$0xff] }
 0x647   : > { %6513 = vmatpush2.bf16.msra.mxu1 %v8959_v30  ;;  %v4876_v30 = vld [vmem:[#allocation17 + $0x538] sm:$0xff]  ;;  %v8961_v17 = vcombine.low %v4944_v6, %v4948_v8 }
 0x648   : > { %6554 = vmatpush2.bf16.msra.mxu0 %v8833_v22  ;;  %6514 = vmatprep.subr.bf16.mxu1 %v8952_v23  ;;  %v10131_v22 = vld [vmem:[#allocation19 + $0x30] sm:$0xff]   ;;  %v4940_v7 = vld [vmem:[#allocation17 + $0x738] sm:$0xff] }
 0x649   : > { %6555 = vmatprep.subr.bf16.mxu0 %v8826_v47  ;;  %v10132_v47 = vld [vmem:[#allocation19 + $0x68] sm:$0xff]  }
 0x64b   : > { %6515 = vmatpush2.bf16.msra.mxu1 %v8951_v27  ;;  %v10134_v27 = vld [vmem:[#allocation19 + $0x60] sm:$0xff]  }
 0x64c   : > { %6556 = vmatpush2.bf16.msra.mxu0 %v8825_v46  ;;  %6516 = vmatprep.subr.bf16.mxu1 %v8944_v31  ;;  %v8889_v46 = vcombine.low %v4872_v56, %v4876_v30  ;;  %v8882_v31 = vcombine.high %v4864_v53, %v4868_v26  ;;  %v4904_v26 = vld [vmem:[#allocation17 + $0x618] sm:$0xff] }
 0x64d   : > { %6557 = vmatprep.subr.bf16.mxu0 %v8818_v33  ;;  %v4856_v33 = vld [vmem:[#allocation17 + $0x498] sm:$0xff] }
 0x64e   : > { %v8873_v51 = vcombine.low %v4856_v33, %v4860_v34 }
 0x64f   : > { %6517 = vmatpush2.bf16.msra.mxu1 %v8943_v40  ;;  %v8874_v40 = vcombine.high %v4856_v33, %v4860_v34  ;;  %v10144_v34 = vld [vmem:[#allocation19 + $0xf8] sm:$0xff]  }
 0x650   : > { %6558 = vmatpush2.bf16.msra.mxu0 %v8817_v41  ;;  %6518 = vmatprep.subr.bf16.mxu1 %v8936_v39  ;;  %v4848_v41 = vld [vmem:[#allocation17 + $0x458] sm:$0xff] }
 0x651   : > { %6559 = vmatprep.subr.bf16.mxu0 %v8810_v48  ;;  %v4852_v39 = vld [vmem:[#allocation17 + $0x478] sm:$0xff] }
 0x652   : > { %v10137_v48 = vld [vmem:[#allocation19 + $0x18] sm:$0xff]   ;;  %v8866_v52 = vcombine.high %v4848_v41, %v4852_v39 }
 0x653   : > { %6519 = vmatpush2.bf16.msra.mxu1 %v8935_v55  ;;  %v4844_v55 = vld [vmem:[#allocation17 + $0x438] sm:$0xff] }
 0x654   : > { %6560 = vmatpush2.bf16.msra.mxu0 %v8809_v57  ;;  %6520 = vmatprep.subr.bf16.mxu1 %v8928_v58  ;;  %v10139_v57 = vld [vmem:[#allocation19 + $0x10] sm:$0xff]   ;;  %v10140_v58 = vld [vmem:[#allocation19 + $0x48] sm:$0xff]   ;;  %v8858_v44 = vcombine.high %v4840_v49, %v4844_v55 }
 0x655   : > { %6561 = vmatprep.subr.bf16.mxu0 %v8802_v42  ;;  %v8865_v42 = vcombine.low %v4848_v41, %v4852_v39 }
 0x657   : > { %6521 = vmatpush2.bf16.msra.mxu1 %v8927_v60  ;;  %v10142_v60 = vld [vmem:[#allocation19 + $0x40] sm:$0xff]  }
 0x658   : > { %6562 = vmatpush2.bf16.msra.mxu0 %v8801_v59  ;;  %6522 = vmatprep.subr.bf16.mxu1 %v8920_v61  ;;  %v8857_v59 = vcombine.low %v4840_v49, %v4844_v55  ;;  %v8978_v61 = vcombine.high %v4960_v45, %v4964_v36 }
 0x659   : > { %6563 = vmatprep.subr.bf16.mxu0 %v8794_v63  ;;  %v4952_v63 = vld [vmem:[#allocation17 + $0x798] sm:$0xff] }
 0x65b   : > { %6523 = vmatpush2.bf16.msra.mxu1 %v8919_v3  ;;  %v10162_v3 = vld [vmem:[#allocation20 + $0xe4] ss:$16 sps:$4 sm:$0xff]  }
 0x65c   : > { %6564 = vmatpush2.bf16.msra.mxu0 %v8793_v4  ;;  %6574 = vmatprep.subr.bf16.mxu1 %v8914_v5  ;;  %v8977_v4 = vcombine.low %v4960_v45, %v4964_v36  ;;  %v8970_v5 = vcombine.high %v4952_v63, %v4956_v0 }
 0x65d   : > { %9146 = vmatprep.subr.bf16.mxu0 %v10128_v11  ;;  %v8969_v11 = vcombine.low %v4952_v63, %v4956_v0  ;;  %v10165_v63 = vld [vmem:[#allocation20 + $0xc4] ss:$16 sps:$4 sm:$0xff]  }
 0x65e   : > { %6525 = vmatmul.mubr.bf16.vlgmr.msra.gmra.mxu1 %v11270_v43  ;;  %v11285_v19 = vpop.f32.mrf.mxu0  ;;  %v10151_v0 = vld [vmem:[#allocation19 + $0xa0] sm:$0xff]  }
 0x65f   : > { %6566 = vmatmul.mubr.bf16.vlgmr.msra.gmra.mxu0 %v11254_v2  ;;  %6575 = vmatpush1.bf16.msra.mxu1 %v8913_v16  ;;  %v8890_v2 = vcombine.high %v4872_v56, %v4876_v30  ;;  %v8962_v16 = vcombine.high %v4944_v6, %v4948_v8  ;;  %v4920_v30 = vld [vmem:[#allocation17 + $0x698] sm:$0xff]  ;;  %v10154_v6 = vld [vmem:[#allocation19 + $0xd0] sm:$0xff]  }
 0x660   : > { %6606 = vmatprep.mubr.bf16.mxu1 %v11268_v32  ;;  %v11289_v28 = vpop.f32.mrf.mxu0  ;;  %6576 = vmatprep.subr.bf16.mxu1 %v8906_v62  ;;  %v10133_v32 = vld [vmem:[#allocation19 + $0x28] sm:$0xff]   ;;  %v4936_v62 = vld [vmem:[#allocation17 + $0x718] sm:$0xff]  ;;  %v10166_v8 = vld [vmem:[#allocation20 + $0xa0] ss:$16 sps:$4 sm:$0xff]  }
 0x661   : > { %9147 = vmatpush3.bf16.msra.mxu0 %v10129_v18  ;;  %v8954_v18 = vcombine.high %v4936_v62, %v4940_v7 }
 0x662   : > { %v6325_v23 = vpop.f32.mrf.mxu0  ;;  %9148 = vmatprep.subr.bf16.mxu0 %v10130_v20  ;;  %v4928_v20 = vld [vmem:[#allocation17 + $0x6d8] sm:$0xff] }
 0x663   : > { %6577 = vmatpush1.bf16.msra.mxu1 %v8905_v21  ;;  %v4932_v21 = vld [vmem:[#allocation17 + $0x6f8] sm:$0xff] }
 0x664   : > { %v6326_v25 = vpop.f32.mrf.mxu0  ;;  %6578 = vmatprep.subr.bf16.mxu1 %v8898_v29  ;;  %v8953_v29 = vcombine.low %v4936_v62, %v4940_v7  ;;  %v8946_v56 = vcombine.high %v4928_v20, %v4932_v21  ;;  %v8945_v23 = vcombine.low %v4928_v20, %v4932_v21  ;;  %v10156_v62 = vld [vmem:[#allocation19 + $0xc8] sm:$0xff]   ;;  %v10169_v7 = vld [vmem:[#allocation20 + $0x80] ss:$16 sps:$4 sm:$0xff]  }
 0x665   : > { %9149 = vmatpush3.bf16.msra.mxu0 %v10131_v22  ;;  %v4924_v22 = vld [vmem:[#allocation17 + $0x6b8] sm:$0xff]  ;;  %v10158_v20 = vld [vmem:[#allocation19 + $0xc0] sm:$0xff]  }
 0x666   : > { %9150 = vmatprep.subr.bf16.mxu0 %v10132_v47  ;;  %v8938_v47 = vcombine.high %v4920_v30, %v4924_v22  ;;  %v4916_v25 = vld [vmem:[#allocation17 + $0x678] sm:$0xff]  ;;  %v10172_v21 = vld [vmem:[#allocation20 + $0x60] ss:$16 sps:$4 sm:$0xff]  }
 0x667   : > { %6579 = vmatpush1.bf16.msra.mxu1 %v8897_v24  ;;  %v4912_v24 = vld [vmem:[#allocation17 + $0x658] sm:$0xff] }
 0x668   : > { %6580 = vmatprep.subr.bf16.mxu1 %v8890_v2  ;;  %v8937_v2 = vcombine.low %v4920_v30, %v4924_v22  ;;  %v8930_v53 = vcombine.high %v4912_v24, %v4916_v25  ;;  %v10210_v30 = vld [vmem:[#allocation20 + $0x2e4] ss:$16 sps:$4 sm:$0xff]   ;;  %v10175_v22 = vld [vmem:[#allocation20 + $0x40] ss:$16 sps:$4 sm:$0xff]  }
 0x669   : > { %9151 = vmatpush3.bf16.msra.mxu0 %v10133_v32  ;;  %v4908_v32 = vld [vmem:[#allocation17 + $0x638] sm:$0xff] }
 0x66a   : > { %9152 = vmatprep.subr.bf16.mxu0 %v10134_v27  ;;  %v8929_v27 = vcombine.low %v4912_v24, %v4916_v25  ;;  %v8921_v33 = vcombine.low %v4904_v26, %v4908_v32  ;;  %v10183_v24 = vld [vmem:[#allocation20 + $0x4] ss:$16 sps:$4 sm:$0xff]   ;;  %v10181_v25 = vld [vmem:[#allocation20] ss:$16 sps:$4 sm:$0xff]  }
 0x66b   : > { %6581 = vmatpush1.bf16.msra.mxu1 %v8889_v46  ;;  %v8922_v46 = vcombine.high %v4904_v26, %v4908_v32  ;;  %v10189_v26 = vld [vmem:[#allocation20 + $0x1c4] ss:$16 sps:$4 sm:$0xff]   ;;  %v10187_v32 = vld [vmem:[#allocation20 + $0x1c0] ss:$16 sps:$4 sm:$0xff]  }
 0x66c   : > { %6582 = vmatprep.subr.bf16.mxu1 %v8882_v31  ;;  %v11294_v31 = vld [vmem:[%s11403_s12] sm:$0xff] }
 0x66d   : > { %9153 = vmatpush3.bf16.msra.mxu0 %v10135_v35  ;;  %v4970_v35 = vrot.slane %v11294_v31, %v11131_v12 }
 0x66e   : > { %9154 = vmatprep.subr.bf16.mxu0 %v10136_v37  ;;  %v4974_v37 = vrot.slane %v11294_v31, %v11137_v14 }
 0x66f   : > { %6583 = vmatpush1.bf16.msra.mxu1 %v8881_v38  ;;  %v10145_v38 = vld [vmem:[#allocation19 + $0xb8] sm:$0xff]   ;;  %v6322_v41 = vadd.f32 %v11285_v19, %v4970_v35  ;;  %v10198_v35 = vld [vmem:[#allocation20 + $0x164] ss:$16 sps:$4 sm:$0xff]  }
 0x670   : > { %6584 = vmatprep.subr.bf16.mxu1 %v8874_v40  ;;  %v10146_v40 = vld [vmem:[#allocation19 + $0xf0] sm:$0xff]  }
 0x671   : > { %9155 = vmatpush3.bf16.msra.mxu0 %v10137_v48 }
 0x672   : > { %9156 = vmatprep.subr.bf16.mxu0 %v10138_v50  ;;  %v6324_v50 = vadd.f32 %v11289_v28, %v4974_v37  ;;  %v10196_v37 = vld [vmem:[#allocation20 + $0x160] ss:$16 sps:$4 sm:$0xff]  }
 0x673   : > { %6585 = vmatpush1.bf16.msra.mxu1 %v8873_v51 }
 0x674   : > { %6586 = vmatprep.subr.bf16.mxu1 %v8866_v52  ;;  %v10147_v52 = vld [vmem:[#allocation19 + $0xb0] sm:$0xff]  }
 0x675   : > { %9157 = vmatpush3.bf16.msra.mxu0 %v10139_v57  ;;  %v10148_v57 = vld [vmem:[#allocation19 + $0xe8] sm:$0xff]  }
 0x676   : > { %9158 = vmatprep.subr.bf16.mxu0 %v10140_v58 }
 0x677   : > { %6587 = vmatpush1.bf16.msra.mxu1 %v8865_v42 }
 0x678   : > { %6588 = vmatprep.subr.bf16.mxu1 %v8858_v44 }
 0x679   : > { %9159 = vmatpush3.bf16.msra.mxu0 %v10141_v54 }
 0x67a   : > { %9160 = vmatprep.subr.bf16.mxu0 %v10142_v60  ;;  %v10150_v60 = vld [vmem:[#allocation19 + $0xe0] sm:$0xff]  }
 0x67b   : > { %6589 = vmatpush1.bf16.msra.mxu1 %v8857_v59  ;;  %v10160_v59 = vld [vmem:[#allocation20 + $0xe0] ss:$16 sps:$4 sm:$0xff]  }
 0x67c   : > { %6590 = vmatprep.subr.bf16.mxu1 %v8978_v61 }
 0x67d   : > { %9161 = vmatpush3.bf16.msra.mxu0 %v10143_v1  ;;  %v10152_v1 = vld [vmem:[#allocation19 + $0xd8] sm:$0xff]  }
 0x67e   : > { %7764 = vmatprep.subr.bf16.mxu0 %v10162_v3  ;;  %v10163_v3 = vld [vmem:[#allocation20 + $0xc0] ss:$16 sps:$4 sm:$0xff]  }
 0x67f   : > { %6591 = vmatpush2.bf16.msra.mxu1 %v8977_v4  ;;  %v10168_v4 = vld [vmem:[#allocation20 + $0xa4] ss:$16 sps:$4 sm:$0xff]  }
 0x680   : > { %6592 = vmatprep.subr.bf16.mxu1 %v8970_v5  ;;  %v10153_v5 = vld [vmem:[#allocation19 + $0x98] sm:$0xff]  }
 0x683   : > { %6593 = vmatpush2.bf16.msra.mxu1 %v8969_v11  ;;  %v10171_v11 = vld [vmem:[#allocation20 + $0x84] ss:$16 sps:$4 sm:$0xff]  }
 0x684   : > { %6594 = vmatprep.subr.bf16.mxu1 %v8962_v16  ;;  %v10155_v16 = vld [vmem:[#allocation19 + $0x90] sm:$0xff]  }
 0x687   : > { %6595 = vmatpush2.bf16.msra.mxu1 %v8961_v17  ;;  %v10174_v17 = vld [vmem:[#allocation20 + $0x64] ss:$16 sps:$4 sm:$0xff]  }
 0x688   : > { %6596 = vmatprep.subr.bf16.mxu1 %v8954_v18  ;;  %v10157_v18 = vld [vmem:[#allocation19 + $0x88] sm:$0xff]  }
 0x68b   : > { %6597 = vmatpush2.bf16.msra.mxu1 %v8953_v29  ;;  %v10177_v29 = vld [vmem:[#allocation20 + $0x44] ss:$16 sps:$4 sm:$0xff]  }
 0x68c   : > { %6598 = vmatprep.subr.bf16.mxu1 %v8946_v56  ;;  %v10159_v56 = vld [vmem:[#allocation19 + $0x80] sm:$0xff]  }
 0x68f   : > { %6599 = vmatpush2.bf16.msra.mxu1 %v8945_v23  ;;  %v10180_v23 = vld [vmem:[#allocation20 + $0x24] ss:$16 sps:$4 sm:$0xff]  }
 0x690   : > { %6600 = vmatprep.subr.bf16.mxu1 %v8938_v47  ;;  %v10178_v47 = vld [vmem:[#allocation20 + $0x20] ss:$16 sps:$4 sm:$0xff]  }
 0x693   : > { %6601 = vmatpush2.bf16.msra.mxu1 %v8937_v2  ;;  %v10186_v2 = vld [vmem:[#allocation20 + $0x1e4] ss:$16 sps:$4 sm:$0xff]  }
 0x694   : > { %6602 = vmatprep.subr.bf16.mxu1 %v8930_v53  ;;  %v10184_v53 = vld [vmem:[#allocation20 + $0x1e0] ss:$16 sps:$4 sm:$0xff]  }
 0x697   : > { %6603 = vmatpush2.bf16.msra.mxu1 %v8929_v27  ;;  %v10192_v27 = vld [vmem:[#allocation20 + $0x1a4] ss:$16 sps:$4 sm:$0xff]  }
 0x698   : > { %6604 = vmatprep.subr.bf16.mxu1 %v8922_v46  ;;  %v10190_v46 = vld [vmem:[#allocation20 + $0x1a0] ss:$16 sps:$4 sm:$0xff]  }
 0x69b   : > { %6605 = vmatpush2.bf16.msra.mxu1 %v8921_v33  ;;  %v10195_v33 = vld [vmem:[#allocation20 + $0x184] ss:$16 sps:$4 sm:$0xff]  }
 0x69c   : > { %9168 = vmatprep.subr.bf16.mxu1 %v10144_v34  ;;  %v10193_v34 = vld [vmem:[#allocation20 + $0x180] ss:$16 sps:$4 sm:$0xff]  }
 0x69e   : > { %6607 = vmatmul.mubr.bf16.vlgmr.msra.gmra.mxu1 %v11270_v43  ;;  %v6362_v39 = vpop.f32.mrf.mxu1  ;;  %v11302_v48 = vpop.f32.mrf.mxu0  ;;  %v10149_v43 = vld [vmem:[#allocation19 + $0xa8] sm:$0xff]  }
 0x69f   : > { %v6363_v51 = vadd.f32 %v6362_v39, %v6322_v41  ;;  %9169 = vmatpush3.bf16.msra.mxu1 %v10145_v38  ;;  %v10201_v38 = vld [vmem:[#allocation20 + $0x144] ss:$16 sps:$4 sm:$0xff]   ;;  %v10199_v41 = vld [vmem:[#allocation20 + $0x140] ss:$16 sps:$4 sm:$0xff]  }
 0x6a0   : > { %v6364_v49 = vpop.f32.mrf.mxu1  ;;  %v11305_v55 = vpop.f32.mrf.mxu0  ;;  %9170 = vmatprep.subr.bf16.mxu1 %v10146_v40  ;;  %v4978_v40 = vrot.slane %v11294_v31, %v11134_v13  ;;  %v10204_v39 = vld [vmem:[#allocation20 + $0x124] ss:$16 sps:$4 sm:$0xff]  }
 0x6a1   : > { %v6365_v58 = vadd.f32 %v6364_v49, %v6324_v50  ;;  %v6615_v42 = vmax.f32 %v6363_v51, 0.0  ;;  %v4982_v50 = vrot.slane %v11294_v31, %v11140_v15 }
 0x6a2   : > { %v6366_v44 = vpop.f32.mrf.mxu1  ;;  %v6407_v45 = vpop.f32.mrf.mxu0  ;;  %v6404_v51 = vadd.f32 %v11302_v48, %v4978_v40  ;;  %v10213_v48 = vld [vmem:[#allocation20 + $0xec] ss:$16 sps:$4 sm:$0xff]   ;;  %v10292_v40 = vld [vmem:[#allocation20 + $0x320] ss:$16 sps:$4 sm:$0xff]  }
 0x6a3   : > { %v6616_v19 = vmax.f32 %v6365_v58, 0.0  ;;  %9171 = vmatpush3.bf16.msra.mxu1 %v10147_v52  ;;  %v6623_v61 = vpack.c.bf16 %v6615_v42, %v6615_v42  ;;  %v10202_v52 = vld [vmem:[#allocation20 + $0x120] ss:$16 sps:$4 sm:$0xff]   ;;  %v6406_v58 = vadd.f32 %v11305_v55, %v4982_v50 }
 0x6a4   : > { %v6367_v36 = vpop.f32.mrf.mxu1  ;;  %v6408_v54 = vpop.f32.mrf.mxu0  ;;  %9172 = vmatprep.subr.bf16.mxu1 %v10148_v57  ;;  %v10207_v57 = vld [vmem:[#allocation20 + $0x104] ss:$16 sps:$4 sm:$0xff]   ;;  %v10208_v55 = vld [vmem:[#allocation20 + $0x2e0] ss:$16 sps:$4 sm:$0xff]  }
 0x6a5   : > { %v6624_v28 = vpack.c.bf16 %v6616_v19, %v6616_v19  ;;  %v10205_v36 = vld [vmem:[#allocation20 + $0x100] ss:$16 sps:$4 sm:$0xff]  }
 0x6a7   : > { %6922 = vmatprep.mubr.bf16.mxu0 %v6624_v28  ;;  %9173 = vmatpush3.bf16.msra.mxu1 %v10149_v43 }
 0x6a8   : > { %6923 = vmatmul.mubr.bf16.vlgmr.msra.gmra.mxu0 %v6623_v61  ;;  %9174 = vmatprep.subr.bf16.mxu1 %v10150_v60 }
 0x6a9   : > { %7765 = vmatpush1.bf16.msra.mxu0 %v10160_v59 }
 0x6aa   : > { %7766 = vmatprep.subr.bf16.mxu0 %v10165_v63 }
 0x6ab   : > { %9175 = vmatpush3.bf16.msra.mxu1 %v10151_v0 }
 0x6ac   : > { %9176 = vmatprep.subr.bf16.mxu1 %v10152_v1 }
 0x6ad   : > { %7767 = vmatpush1.bf16.msra.mxu0 %v10163_v3  ;;  %v10216_v3 = vld [vmem:[#allocation20 + $0x2c4] ss:$16 sps:$4 sm:$0xff]  }
 0x6ae   : > { %7768 = vmatprep.subr.bf16.mxu0 %v10168_v4  ;;  %v10214_v4 = vld [vmem:[#allocation20 + $0x2c0] ss:$16 sps:$4 sm:$0xff]  }
 0x6af   : > { %9177 = vmatpush3.bf16.msra.mxu1 %v10153_v5  ;;  %v10222_v5 = vld [vmem:[#allocation20 + $0x2a4] ss:$16 sps:$4 sm:$0xff]  }
 0x6b0   : > { %9178 = vmatprep.subr.bf16.mxu1 %v10154_v6  ;;  %v10220_v6 = vld [vmem:[#allocation20 + $0x2a0] ss:$16 sps:$4 sm:$0xff]  }
 0x6b1   : > { %7769 = vmatpush1.bf16.msra.mxu0 %v10166_v8  ;;  %v10228_v8 = vld [vmem:[#allocation20 + $0x284] ss:$16 sps:$4 sm:$0xff]  }
 0x6b2   : > { %7770 = vmatprep.subr.bf16.mxu0 %v10171_v11  ;;  %v10226_v11 = vld [vmem:[#allocation20 + $0x280] ss:$16 sps:$4 sm:$0xff]  }
 0x6b3   : > { %9179 = vmatpush3.bf16.msra.mxu1 %v10155_v16  ;;  %v10234_v16 = vld [vmem:[#allocation20 + $0x264] ss:$16 sps:$4 sm:$0xff]  }
 0x6b4   : > { %9180 = vmatprep.subr.bf16.mxu1 %v10156_v62  ;;  %v10232_v62 = vld [vmem:[#allocation20 + $0x260] ss:$16 sps:$4 sm:$0xff]  }
 0x6b5   : > { %7771 = vmatpush1.bf16.msra.mxu0 %v10169_v7  ;;  %v10240_v7 = vld [vmem:[#allocation20 + $0x244] ss:$16 sps:$4 sm:$0xff]  }
 0x6b6   : > { %7772 = vmatprep.subr.bf16.mxu0 %v10174_v17  ;;  %v10238_v17 = vld [vmem:[#allocation20 + $0x240] ss:$16 sps:$4 sm:$0xff]  }
 0x6b7   : > { %9181 = vmatpush3.bf16.msra.mxu1 %v10157_v18  ;;  %v10246_v18 = vld [vmem:[#allocation20 + $0x224] ss:$16 sps:$4 sm:$0xff]  }
 0x6b8   : > { %9182 = vmatprep.subr.bf16.mxu1 %v10158_v20  ;;  %v10244_v20 = vld [vmem:[#allocation20 + $0x220] ss:$16 sps:$4 sm:$0xff]  }
 0x6b9   : > { %7773 = vmatpush1.bf16.msra.mxu0 %v10172_v21  ;;  %v10252_v21 = vld [vmem:[#allocation20 + $0x204] ss:$16 sps:$4 sm:$0xff]  }
 0x6ba   : > { %7774 = vmatprep.subr.bf16.mxu0 %v10177_v29  ;;  %v10250_v29 = vld [vmem:[#allocation20 + $0x200] ss:$16 sps:$4 sm:$0xff]  }
 0x6bb   : > { %9183 = vmatpush3.bf16.msra.mxu1 %v10159_v56  ;;  %v10258_v56 = vld [vmem:[#allocation20 + $0x3e4] ss:$16 sps:$4 sm:$0xff]  }
 0x6bc   : > { %7805 = vmatprep.subr.bf16.mxu1 %v10210_v30  ;;  %v10256_v30 = vld [vmem:[#allocation20 + $0x3e0] ss:$16 sps:$4 sm:$0xff]  }
 0x6bd   : > { %7775 = vmatpush1.bf16.msra.mxu0 %v10175_v22  ;;  %v10264_v22 = vld [vmem:[#allocation20 + $0x3c4] ss:$16 sps:$4 sm:$0xff]  }
 0x6be   : > { %7776 = vmatprep.subr.bf16.mxu0 %v10180_v23  ;;  %v10262_v23 = vld [vmem:[#allocation20 + $0x3c0] ss:$16 sps:$4 sm:$0xff]  }
 0x6c1   : > { %7777 = vmatpush1.bf16.msra.mxu0 %v10178_v47  ;;  %v10270_v47 = vld [vmem:[#allocation20 + $0x3a4] ss:$16 sps:$4 sm:$0xff]  }
 0x6c2   : > { %7778 = vmatprep.subr.bf16.mxu0 %v10183_v24  ;;  %v10268_v24 = vld [vmem:[#allocation20 + $0x3a0] ss:$16 sps:$4 sm:$0xff]  }
 0x6c5   : > { %7779 = vmatpush1.bf16.msra.mxu0 %v10181_v25  ;;  %v10276_v25 = vld [vmem:[#allocation20 + $0x384] ss:$16 sps:$4 sm:$0xff]  }
 0x6c6   : > { %7780 = vmatprep.subr.bf16.mxu0 %v10186_v2  ;;  %v10274_v2 = vld [vmem:[#allocation20 + $0x380] ss:$16 sps:$4 sm:$0xff]  }
 0x6c9   : > { %7781 = vmatpush2.bf16.msra.mxu0 %v10184_v53  ;;  %v10282_v53 = vld [vmem:[#allocation20 + $0x364] ss:$16 sps:$4 sm:$0xff]  }
 0x6ca   : > { %7782 = vmatprep.subr.bf16.mxu0 %v10189_v26  ;;  %v4985_v26 = vsub.s32 4, %v11128_v10 }
 0x6cd   : > { %7783 = vmatpush2.bf16.msra.mxu0 %v10187_v32  ;;  %v10280_v32 = vld [vmem:[#allocation20 + $0x360] ss:$16 sps:$4 sm:$0xff]  }
 0x6ce   : > { %7784 = vmatprep.subr.bf16.mxu0 %v10192_v27  ;;  %v10288_v27 = vld [vmem:[#allocation20 + $0x344] ss:$16 sps:$4 sm:$0xff]  }
 0x6d1   : > { %7785 = vmatpush2.bf16.msra.mxu0 %v10190_v46  ;;  %v4989_v46 = vsub.s32 5, %v11128_v10 }
 0x6d2   : > { %7786 = vmatprep.subr.bf16.mxu0 %v10195_v33  ;;  %v4986_v33 = vrot.slane %v11294_v31, %v4985_v26  ;;  %v10289_v26 = vld [vmem:[#allocation20 + $0x148] ss:$16 sps:$4 sm:$0xff]  }
 0x6d5   : > { %7787 = vmatpush2.bf16.msra.mxu0 %v10193_v34  ;;  %v10286_v34 = vld [vmem:[#allocation20 + $0x340] ss:$16 sps:$4 sm:$0xff]  }
 0x6d6   : > { %7788 = vmatprep.subr.bf16.mxu0 %v10198_v35  ;;  %v10294_v35 = vld [vmem:[#allocation20 + $0x324] ss:$16 sps:$4 sm:$0xff]  }
 0x6d9   : > { %7789 = vmatpush2.bf16.msra.mxu0 %v10196_v37  ;;  %v4990_v37 = vrot.slane %v11294_v31, %v4989_v46 }
 0x6da   : > { %7790 = vmatprep.subr.bf16.mxu0 %v10201_v38 }
 0x6dd   : > { %7791 = vmatpush2.bf16.msra.mxu0 %v10199_v41 }
 0x6de   : > { %v6444_v49 = vpop.f32.mrf.mxu1  ;;  %7792 = vmatprep.subr.bf16.mxu0 %v10204_v39  ;;  %v10300_v39 = vld [vmem:[#allocation20 + $0x304] ss:$16 sps:$4 sm:$0xff]  }
 0x6df   : > { %v6445_v42 = vadd.f32 %v6444_v49, %v6404_v51  ;;  %v11313_v44 = vpop.f32.mrf.mxu0 }
 0x6e0   : > { %v6446_v45 = vpop.f32.mrf.mxu1  ;;  %v6486_v38 = vadd.f32 %v11313_v44, %v4986_v33  ;;  %v10306_v44 = vld [vmem:[#allocation20 + $0x2ec] ss:$16 sps:$4 sm:$0xff]   ;;  %v10295_v33 = vld [vmem:[#allocation20 + $0x128] ss:$16 sps:$4 sm:$0xff]  }
 0x6e1   : > { %v6447_v19 = vadd.f32 %v6446_v45, %v6406_v58  ;;  %v11315_v43 = vpop.f32.mrf.mxu0  ;;  %7793 = vmatpush2.bf16.msra.mxu0 %v10202_v52  ;;  %v6617_v54 = vmax.f32 %v6445_v42, 0.0  ;;  %v10298_v42 = vld [vmem:[#allocation20 + $0x300] ss:$16 sps:$4 sm:$0xff]  }
 0x6e2   : > { %v6448_v60 = vpop.f32.mrf.mxu1  ;;  %7794 = vmatprep.subr.bf16.mxu0 %v10207_v57  ;;  %v6488_v50 = vadd.f32 %v11315_v43, %v4990_v37 }
 0x6e3   : > { %v6618_v28 = vmax.f32 %v6447_v19, 0.0  ;;  %v6489_v59 = vpop.f32.mrf.mxu0  ;;  %v6625_v1 = vpack.c.bf16 %v6617_v54, %v6617_v54 }
 0x6e4   : > { %v6449_v61 = vpop.f32.mrf.mxu1  ;;  %v10211_v59 = vld [vmem:[#allocation20 + $0xe8] ss:$16 sps:$4 sm:$0xff]  }
 0x6e5   : > { %v6626_v63 = vpack.c.bf16 %v6618_v28, %v6618_v28  ;;  %v6490_v0 = vpop.f32.mrf.mxu0  ;;  %7795 = vmatpush2.bf16.msra.mxu0 %v10205_v36  ;;  %v10219_v61 = vld [vmem:[#allocation20 + $0xcc] ss:$16 sps:$4 sm:$0xff]  }
 0x6e6   : > { %7846 = vmatprep.subr.bf16.mxu0 %v10213_v48  ;;  %v10225_v0 = vld [vmem:[#allocation20 + $0xac] ss:$16 sps:$4 sm:$0xff]  }
 0x6e7   : > { %6962 = vmatprep.mubr.bf16.mxu1 %v6626_v63  ;;  %v10217_v63 = vld [vmem:[#allocation20 + $0xc8] ss:$16 sps:$4 sm:$0xff]  }
 0x6e8   : > { %6963 = vmatmul.mubr.bf16.vlgmr.msra.gmra.mxu1 %v6625_v1  ;;  %v10231_v1 = vld [vmem:[#allocation20 + $0x8c] ss:$16 sps:$4 sm:$0xff]  }
 0x6e9   : > { %7806 = vmatpush1.bf16.msra.mxu1 %v10208_v55  ;;  %v10223_v55 = vld [vmem:[#allocation20 + $0xa8] ss:$16 sps:$4 sm:$0xff]  }
 0x6ea   : > { %7807 = vmatprep.subr.bf16.mxu1 %v10216_v3  ;;  %v10229_v3 = vld [vmem:[#allocation20 + $0x88] ss:$16 sps:$4 sm:$0xff]  }
 0x6ed   : > { %7808 = vmatpush1.bf16.msra.mxu1 %v10214_v4  ;;  %v10237_v4 = vld [vmem:[#allocation20 + $0x6c] ss:$16 sps:$4 sm:$0xff]  }
 0x6ee   : > { %7809 = vmatprep.subr.bf16.mxu1 %v10222_v5  ;;  %v10235_v5 = vld [vmem:[#allocation20 + $0x68] ss:$16 sps:$4 sm:$0xff]  }
 0x6f1   : > { %7810 = vmatpush1.bf16.msra.mxu1 %v10220_v6  ;;  %v10243_v6 = vld [vmem:[#allocation20 + $0x4c] ss:$16 sps:$4 sm:$0xff]  }
 0x6f2   : > { %7811 = vmatprep.subr.bf16.mxu1 %v10228_v8  ;;  %v10241_v8 = vld [vmem:[#allocation20 + $0x48] ss:$16 sps:$4 sm:$0xff]  }
 0x6f5   : > { %7812 = vmatpush1.bf16.msra.mxu1 %v10226_v11  ;;  %v10249_v11 = vld [vmem:[#allocation20 + $0x2c] ss:$16 sps:$4 sm:$0xff]  }
 0x6f6   : > { %7813 = vmatprep.subr.bf16.mxu1 %v10234_v16  ;;  %v10247_v16 = vld [vmem:[#allocation20 + $0x28] ss:$16 sps:$4 sm:$0xff]  }
 0x6f9   : > { %7814 = vmatpush1.bf16.msra.mxu1 %v10232_v62  ;;  %v10255_v62 = vld [vmem:[#allocation20 + $0xc] ss:$16 sps:$4 sm:$0xff]  }
 0x6fa   : > { %7815 = vmatprep.subr.bf16.mxu1 %v10240_v7  ;;  %v10253_v7 = vld [vmem:[#allocation20 + $0x8] ss:$16 sps:$4 sm:$0xff]  }
 0x6fd   : > { %7816 = vmatpush1.bf16.msra.mxu1 %v10238_v17  ;;  %v10261_v17 = vld [vmem:[#allocation20 + $0x1ec] ss:$16 sps:$4 sm:$0xff]  }
 0x6fe   : > { %7817 = vmatprep.subr.bf16.mxu1 %v10246_v18  ;;  %v10259_v18 = vld [vmem:[#allocation20 + $0x1e8] ss:$16 sps:$4 sm:$0xff]  }
 0x701   : > { %7818 = vmatpush1.bf16.msra.mxu1 %v10244_v20  ;;  %v10267_v20 = vld [vmem:[#allocation20 + $0x1cc] ss:$16 sps:$4 sm:$0xff]  }
 0x702   : > { %7819 = vmatprep.subr.bf16.mxu1 %v10252_v21  ;;  %v10265_v21 = vld [vmem:[#allocation20 + $0x1c8] ss:$16 sps:$4 sm:$0xff]  }
 0x705   : > { %7820 = vmatpush1.bf16.msra.mxu1 %v10250_v29  ;;  %v10273_v29 = vld [vmem:[#allocation20 + $0x1ac] ss:$16 sps:$4 sm:$0xff]  }
 0x706   : > { %7821 = vmatprep.subr.bf16.mxu1 %v10258_v56  ;;  %v10271_v56 = vld [vmem:[#allocation20 + $0x1a8] ss:$16 sps:$4 sm:$0xff]  }
 0x709   : > { %7822 = vmatpush2.bf16.msra.mxu1 %v10256_v30  ;;  %v10279_v30 = vld [vmem:[#allocation20 + $0x18c] ss:$16 sps:$4 sm:$0xff]  }
 0x70a   : > { %7823 = vmatprep.subr.bf16.mxu1 %v10264_v22  ;;  %v10277_v22 = vld [vmem:[#allocation20 + $0x188] ss:$16 sps:$4 sm:$0xff]  }
 0x70d   : > { %7824 = vmatpush2.bf16.msra.mxu1 %v10262_v23  ;;  %v10285_v23 = vld [vmem:[#allocation20 + $0x16c] ss:$16 sps:$4 sm:$0xff]  }
 0x70e   : > { %7825 = vmatprep.subr.bf16.mxu1 %v10270_v47  ;;  %v4993_v47 = vsub.s32 6, %v11128_v10 }
 0x711   : > { %7826 = vmatpush2.bf16.msra.mxu1 %v10268_v24  ;;  %v10283_v24 = vld [vmem:[#allocation20 + $0x168] ss:$16 sps:$4 sm:$0xff]  }
 0x712   : > { %7827 = vmatprep.subr.bf16.mxu1 %v10276_v25  ;;  %v10291_v25 = vld [vmem:[#allocation20 + $0x14c] ss:$16 sps:$4 sm:$0xff]  }
 0x715   : > { %7828 = vmatpush2.bf16.msra.mxu1 %v10274_v2  ;;  %v4997_v2 = vsub.s32 7, %v11128_v10 }
 0x716   : > { %7829 = vmatprep.subr.bf16.mxu1 %v10282_v53  ;;  %v4994_v53 = vrot.slane %v11294_v31, %v4993_v47  ;;  %v8979_v47 = vld [vmem:[%s11466_s20] ss:$0 sm:$0xff]  ;;  %s10686_s20 = sshll.u32 %s10791_s16, 4  ;;  %s10687_s20 = int_to_ptr.vmem [resolvable:$false] %s10686_s20 }
 0x717   : > { %s10688_s0 = scalar_lea.vmem %s10687_s20, 1024  ;;  %p10689_p1 = scmp.lt.s32.totalorder %s8001_s5, %s10687_s20 }
 0x718   : > { %p10690_p3 = scmp.lt.s32.totalorder %s10688_s0, %s10682_s1 }
 0x719   : > { %7830 = vmatpush2.bf16.msra.mxu1 %v10280_v32  ;;  %v10297_v32 = vld [vmem:[#allocation20 + $0x12c] ss:$16 sps:$4 sm:$0xff]  }
 0x71a   : > { %7831 = vmatprep.subr.bf16.mxu1 %v10288_v27  ;;  %v4998_v27 = vrot.slane %v11294_v31, %v4997_v2  ;;  %p10691_p12 = por %p10690_p3, %p10689_p1 }
 0x71c   : > { %p10692_p0 = pnand %p10691_p12, %p10685_p6 }
 0x71d   : > { %7832 = vmatpush2.bf16.msra.mxu1 %v10286_v34 }
 0x71e   : > { %v6526_v41 = vpop.f32.mrf.mxu1  ;;  %7833 = vmatprep.subr.bf16.mxu1 %v10294_v35  ;;  %v10303_v35 = vld [vmem:[#allocation20 + $0x10c] ss:$16 sps:$4 sm:$0xff]  }
 0x71f   : > { %v6527_v51 = vadd.f32 %v6526_v41, %v6486_v38  ;;  %v11323_v52 = vpop.f32.mrf.mxu0  ;;  %v10301_v41 = vld [vmem:[#allocation20 + $0x108] ss:$16 sps:$4 sm:$0xff]  }
 0x720   : > { %v6528_v49 = vpop.f32.mrf.mxu1  ;;  %v6568_v46 = vadd.f32 %v11323_v52, %v4994_v53  ;;  %v10304_v52 = vld [vmem:[#allocation20 + $0x2e8] ss:$16 sps:$4 sm:$0xff]  }
 0x721   : > { %v6529_v57 = vadd.f32 %v6528_v49, %v6488_v50  ;;  %v11325_v58 = vpop.f32.mrf.mxu0  ;;  %7834 = vmatpush2.bf16.msra.mxu1 %v10292_v40  ;;  %v6619_v45 = vmax.f32 %v6527_v51, 0.0 }
 0x722   : > { %v6530_v19 = vpop.f32.mrf.mxu1  ;;  %7835 = vmatprep.subr.bf16.mxu1 %v10300_v39  ;;  %v6570_v37 = vadd.f32 %v11325_v58, %v4998_v27 }
 0x723   : > { %v6620_v36 = vmax.f32 %v6529_v57, 0.0  ;;  %v6571_v54 = vpop.f32.mrf.mxu0  ;;  %v11327_v43 = vpack.c.bf16 %v6619_v45, %v6619_v45  ;;  %v10307_v45 = vld [vmem:[#allocation20 + $0x2c8] ss:$16 sps:$4 sm:$0xff]  }
 0x724   : > { %v6531_v60 = vpop.f32.mrf.mxu1 }
 0x725   : > { %v6971_v48 = vpack.c.bf16 %v6620_v36, %v6620_v36  ;;  %v6572_v28 = vpop.f32.mrf.mxu0  ;;  %7836 = vmatpush2.bf16.msra.mxu1 %v10298_v42  ;;  %v10309_v42 = vld [vmem:[#allocation20 + $0x2cc] ss:$16 sps:$4 sm:$0xff]   ;;  %v10310_v60 = vld [vmem:[#allocation20 + $0x2a8] ss:$16 sps:$4 sm:$0xff]  }
 0x726   : > { %7887 = vmatprep.subr.bf16.mxu1 %v10306_v44  ;;  %v10312_v44 = vld [vmem:[#allocation20 + $0x2ac] ss:$16 sps:$4 sm:$0xff]  }
 0x727   : > { %7796 = vmatprep.mubr.bf16.mxu0 %v6971_v48  ;;  %v10315_v28 = vld [vmem:[#allocation20 + $0x28c] ss:$16 sps:$4 sm:$0xff]  }
 0x728   : > { %7797 = vmatmul.mubr.bf16.vlgmr.msra.gmra.mxu0 %v11327_v43 }
 0x729   : > { %7847 = vmatpush1.bf16.msra.mxu0 %v10211_v59  ;;  %7878 = vmatprep.mubr.bf16.mxu0 %v6971_v48  ;;  %v10313_v59 = vld [vmem:[#allocation20 + $0x288] ss:$16 sps:$4 sm:$0xff]  }
 0x72a   : > { %7848 = vmatprep.subr.bf16.mxu0 %v10219_v61  ;;  %v10316_v61 = vld [vmem:[#allocation20 + $0x268] ss:$16 sps:$4 sm:$0xff]  }
 0x72d   : > { %7849 = vmatpush1.bf16.msra.mxu0 %v10217_v63  ;;  %v10321_v63 = vld [vmem:[#allocation20 + $0x24c] ss:$16 sps:$4 sm:$0xff]  }
 0x72e   : > { %7850 = vmatprep.subr.bf16.mxu0 %v10225_v0  ;;  %v10319_v0 = vld [vmem:[#allocation20 + $0x248] ss:$16 sps:$4 sm:$0xff]  }
 0x731   : > { %7851 = vmatpush1.bf16.msra.mxu0 %v10223_v55  ;;  %v10324_v55 = vld [vmem:[#allocation20 + $0x22c] ss:$16 sps:$4 sm:$0xff]  }
 0x732   : > { %7852 = vmatprep.subr.bf16.mxu0 %v10231_v1  ;;  %v10322_v1 = vld [vmem:[#allocation20 + $0x228] ss:$16 sps:$4 sm:$0xff]  }
 0x735   : > { %7853 = vmatpush1.bf16.msra.mxu0 %v10229_v3  ;;  %v10327_v3 = vld [vmem:[#allocation20 + $0x20c] ss:$16 sps:$4 sm:$0xff]  }
 0x736   : > { %7854 = vmatprep.subr.bf16.mxu0 %v10237_v4  ;;  %v10325_v4 = vld [vmem:[#allocation20 + $0x208] ss:$16 sps:$4 sm:$0xff]  }
 0x739   : > { %7855 = vmatpush1.bf16.msra.mxu0 %v10235_v5  ;;  %v10330_v5 = vld [vmem:[#allocation20 + $0x3ec] ss:$16 sps:$4 sm:$0xff]  }
 0x73a   : > { %7856 = vmatprep.subr.bf16.mxu0 %v10243_v6  ;;  %v10328_v6 = vld [vmem:[#allocation20 + $0x3e8] ss:$16 sps:$4 sm:$0xff]  }
 0x73d   : > { %7857 = vmatpush1.bf16.msra.mxu0 %v10241_v8  ;;  %v10333_v8 = vld [vmem:[#allocation20 + $0x3cc] ss:$16 sps:$4 sm:$0xff]  }
 0x73e   : > { %7858 = vmatprep.subr.bf16.mxu0 %v10249_v11  ;;  %v10331_v11 = vld [vmem:[#allocation20 + $0x3c8] ss:$16 sps:$4 sm:$0xff]  }
 0x741   : > { %7859 = vmatpush1.bf16.msra.mxu0 %v10247_v16  ;;  %v10336_v16 = vld [vmem:[#allocation20 + $0x3ac] ss:$16 sps:$4 sm:$0xff]  }
 0x742   : > { %7860 = vmatprep.subr.bf16.mxu0 %v10255_v62  ;;  %v10334_v62 = vld [vmem:[#allocation20 + $0x3a8] ss:$16 sps:$4 sm:$0xff]  }
 0x745   : > { %7861 = vmatpush1.bf16.msra.mxu0 %v10253_v7  ;;  %v10339_v7 = vld [vmem:[#allocation20 + $0x38c] ss:$16 sps:$4 sm:$0xff]  }
 0x746   : > { %7862 = vmatprep.subr.bf16.mxu0 %v10261_v17  ;;  %v10337_v17 = vld [vmem:[#allocation20 + $0x388] ss:$16 sps:$4 sm:$0xff]  }
 0x749   : > { %7863 = vmatpush2.bf16.msra.mxu0 %v10259_v18  ;;  %v10342_v18 = vld [vmem:[#allocation20 + $0x36c] ss:$16 sps:$4 sm:$0xff]  }
 0x74a   : > { %7864 = vmatprep.subr.bf16.mxu0 %v10267_v20  ;;  %v10340_v20 = vld [vmem:[#allocation20 + $0x368] ss:$16 sps:$4 sm:$0xff]  }
 0x74d   : > { %7865 = vmatpush2.bf16.msra.mxu0 %v10265_v21  ;;  %v10345_v21 = vld [vmem:[#allocation20 + $0x34c] ss:$16 sps:$4 sm:$0xff]  }
 0x74e   : > { %7866 = vmatprep.subr.bf16.mxu0 %v10273_v29  ;;  %v10343_v29 = vld [vmem:[#allocation20 + $0x348] ss:$16 sps:$4 sm:$0xff]  }
 0x751   : > { %7867 = vmatpush2.bf16.msra.mxu0 %v10271_v56  ;;  %v10348_v56 = vld [vmem:[#allocation20 + $0x32c] ss:$16 sps:$4 sm:$0xff]  }
 0x752   : > { %7868 = vmatprep.subr.bf16.mxu0 %v10279_v30  ;;  %v10346_v30 = vld [vmem:[#allocation20 + $0x328] ss:$16 sps:$4 sm:$0xff]  }
 0x755   : > { %7869 = vmatpush2.bf16.msra.mxu0 %v10277_v22  ;;  %v10351_v22 = vld [vmem:[#allocation20 + $0x30c] ss:$16 sps:$4 sm:$0xff]  }
 0x756   : > { %7870 = vmatprep.subr.bf16.mxu0 %v10285_v23  ;;  %v10349_v23 = vld [vmem:[#allocation20 + $0x308] ss:$16 sps:$4 sm:$0xff]  }
 0x759   : > { %7871 = vmatpush2.bf16.msra.mxu0 %v10283_v24 }
 0x75a   : > { %7872 = vmatprep.subr.bf16.mxu0 %v10291_v25 }
 0x75d   : > { %7873 = vmatpush2.bf16.msra.mxu0 %v10289_v26 }
 0x75e   : > { %v6608_v34 = vpop.f32.mrf.mxu1  ;;  %7874 = vmatprep.subr.bf16.mxu0 %v10297_v32 }
 0x75f   : > { %v6609_v38 = vadd.f32 %v6608_v34, %v6568_v46 }
 0x760   : > { %v6610_v40 = vpop.f32.mrf.mxu1 }
 0x761   : > { %v6611_v10 = vadd.f32 %v6610_v40, %v6570_v37  ;;  %7875 = vmatpush2.bf16.msra.mxu0 %v10295_v33  ;;  %v6621_v39 = vmax.f32 %v6609_v38, 0.0  ;;  %v7102_v37 = vld [vmem:[%s11467_s28] sm:$0xf] }
 0x762   : > { %v6612_v50 = vpop.f32.mrf.mxu1  ;;  %7876 = vmatprep.subr.bf16.mxu0 %v10303_v35  ;;  %v7107_v38 = vrot.slane %v7102_v37, %v11131_v12  ;;  %v7111_v40 = vrot.slane %v7102_v37, %v11137_v14 }
 0x763   : > { %v6622_v51 = vmax.f32 %v6611_v10, 0.0  ;;  %v11336_v57 = vpack.c.bf16 %v6621_v39, %v6621_v39 }
 0x764   : > { %v6613_v49 = vpop.f32.mrf.mxu1 }
 0x765   : > { %v6973_v31 = vpack.c.bf16 %v6622_v51, %v6622_v51  ;;  %7877 = vmatpush2.bf16.msra.mxu0 %v10301_v41 }
 0x767   : > { %7837 = vmatprep.mubr.bf16.mxu1 %v6973_v31 }
 0x768   : > { %7879 = vmatmul.mubr.bf16.vlgmr.msra.gmra.mxu0 %v11327_v43  ;;  %7838 = vmatmul.mubr.bf16.vlgmr.msra.gmra.mxu1 %v11336_v57  ;;  %v9162_v58 = vpop.f32.mrf.mxu0  ;;  %v10318_v43 = vld [vmem:[#allocation20 + $0x26c] ss:$16 sps:$4 sm:$0xff]  }
 0x769   : > { %7888 = vmatpush1.bf16.msra.mxu1 %v10304_v52  ;;  %7919 = vmatprep.mubr.bf16.mxu1 %v6973_v31 }
 0x76a   : > { %v9163_v19 = vpop.f32.mrf.mxu0  ;;  %7889 = vmatprep.subr.bf16.mxu1 %v10309_v42 }
 0x76b   : > { %v11340_v36 = vadd.f32 %v9163_v19, %v9162_v58 }
 0x76c   : > { %v9165_v54 = vpop.f32.mrf.mxu0 }
 0x76d   : > { %7890 = vmatpush1.bf16.msra.mxu1 %v10307_v45  ;;  %v6925_v2 = vadd.f32 %v11340_v36, %v8979_v47  ;;  %v7119_v36 = vrot.slane %v7102_v37, %v11140_v15 }
 0x76e   : > { %v9166_v48 = vpop.f32.mrf.mxu0  ;;  %7891 = vmatprep.subr.bf16.mxu1 %v10312_v44  ;;  %v7115_v44 = vrot.slane %v7102_v37, %v11134_v13 }
 0x771   : > { %7892 = vmatpush1.bf16.msra.mxu1 %v10310_v60 }
 0x772   : > { %7893 = vmatprep.subr.bf16.mxu1 %v10315_v28 }
 0x775   : > { %7894 = vmatpush1.bf16.msra.mxu1 %v10313_v59 }
 0x776   : > { %7895 = vmatprep.subr.bf16.mxu1 %v10318_v43 }
 0x779   : > { %7896 = vmatpush1.bf16.msra.mxu1 %v10316_v61 }
 0x77a   : > { %7897 = vmatprep.subr.bf16.mxu1 %v10321_v63 }
 0x77d   : > { %7898 = vmatpush1.bf16.msra.mxu1 %v10319_v0  ;;  %v7935_v0 = vand.u32 127, %v727_v9 }
 0x77e   : > { %7899 = vmatprep.subr.bf16.mxu1 %v10324_v55 }
 0x77f   : > { %vm7936_vm1 = vcmp.lt.s32.totalorder %v7935_v0, 101 }
 0x781   : > { %7900 = vmatpush1.bf16.msra.mxu1 %v10322_v1 }
 0x782   : > { %7901 = vmatprep.subr.bf16.mxu1 %v10327_v3 }
 0x785   : > { %7902 = vmatpush1.bf16.msra.mxu1 %v10325_v4 }
 0x786   : > { %7903 = vmatprep.subr.bf16.mxu1 %v10330_v5 }
 0x789   : > { %7904 = vmatpush2.bf16.msra.mxu1 %v10328_v6 }
 0x78a   : > { %7905 = vmatprep.subr.bf16.mxu1 %v10333_v8 }
 0x78d   : > { %7906 = vmatpush2.bf16.msra.mxu1 %v10331_v11 }
 0x78e   : > { %7907 = vmatprep.subr.bf16.mxu1 %v10336_v16 }
 0x791   : > { %7908 = vmatpush2.bf16.msra.mxu1 %v10334_v62 }
 0x792   : > { %7909 = vmatprep.subr.bf16.mxu1 %v10339_v7 }
 0x795   : > { %7910 = vmatpush2.bf16.msra.mxu1 %v10337_v17 }
 0x796   : > { %7911 = vmatprep.subr.bf16.mxu1 %v10342_v18 }
 0x799   : > { %7912 = vmatpush2.bf16.msra.mxu1 %v10340_v20 }
 0x79a   : > { %7913 = vmatprep.subr.bf16.mxu1 %v10345_v21 }
 0x79d   : > { %7914 = vmatpush2.bf16.msra.mxu1 %v10343_v29 }
 0x79e   : > { %7915 = vmatprep.subr.bf16.mxu1 %v10348_v56 }
 0x7a1   : > { %7916 = vmatpush2.bf16.msra.mxu1 %v10346_v30 }
 0x7a2   : > { %7917 = vmatprep.subr.bf16.mxu1 %v10351_v22 }
 0x7a5   : > { %7918 = vmatpush2.bf16.msra.mxu1 %v10349_v23 }
 0x7a8   : > { %7920 = vmatmul.mubr.bf16.vlgmr.msra.gmra.mxu1 %v11336_v57  ;;  %v9184_v24 = vpop.f32.mrf.mxu1 }
 0x7aa   : > { %v9185_v25 = vpop.f32.mrf.mxu1 }
 0x7ab   : > { %v9186_v53 = vadd.f32 %v9185_v25, %v9184_v24 }
 0x7ac   : > { %v9187_v26 = vpop.f32.mrf.mxu1 }
 0x7ad   : > { %v6965_v32 = vadd.f32 %v9186_v53, %v6925_v2 }
 0x7ae   : > { %v9188_v27 = vpop.f32.mrf.mxu1 }
 0x7e8   : > { %v7798_v46 = vpop.f32.mrf.mxu0 }
 0x7e9   : > { %v7799_v39 = vadd.f32 %v7798_v46, %v7107_v38 }
 0x7ea   : > { %v7800_v33 = vpop.f32.mrf.mxu0 }
 0x7eb   : > { %v7801_v50 = vadd.f32 %v7800_v33, %v7111_v40 }
 0x7ec   : > { %v7802_v34 = vpop.f32.mrf.mxu0 }
 0x7ee   : > { %v7803_v35 = vpop.f32.mrf.mxu0 }
 0x828   : > { %v7880_v10 = vpop.f32.mrf.mxu0  ;;  %v7839_v41 = vpop.f32.mrf.mxu1 }
 0x829   : > { %v7840_v31 = vadd.f32 %v7839_v41, %v7799_v39  ;;  %v7881_v12 = vadd.f32 %v7880_v10, %v7115_v44 }
 0x82a   : > { %v7882_v51 = vpop.f32.mrf.mxu0  ;;  %v7841_v49 = vpop.f32.mrf.mxu1 }
 0x82b   : > { %v7842_v52 = vadd.f32 %v7841_v49, %v7801_v50  ;;  %v7883_v14 = vadd.f32 %v7882_v51, %v7119_v36 }
 0x82c   : > { %v7884_v57 = vpop.f32.mrf.mxu0  ;;  %v7843_v42 = vpop.f32.mrf.mxu1 }
 0x82d   : > { %v7929_v58 = vadd.f32 %v7842_v52, %v7840_v31 }
 0x82e   : > { %v7885_v45 = vpop.f32.mrf.mxu0  ;;  %v7844_v19 = vpop.f32.mrf.mxu1 }
 0x868   : > { %v7921_v54 = vpop.f32.mrf.mxu1 }
 0x869   : > { %v7922_v60 = vadd.f32 %v7921_v54, %v7881_v12 }
 0x86a   : > { %v7923_v48 = vpop.f32.mrf.mxu1 }
 0x86b   : > { %v7930_v28 = vadd.f32 %v7929_v58, %v7922_v60  ;;  %v7924_v59 = vadd.f32 %v7923_v48, %v7883_v14 }
 0x86c   : > { %v7925_v43 = vpop.f32.mrf.mxu1 }
 0x86d   : > { %v7931_v61 = vadd.f32 %v7930_v28, %v7924_v59 }
 0x86e   : > { %v7926_v63 = vpop.f32.mrf.mxu1 }
 0x86f   : > { %v7932_v55 = vmul.f32 0.25, %v7931_v61 }
 0x871   : > { %v7933_v1 = vsub.f32 %v6965_v32, %v7932_v55 }
 0x873   : > { %v7961_v3 = vadd.f32 %v7933_v1, %v7922_v60  ;;  %v7937_v4 = vadd.f32 %v7933_v1, %v7840_v31  ;;  %v7949_v13 = vadd.f32 %v7933_v1, %v7842_v52  ;;  %v7973_v6 = vadd.f32 %v7933_v1, %v7924_v59 }
 0x875   : > { %v7962_v5 = vsel %vm7936_vm1, %v7961_v3, -1e+30  ;;  %v7938_v15 = vsel %vm7936_vm1, %v7937_v4, -1e+30  ;;  %v7974_v8 = vsel %vm7936_vm1, %v7973_v6, -1e+30 }
 0x876   : > { %7963 = vmax.xlane.f32.xlu1 %v7962_v5  ;;  %7939 = vmax.xlane.f32.xlu0 %v7938_v15  ;;  %v7950_v11 = vsel %vm7936_vm1, %v7949_v13, -1e+30 }
 0x87a   : > { %7975 = vmax.xlane.f32.xlu1 %v7974_v8  ;;  %7951 = vmax.xlane.f32.xlu0 %v7950_v11 }
 0x8ff   : > { %v7964_v16 = vpop.xlane.xlu1 %7963  ;;  %v7940_v62 = vpop.xlane.xlu0 %7939 }
 0x900   : > { %v7965_v7 = vsub.f32 %v7962_v5, %v7964_v16  ;;  %v7941_v17 = vsub.f32 %v7938_v15, %v7940_v62 }
 0x902   : > { %v7942_v9 = vmul.f32 1.442695, %v7941_v17  ;;  %v7966_v21 = vmul.f32 1.442695, %v7965_v7 }
 0x903   : > { %v7976_v18 = vpop.xlane.xlu1 %7975  ;;  %v7952_v20 = vpop.xlane.xlu0 %7951 }
 0x904   : > { %v7953_v29 = vsub.f32 %v7950_v11, %v7952_v20  ;;  %10352 = vpow2.f32 %v7942_v9  ;;  %v7977_v56 = vsub.f32 %v7974_v8, %v7976_v18 }
 0x905   : > { %10354 = vpow2.f32 %v7966_v21 }
 0x906   : > { %v7954_v30 = vmul.f32 1.442695, %v7953_v29  ;;  %v7978_v22 = vmul.f32 1.442695, %v7977_v56 }
 0x908   : > { %10356 = vpow2.f32 %v7954_v30 }
 0x909   : > { %10358 = vpow2.f32 %v7978_v22 }
 0x911   : > { %v10353_v23 = vpop.eup %10352 }
 0x912   : > { %7944 = vadd.xlane.f32.xlu0 %v10353_v23  ;;  %v10355_v47 = vpop.eup %10354 }
 0x915   : > { %v10357_v24 = vpop.eup %10356 }
 0x916   : > { %7968 = vadd.xlane.f32.xlu0 %v10355_v47  ;;  %7956 = vadd.xlane.f32.xlu1 %v10357_v24  ;;  %v10359_v25 = vpop.eup %10358 }
 0x91a   : > { %7980 = vadd.xlane.f32.xlu1 %v10359_v25 }
 0x99b   : > { %v7945_v2 = vpop.xlane.xlu0 %7944 }
 0x99c   : > { %10360 = vrcp.f32 %v7945_v2 }
 0x99f   : > { %v7957_v53 = vpop.xlane.xlu1 %7956  ;;  %v7969_v26 = vpop.xlane.xlu0 %7968 }
 0x9a0   : > { %10362 = vrcp.f32 %v7957_v53 }
 0x9a1   : > { %10364 = vrcp.f32 %v7969_v26 }
 0x9a3   : > { %v7981_v32 = vpop.xlane.xlu1 %7980 }
 0x9a4   : > { %10366 = vrcp.f32 %v7981_v32 }
 0x9a9   : > { %v10361_v27 = vpop.eup %10360 }
 0x9aa   : > { %v7947_v46 = vmul.f32 %v10361_v27, %v10353_v23 }
 0x9ac   : > { %7948 = vst [vmem:[%s717_s14] sm:$0xff] %v7947_v46 }
 0x9ad   : > { %v10363_v33 = vpop.eup %10362 }
 0x9ae   : > { %v10365_v34 = vpop.eup %10364  ;;  %v7959_v35 = vmul.f32 %v10363_v33, %v10357_v24 }
 0x9af   : > { %v7971_v37 = vmul.f32 %v10365_v34, %v10355_v47 }
 0x9b0   : > { %7960 = vst [vmem:[%s717_s14 + $0x8] sm:$0xff] %v7959_v35 }
 0x9b1   : > { %v10367_v38 = vpop.eup %10366  ;;  %7972 = vst [vmem:[%s717_s14 + $0x10] sm:$0xff] %v7971_v37 }
 0x9b2   : > { %v7983_v40 = vmul.f32 %v10367_v38, %v10359_v25 }
 0x9b4   : > { %7984 = vst [vmem:[%s717_s14 + $0x18] sm:$0xff] %v7983_v40 }
 0x9b5   : > { %10695 = shalt.err (!%p10692_p0)
}
 0x9b6   : > { %s10696_s21 = scalar_lea.hbm %s7998_s29, 512  ;;  %s10700_s28 = scalar_lea.hbm %s11468_s30, 1024 }
 0x9b7   : > { %p10697_p13 = scmp.ne.s32.totalorder %s7998_s29, %s10696_s21  ;;  %p10701_p9 = scmp.lt.s32.totalorder %s7998_s29, %s11468_s30 }
 0x9b8   : > { %p10702_p4 = scmp.lt.s32.totalorder %s10700_s28, %s10696_s21 }
 0x9b9   : > { %p10698_p2 = pnand %p10697_p13, %p11469_p7 }
 0x9ba   : > { %p10703_p10 = por %p10702_p4, %p10701_p9 }
 0x9bb   : > { %p10699_p8 = pneg %p10698_p2 }
 0x9bd   : > { %p10704_p11 = pnand %p10703_p10, %p10699_p8 }
 0x9bf   : > { %10707 = shalt.err (!%p10704_p11)
}
 0x9c0   : > { %9236 = dma.vmem_to_hbm [thread:$0]  (%p11469_p7), %s8001_s5, 512, %s7998_s29, %s7986_s19  }
 0x9c1 PF: > { %s8012_s10 = sand.u32 1, %s10758_s24   ;;  %p11470_p5 = scmp.ne.s32.totalorder %s11449_s23, 0 }
 0x9c2   : > { %p11471_p6 = scmp.ge.s32.totalorder %s10770_s27, 2  ;;  %s8013_s7 = scalar_lea.sflag [#allocation4], %s8012_s10 }
 0x9c4   : > { %p9277_p1 = pnand %p11471_p6, %p11470_p5 }
 0x9c6   : > { %p9278_p3 = pneg %p9277_p1 }
 0x9c8   : > { %10753 = dma.done.wait (%p9278_p3), %s8013_s7, 512  }
 0x9c9   : > { %10755 = vsyncadd (%p9278_p3), %s8013_s7, 4294966784  ;;  %p36_p12 = scmp.ge.s32.totalorder %s11038_s22, 4   ;;  %s11472_s24 = smov %s10762_s25 }
 0x9ca   : > { %s11473_s25 = smov %s10766_s26  ;;  %s11474_s26 = smov %s11050_s18 }
 0x9cb   : > { %s11475_s27 = smov %s11038_s22  ;;  %38 = sbr.rel (!%p36_p12) target bundleno = 25 (0x19), region = 177 }
 0x9d0   :  { %8018 = vsyncpa [#allocation3], 1 }
 0x9d1   :  { %8020 = vsyncpa [#allocation3 + $0x1], 1 }
 0x9d2   :  { %8021 = vsyncpa [#allocation6], 1 }
 0x9d3   :  { %8022 = vsyncpa [#allocation9], 1 }
 0x9d4   :  { %8023 = vsyncpa [#allocation12], 1 }
 0x9d5   :  { %8024 = vsyncpa [#allocation15], 1 }
 0x9d6   :  { %8025 = vsyncpa [#allocation18], 1 }
 0x9d7   :  { %8026 = vsyncpa [#allocation21], 1 }
 0x9d8   :  { %8027 = vsyncpa [#allocation4], 1 }
 0x9d9   :  { %8029 = vsyncpa [#allocation4 + $0x1], 1 }

</bundles_post_ra>
